<compile_context>
chip_gen: v5e
topology: v5e:2x2
jax: 0.10.0
libtpu: 0.0.40
codegen_flags: <defaults>
</compile_context>

<pallas_src>
import math

import jax
import jax.numpy as jnp
from jax.experimental import pallas as pl
from jax.experimental.pallas import tpu as pltpu


# ----------------------------------------------------------------------------
# ALiBi slopes (host-side, mirrors BertAlibiEncoder.rebuild_alibi_tensor)
# ----------------------------------------------------------------------------
def _get_alibi_head_slopes(n_heads: int):
    def get_slopes_power_of_2(n):
        start = 2 ** (-(2 ** (-(math.log2(n) - 3))))
        ratio = start
        return [start * ratio ** i for i in range(n)]

    if math.log2(n_heads).is_integer():
        return get_slopes_power_of_2(n_heads)
    closest_power_of_2 = 2 ** math.floor(math.log2(n_heads))
    slopes_a = get_slopes_power_of_2(closest_power_of_2)
    slopes_b = _get_alibi_head_slopes(2 * closest_power_of_2)
    slopes_b = slopes_b[0::2][: n_heads - closest_power_of_2]
    return slopes_a + slopes_b


# ----------------------------------------------------------------------------
# Hardware-dependent sizing
# ----------------------------------------------------------------------------
def _tpu_vmem_capacity_bytes():
    try:
        return int(pltpu.get_tpu_info().vmem_capacity_bytes)
    except Exception:
        return 64 * 1024 * 1024  # conservative (v7x-sized) fallback


def _pick_q_tile(seq_len, target):
    if seq_len <= target:
        return seq_len
    for cand in (target, 256, 128, 64, 32, 16, 8):
        if cand <= target and seq_len % cand == 0:
            return cand
    return seq_len


def _pick_glu_chunk(intermediate, target=1024):
    if intermediate <= target:
        return intermediate
    for cand in (1024, 512, 256, 128):
        if intermediate % cand == 0:
            return cand
    return intermediate


# ----------------------------------------------------------------------------
# Pallas kernel: one full BertAlibiLayer per (batch element, q-tile)
# ----------------------------------------------------------------------------
def make_bert_layer_kernel(*, n_heads, head_dim, hidden, intermediate,
                           seq_len, tq, chunk, ln_eps):
    H, I, S, hd, nh = hidden, intermediate, seq_len, head_dim, n_heads
    n_chunks = I // chunk

    def layer_norm(x, gamma, beta):
        # single-pass statistics: E[x], E[x^2] -> mean / var
        mu = jnp.mean(x, axis=-1, keepdims=True)
        mean_sq = jnp.mean(x * x, axis=-1, keepdims=True)
        var = mean_sq - mu * mu
        return (x - mu) * jax.lax.rsqrt(var + ln_eps) * gamma + beta

    def kernel(maskbias_ref, slopes_ref, x_ref,
               wq_ref, bq_ref, wkv_ref, bkv_ref,
               wao_ref, bao_ref, g1_ref, b1_ref,
               wglu_ref, wo_ref, bo_ref, g2_ref, b2_ref,
               out_ref, k_scr, v_scr):
        qi = pl.program_id(1)

        # ---- K / V for the whole sequence: one fused (H, 2H) matmul, computed
        # ---- once per batch element, cached head-major in VMEM scratch.
        @pl.when(qi == 0)
        def _():
            x_full = x_ref[0]                                          # (S, H) bf16
            kv = jnp.dot(x_full, wkv_ref[...],
                         preferred_element_type=jnp.float32) + bkv_ref[...]
            kv = kv.astype(jnp.bfloat16)                               # (S, 2H)
            k = kv[:, :H].reshape(S, nh, hd)
            v = kv[:, H:].reshape(S, nh, hd)
            k_scr[...] = jnp.transpose(k, (1, 0, 2))                   # (nh, S, hd)
            v_scr[...] = jnp.transpose(v, (1, 0, 2))

        # ---- Q for this q-tile (1/sqrt(d) pre-folded into Wq / bq host-side)
        q_start = pl.multiple_of(qi * tq, tq)
        xq = x_ref[0, pl.ds(q_start, tq), :]                           # (tq, H) bf16
        q = jnp.dot(xq, wq_ref[...],
                    preferred_element_type=jnp.float32) + bq_ref[...]  # (tq, H) f32
        q_h = jnp.transpose(q.astype(jnp.bfloat16).reshape(tq, nh, hd),
                            (1, 0, 2))                                 # (nh, tq, hd)

        k_h = k_scr[...]                                               # (nh, S, hd) bf16
        v_h = v_scr[...]                                               # (nh, S, hd) bf16

        # ---- scores + in-kernel ALiBi + padding-mask bias (no HBM bias tensor)
        s = jnp.einsum('hqd,hkd->hqk', q_h, k_h,
                       preferred_element_type=jnp.float32)             # (nh, tq, S)
        qpos = jax.lax.broadcasted_iota(jnp.int32, (tq, S), 0) + qi * tq
        kpos = jax.lax.broadcasted_iota(jnp.int32, (tq, S), 1)
        neg_dist = -jnp.abs(kpos - qpos).astype(jnp.float32)           # (tq, S)
        s = s + slopes_ref[...] * neg_dist[None] + maskbias_ref[0]     # (nh,1,1)*(1,tq,S)+(1,S)

        # ---- softmax in f32; divide routed to the EUP (approx recip, ~1e-3)
        s = s - jnp.max(s, axis=-1, keepdims=True)
        p = jnp.exp(s)
        p = p * pl.reciprocal(jnp.sum(p, axis=-1, keepdims=True), approx=True)

        o_h = jnp.einsum('hqk,hkd->hqd', p.astype(jnp.bfloat16), v_h,
                         preferred_element_type=jnp.float32)           # (nh, tq, hd)
        # merge heads in-register (no staging scratch)
        attn = jnp.transpose(o_h, (1, 0, 2)).reshape(tq, H).astype(jnp.bfloat16)

        # ---- BertSelfOutput: dense -> LayerNorm(res + x)
        ao = jnp.dot(attn, wao_ref[...],
                     preferred_element_type=jnp.float32) + bao_ref[...]
        h1 = layer_norm(ao + xq.astype(jnp.float32), g1_ref[...], b1_ref[...])
        h1_b = h1.astype(jnp.bfloat16)

        # ---- BertResidualGLU MLP, K-chunked over the intermediate dim
        acc = jnp.zeros((tq, H), jnp.float32)
        for c in range(n_chunks):
            c0 = c * chunk
            gated = jnp.dot(h1_b, wglu_ref[:, c0:c0 + chunk],
                            preferred_element_type=jnp.float32)
            non_g = jnp.dot(h1_b, wglu_ref[:, I + c0:I + c0 + chunk],
                            preferred_element_type=jnp.float32)
            # tanh-GELU (EUP); ~1e-3 relative delta vs. PyTorch exact-erf nn.GELU
            act = jax.nn.gelu(gated, approximate=True) * non_g
            acc = acc + jnp.dot(act.astype(jnp.bfloat16),
                                wo_ref[c0:c0 + chunk, :],
                                preferred_element_type=jnp.float32)

        out = layer_norm(acc + bo_ref[...] + h1, g2_ref[...], b2_ref[...])
        out_ref[0] = out.astype(out_ref.dtype)

    return kernel


PARAM_ORDER = ("wq_t", "bq", "wkv_t", "bkv",
               "wao_t", "bao", "g_ln1", "b_ln1",
               "wglu_t", "wo_t", "bo", "g_ln2", "b_ln2")


def bert_layer_pallas(maskbias, slopes, x, params, *, n_heads, ln_eps):
    B, S, H = x.shape
    I = params["wglu_t"].shape[1] // 2
    hd = H // n_heads

    vmem_cap = _tpu_vmem_capacity_bytes()
    # leave headroom for compiler scratch / semaphores / pipeline buffers
    vmem_limit = max(32 * 1024 * 1024,
                     min(vmem_cap - 12 * 1024 * 1024, 100 * 1024 * 1024))
    tq_target = 256 if vmem_cap >= 96 * 1024 * 1024 else 128
    tq = _pick_q_tile(S, tq_target)
    assert S % tq == 0, "seq_len must be a multiple of the q-tile"
    n_qt = S // tq
    chunk = _pick_glu_chunk(I)
    assert I % chunk == 0, "intermediate dim must be a multiple of the chunk"

    kernel = make_bert_layer_kernel(
        n_heads=n_heads, head_dim=hd, hidden=H, intermediate=I,
        seq_len=S, tq=tq, chunk=chunk, ln_eps=ln_eps)

    def run(single_buffer_weights):
        def const_spec(arr):  # grid-invariant full-array block (DMA'd once)
            nd = arr.ndim
            if single_buffer_weights:
                return pl.BlockSpec(arr.shape, lambda b, q, _nd=nd: (0,) * _nd,
                                    pipeline_mode=pl.Buffered(1))
            return pl.BlockSpec(arr.shape, lambda b, q, _nd=nd: (0,) * _nd)

        in_specs = [
            pl.BlockSpec((1, 1, S), lambda b, q: (b, 0, 0)),   # (1-mask)*-10000, (B,1,S)
            const_spec(slopes),                                # ALiBi slopes (nh,1,1)
            pl.BlockSpec((1, S, H), lambda b, q: (b, 0, 0)),   # hidden states (full seq per b)
        ] + [const_spec(params[k]) for k in PARAM_ORDER]

        return pl.pallas_call(
            kernel,
            out_shape=jax.ShapeDtypeStruct((B, S, H), jnp.bfloat16),
            grid=(B, n_qt),
            in_specs=in_specs,
            out_specs=pl.BlockSpec((1, tq, H), lambda b, q: (b, q, 0)),
            scratch_shapes=[
                pltpu.VMEM((n_heads, S, hd), jnp.bfloat16),    # K cache (head-major)
                pltpu.VMEM((n_heads, S, hd), jnp.bfloat16),    # V cache (head-major)
            ],
            compiler_params=pltpu.CompilerParams(
                dimension_semantics=("parallel", "arbitrary"),
                vmem_limit_bytes=int(vmem_limit)),
        )(maskbias, slopes, x, *[params[k] for k in PARAM_ORDER])

    try:
        return run(True)
    except Exception:
        # TODO(synk): pipeline_mode=pl.Buffered(1) rejected by this JAX build;
        # fall back to default double-buffered grid-invariant weights.
        return run(False)


# ----------------------------------------------------------------------------
# Encoder wrapper (plain-JAX glue)
# ----------------------------------------------------------------------------
def bert_alibi_encoder_forward(hidden_states, attention_mask, layer_params,
                               *, n_heads, ln_eps=1e-12,
                               output_all_encoded_layers=False):
    """hidden_states: (B, S, H) f32 ; attention_mask: (B, S) {0,1} f32."""
    B, S, H = hidden_states.shape
    # extended_attention_mask = (1 - mask) * -10000, broadcast over keys
    maskbias = ((1.0 - attention_mask)[:, None, :] * -10000.0).astype(jnp.float32)  # (B,1,S)
    slopes = jnp.asarray(_get_alibi_head_slopes(n_heads),
                         jnp.float32)[:, None, None]                                # (nh,1,1)

    h = hidden_states.astype(jnp.bfloat16)
    all_layers = []
    for p in layer_params:
        h = bert_layer_pallas(maskbias, slopes, h, p,
                              n_heads=n_heads, ln_eps=ln_eps)
        if output_all_encoded_layers:
            # TODO(synk): intermediate layers keep garbage at padded query rows,
            # matching the dense emulation of the packed (total_nnz) layout.
            all_layers.append(h)
    # pad_input(unpad_input(...)) semantics: zero padded positions at the end
    out = h.astype(jnp.float32) * attention_mask[:, :, None]
    if not output_all_encoded_layers:
        all_layers.append(out)
    # TODO(synk): the subset_mask (masked-token-only final layer) path is not
    # implemented; the full final layer is returned instead.
    return all_layers


# ----------------------------------------------------------------------------
# Deterministic parameter init (shapes from BertAlibiLayer.__init__),
# pre-split / pre-transposed / pre-scaled / bf16-cast for the kernel.
# ----------------------------------------------------------------------------
def init_layer_params(key, hidden, intermediate, n_heads):
    ks = jax.random.split(key, 6)
    std = 0.02
    hd = hidden // n_heads
    scale = 1.0 / math.sqrt(hd)             # folded into Wq / bq
    wqkv = jax.random.normal(ks[0], (3 * hidden, hidden), jnp.float32) * std
    bqkv = jax.random.normal(ks[1], (3 * hidden,), jnp.float32) * std
    wq, wk, wv = wqkv[:hidden], wqkv[hidden:2 * hidden], wqkv[2 * hidden:]
    bq, bk, bv = bqkv[:hidden], bqkv[hidden:2 * hidden], bqkv[2 * hidden:]
    wattn_o = jax.random.normal(ks[2], (hidden, hidden), jnp.float32) * std
    battn_o = jnp.zeros((hidden,), jnp.float32)
    wglu = jax.random.normal(ks[3], (2 * intermediate, hidden), jnp.float32) * std
    wmlp_o = jax.random.normal(ks[4], (hidden, intermediate), jnp.float32) * std
    bmlp_o = jax.random.normal(ks[5], (hidden,), jnp.float32) * std
    return {
        "wq_t": (wq.T * scale).astype(jnp.bfloat16),                 # (H, H), 1/sqrt(d) folded
        "bq": (bq * scale)[None, :],                                 # (1, H) f32
        "wkv_t": jnp.concatenate([wk.T, wv.T], axis=1).astype(jnp.bfloat16),  # (H, 2H) fused K|V
        "bkv": jnp.concatenate([bk, bv])[None, :],                   # (1, 2H) f32
        "wao_t": wattn_o.T.astype(jnp.bfloat16),                     # (H, H)
        "bao": battn_o[None, :],
        "g_ln1": jnp.ones((1, hidden), jnp.float32),
        "b_ln1": jnp.zeros((1, hidden), jnp.float32),
        "wglu_t": wglu.T.astype(jnp.bfloat16),                       # (H, 2I), no bias
        "wo_t": wmlp_o.T.astype(jnp.bfloat16),                       # (I, H)
        "bo": bmlp_o[None, :],
        "g_ln2": jnp.ones((1, hidden), jnp.float32),
        "b_ln2": jnp.zeros((1, hidden), jnp.float32),
    }


if __name__ == "__main__":
    # Small config: batch=2, seq=8, hidden=32, heads=4 (head_dim=8),
    # intermediate=64, num_hidden_layers=2.
    B, S, H = 2, 8, 32
    NH, I, L = 4, 64, 2

    key = jax.random.PRNGKey(0)
    k_x, k_p = jax.random.split(key)
    hidden_states = jax.random.normal(k_x, (B, S, H), jnp.float32)
    # second sequence has 3 padded tokens
    attention_mask = jnp.array(
        [[1] * S, [1] * (S - 3) + [0] * 3], dtype=jnp.float32)

    layer_keys = jax.random.split(k_p, L)
    layer_params = [init_layer_params(layer_keys[i], H, I, NH) for i in range(L)]

    outs = bert_alibi_encoder_forward(
        hidden_states, attention_mask, layer_params,
        n_heads=NH, output_all_encoded_layers=False)
    out = jax.block_until_ready(outs[-1])
    assert out.shape == (B, S, H)
    assert bool(jnp.all(jnp.isfinite(out)))
    # padded positions must be exactly zero (pad_input semantics)
    assert bool(jnp.all(out[1, S - 3:, :] == 0.0))
    # TODO(synk): token unpadding (bert_padding.unpad_input) is emulated with a
    # dense layout (-10000 key mask + final zero-mask) rather than packed rows.
    print("KERNEL_OK")
</pallas_src>

<mosaic_0001>
module attributes {stable_mosaic.version = 11 : i64} {
  func.func @kernel(%arg0: i32, %arg1: i32, %arg2: memref<1x1x8xf32, #tpu.memory_space<vmem>>, %arg3: memref<4x1x1xf32, #tpu.memory_space<vmem>>, %arg4: memref<1x8x32xbf16, #tpu.memory_space<vmem>>, %arg5: memref<32x32xbf16, #tpu.memory_space<vmem>>, %arg6: memref<1x32xf32, #tpu.memory_space<vmem>>, %arg7: memref<32x64xbf16, #tpu.memory_space<vmem>>, %arg8: memref<1x64xf32, #tpu.memory_space<vmem>>, %arg9: memref<32x32xbf16, #tpu.memory_space<vmem>>, %arg10: memref<1x32xf32, #tpu.memory_space<vmem>>, %arg11: memref<1x32xf32, #tpu.memory_space<vmem>>, %arg12: memref<1x32xf32, #tpu.memory_space<vmem>>, %arg13: memref<32x128xbf16, #tpu.memory_space<vmem>>, %arg14: memref<64x32xbf16, #tpu.memory_space<vmem>>, %arg15: memref<1x32xf32, #tpu.memory_space<vmem>>, %arg16: memref<1x32xf32, #tpu.memory_space<vmem>>, %arg17: memref<1x32xf32, #tpu.memory_space<vmem>>, %arg18: memref<1x8x32xbf16, #tpu.memory_space<vmem>>, %arg19: memref<4x8x8xbf16, #tpu.memory_space<vmem>>, %arg20: memref<4x8x8xbf16, #tpu.memory_space<vmem>>) attributes {dimension_semantics = [#tpu.dimension_semantics<parallel>, #tpu.dimension_semantics<arbitrary>], iteration_bounds = array<i64: 2, 1>, scalar_prefetch = 0 : i64, scratch_operands = 2 : i64, tpu.core_type = #tpu.core_type<tc>, window_params = [{transform_indices = @transform_0, window_bounds = array<i64: 1, 1, 8>}, {pipeline_mode = #tpu.pipeline_mode<synchronous>, transform_indices = @transform_1, window_bounds = array<i64: 4, 1, 1>}, {transform_indices = @transform_2, window_bounds = array<i64: 1, 8, 32>}, {pipeline_mode = #tpu.pipeline_mode<synchronous>, transform_indices = @transform_3, window_bounds = array<i64: 32, 32>}, {pipeline_mode = #tpu.pipeline_mode<synchronous>, transform_indices = @transform_4, window_bounds = array<i64: 1, 32>}, {pipeline_mode = #tpu.pipeline_mode<synchronous>, transform_indices = @transform_5, window_bounds = array<i64: 32, 64>}, {pipeline_mode = #tpu.pipeline_mode<synchronous>, transform_indices = @transform_6, window_bounds = array<i64: 1, 64>}, {pipeline_mode = #tpu.pipeline_mode<synchronous>, transform_indices = @transform_7, window_bounds = array<i64: 32, 32>}, {pipeline_mode = #tpu.pipeline_mode<synchronous>, transform_indices = @transform_8, window_bounds = array<i64: 1, 32>}, {pipeline_mode = #tpu.pipeline_mode<synchronous>, transform_indices = @transform_9, window_bounds = array<i64: 1, 32>}, {pipeline_mode = #tpu.pipeline_mode<synchronous>, transform_indices = @transform_10, window_bounds = array<i64: 1, 32>}, {pipeline_mode = #tpu.pipeline_mode<synchronous>, transform_indices = @transform_11, window_bounds = array<i64: 32, 128>}, {pipeline_mode = #tpu.pipeline_mode<synchronous>, transform_indices = @transform_12, window_bounds = array<i64: 64, 32>}, {pipeline_mode = #tpu.pipeline_mode<synchronous>, transform_indices = @transform_13, window_bounds = array<i64: 1, 32>}, {pipeline_mode = #tpu.pipeline_mode<synchronous>, transform_indices = @transform_14, window_bounds = array<i64: 1, 32>}, {pipeline_mode = #tpu.pipeline_mode<synchronous>, transform_indices = @transform_15, window_bounds = array<i64: 1, 32>}, {transform_indices = @transform_16, window_bounds = array<i64: 1, 8, 32>}]} {
    %c0_i32 = arith.constant 0 : i32
    %0 = arith.cmpi eq, %arg1, %c0_i32 : i32
    %1 = arith.extui %0 : i1 to i32
    %c0_i32_0 = arith.constant 0 : i32
    %2 = arith.cmpi ne, %1, %c0_i32_0 : i32
    scf.if %2 {
      %c0_65 = arith.constant 0 : index
      %c0_66 = arith.constant 0 : index
      %c0_67 = arith.constant 0 : index
      %142 = vector.load %arg4[%c0_65, %c0_66, %c0_67] : memref<1x8x32xbf16, #tpu.memory_space<vmem>>, vector<1x8x32xbf16>
      %143 = vector.shape_cast %142 : vector<1x8x32xbf16> to vector<8x32xbf16>
      %c0_68 = arith.constant 0 : index
      %c0_69 = arith.constant 0 : index
      %144 = vector.load %arg7[%c0_68, %c0_69] : memref<32x64xbf16, #tpu.memory_space<vmem>>, vector<32x64xbf16>
      %cst_70 = arith.constant dense<0.000000e+00> : vector<8x64xf32>
      %145 = tpu.matmul %143, %144, %cst_70 {dimension_numbers = #tpu.dot_dimension_numbers<[1], [0], [0], [1], [0, 0, 1, 1], [], []>} : vector<8x32xbf16>, vector<32x64xbf16>, vector<8x64xf32> -> vector<8x64xf32>
      %c0_71 = arith.constant 0 : index
      %c0_72 = arith.constant 0 : index
      %146 = vector.load %arg8[%c0_71, %c0_72] : memref<1x64xf32, #tpu.memory_space<vmem>>, vector<1x64xf32>
      %147 = vector.broadcast %146 : vector<1x64xf32> to vector<8x64xf32>
      %148 = arith.addf %145, %147 : vector<8x64xf32>
      %149 = arith.truncf %148 : vector<8x64xf32> to vector<8x64xbf16>
      %150 = vector.extract_strided_slice %149 {offsets = [0, 0], sizes = [8, 32], strides = [1, 1]} : vector<8x64xbf16> to vector<8x32xbf16>
      %151 = vector.shape_cast %150 : vector<8x32xbf16> to vector<8x4x8xbf16>
      %152 = vector.extract_strided_slice %149 {offsets = [0, 32], sizes = [8, 32], strides = [1, 1]} : vector<8x64xbf16> to vector<8x32xbf16>
      %153 = vector.shape_cast %152 : vector<8x32xbf16> to vector<8x4x8xbf16>
      %154 = tpu.transpose %151, [1, 0, 2] : vector<8x4x8xbf16> -> vector<4x8x8xbf16>
      %c0_73 = arith.constant 0 : index
      %c0_74 = arith.constant 0 : index
      %c0_75 = arith.constant 0 : index
      %155 = vector.load %arg19[%c0_73, %c0_74, %c0_75] : memref<4x8x8xbf16, #tpu.memory_space<vmem>>, vector<4x8x8xbf16>
      tpu.vector_store %arg19[%c0_73, %c0_74, %c0_75], %154 {strides = array<i32>} : memref<4x8x8xbf16, #tpu.memory_space<vmem>>, vector<4x8x8xbf16>,
      %156 = tpu.transpose %153, [1, 0, 2] : vector<8x4x8xbf16> -> vector<4x8x8xbf16>
      %c0_76 = arith.constant 0 : index
      %c0_77 = arith.constant 0 : index
      %c0_78 = arith.constant 0 : index
      %157 = vector.load %arg20[%c0_76, %c0_77, %c0_78] : memref<4x8x8xbf16, #tpu.memory_space<vmem>>, vector<4x8x8xbf16>
      tpu.vector_store %arg20[%c0_76, %c0_77, %c0_78], %156 {strides = array<i32>} : memref<4x8x8xbf16, #tpu.memory_space<vmem>>, vector<4x8x8xbf16>,
    } else {
    }
    %c8_i32 = arith.constant 8 : i32
    %3 = arith.muli %arg1, %c8_i32 : i32
    %4 = tpu.assume_multiple %3, 8 : i32
    %c0 = arith.constant 0 : index
    %5 = arith.index_cast %4 : i32 to index
    %c0_1 = arith.constant 0 : index
    %6 = vector.load %arg4[%c0, %5, %c0_1] : memref<1x8x32xbf16, #tpu.memory_space<vmem>>, vector<1x8x32xbf16>
    %7 = vector.shape_cast %6 : vector<1x8x32xbf16> to vector<8x32xbf16>
    %c0_2 = arith.constant 0 : index
    %c0_3 = arith.constant 0 : index
    %8 = vector.load %arg5[%c0_2, %c0_3] : memref<32x32xbf16, #tpu.memory_space<vmem>>, vector<32x32xbf16>
    %cst = arith.constant dense<0.000000e+00> : vector<8x32xf32>
    %9 = tpu.matmul %7, %8, %cst {dimension_numbers = #tpu.dot_dimension_numbers<[1], [0], [0], [1], [0, 0, 1, 1], [], []>} : vector<8x32xbf16>, vector<32x32xbf16>, vector<8x32xf32> -> vector<8x32xf32>
    %c0_4 = arith.constant 0 : index
    %c0_5 = arith.constant 0 : index
    %10 = vector.load %arg6[%c0_4, %c0_5] : memref<1x32xf32, #tpu.memory_space<vmem>>, vector<1x32xf32>
    %11 = vector.broadcast %10 : vector<1x32xf32> to vector<8x32xf32>
    %12 = arith.addf %9, %11 : vector<8x32xf32>
    %13 = arith.truncf %12 : vector<8x32xf32> to vector<8x32xbf16>
    %14 = vector.shape_cast %13 : vector<8x32xbf16> to vector<8x4x8xbf16>
    %15 = tpu.transpose %14, [1, 0, 2] : vector<8x4x8xbf16> -> vector<4x8x8xbf16>
    %c0_6 = arith.constant 0 : index
    %c0_7 = arith.constant 0 : index
    %c0_8 = arith.constant 0 : index
    %16 = vector.load %arg19[%c0_6, %c0_7, %c0_8] : memref<4x8x8xbf16, #tpu.memory_space<vmem>>, vector<4x8x8xbf16>
    %c0_9 = arith.constant 0 : index
    %c0_10 = arith.constant 0 : index
    %c0_11 = arith.constant 0 : index
    %17 = vector.load %arg20[%c0_9, %c0_10, %c0_11] : memref<4x8x8xbf16, #tpu.memory_space<vmem>>, vector<4x8x8xbf16>
    "tpu.trace_start"() <{level = 10 : i32, message = "hqd,hkd->hqk"}> : () -> ()
    %cst_12 = arith.constant dense<0.000000e+00> : vector<4x8x8xf32>
    %18 = tpu.matmul %15, %16, %cst_12 {dimension_numbers = #tpu.dot_dimension_numbers<[2], [2], [1], [1], [0, 0, 0, 1, 1, 1], [0], [0]>} : vector<4x8x8xbf16>, vector<4x8x8xbf16>, vector<4x8x8xf32> -> vector<4x8x8xf32>
    "tpu.trace_stop"() : () -> ()
    %19 = tpu.iota {dimensions = array<i32: 0>} : vector<8x8xi32>
    %c8_i32_13 = arith.constant 8 : i32
    %20 = arith.muli %arg1, %c8_i32_13 : i32
    %21 = vector.broadcast %20 : i32 to vector<8x8xi32>
    %22 = arith.addi %19, %21 : vector<8x8xi32>
    %23 = tpu.iota {dimensions = array<i32: 1>} : vector<8x8xi32>
    %24 = arith.subi %23, %22 : vector<8x8xi32>
    %25 = math.absi %24 : vector<8x8xi32>
    %26 = arith.sitofp %25 : vector<8x8xi32> to vector<8x8xf32>
    %cst_14 = arith.constant 0.000000e+00 : f32
    %27 = vector.broadcast %cst_14 : f32 to vector<8x8xf32>
    %28 = arith.subf %27, %26 : vector<8x8xf32>
    %c0_15 = arith.constant 0 : index
    %c0_16 = arith.constant 0 : index
    %c0_17 = arith.constant 0 : index
    %29 = vector.load %arg3[%c0_15, %c0_16, %c0_17] : memref<4x1x1xf32, #tpu.memory_space<vmem>>, vector<4x1x1xf32>
    %30 = vector.shape_cast %28 : vector<8x8xf32> to vector<1x8x8xf32>
    %31 = vector.broadcast %29 : vector<4x1x1xf32> to vector<4x8x8xf32>
    %32 = vector.broadcast %30 : vector<1x8x8xf32> to vector<4x8x8xf32>
    %33 = arith.mulf %31, %32 : vector<4x8x8xf32>
    %34 = arith.addf %18, %33 : vector<4x8x8xf32>
    %c0_18 = arith.constant 0 : index
    %c0_19 = arith.constant 0 : index
    %c0_20 = arith.constant 0 : index
    %35 = vector.load %arg2[%c0_18, %c0_19, %c0_20] : memref<1x1x8xf32, #tpu.memory_space<vmem>>, vector<1x1x8xf32>
    %36 = vector.shape_cast %35 : vector<1x1x8xf32> to vector<1x8xf32>
    %37 = vector.shape_cast %36 : vector<1x8xf32> to vector<1x1x8xf32>
    %38 = vector.broadcast %37 : vector<1x1x8xf32> to vector<4x8x8xf32>
    %39 = arith.addf %34, %38 : vector<4x8x8xf32>
    %cst_21 = arith.constant dense<0xFF800000> : vector<4x8xf32>
    %40 = vector.multi_reduction <maximumf>, %39, %cst_21 [2] : vector<4x8x8xf32> to vector<4x8xf32>
    %41 = vector.shape_cast %40 : vector<4x8xf32> to vector<4x8x1xf32>
    %42 = vector.broadcast %41 : vector<4x8x1xf32> to vector<4x8x8xf32>
    %43 = arith.subf %39, %42 : vector<4x8x8xf32>
    %44 = math.exp %43 : vector<4x8x8xf32>
    %cst_22 = arith.constant dense<0.000000e+00> : vector<4x8xf32>
    %45 = vector.multi_reduction <add>, %44, %cst_22 [2] : vector<4x8x8xf32> to vector<4x8xf32>
    %46 = vector.shape_cast %45 : vector<4x8xf32> to vector<4x8x1xf32>
    %47 = tpu.reciprocal %46 {approx = true} : vector<4x8x1xf32> -> vector<4x8x1xf32>
    %48 = vector.broadcast %47 : vector<4x8x1xf32> to vector<4x8x8xf32>
    %49 = arith.mulf %44, %48 : vector<4x8x8xf32>
    %50 = arith.truncf %49 : vector<4x8x8xf32> to vector<4x8x8xbf16>
    "tpu.trace_start"() <{level = 10 : i32, message = "hqk,hkd->hqd"}> : () -> ()
    %cst_23 = arith.constant dense<0.000000e+00> : vector<4x8x8xf32>
    %51 = tpu.matmul %50, %17, %cst_23 {dimension_numbers = #tpu.dot_dimension_numbers<[2], [1], [1], [2], [0, 0, 0, 1, 1, 2], [0], [0]>} : vector<4x8x8xbf16>, vector<4x8x8xbf16>, vector<4x8x8xf32> -> vector<4x8x8xf32>
    "tpu.trace_stop"() : () -> ()
    %52 = tpu.transpose %51, [1, 0, 2] : vector<4x8x8xf32> -> vector<8x4x8xf32>
    %53 = vector.shape_cast %52 : vector<8x4x8xf32> to vector<8x32xf32>
    %54 = arith.truncf %53 : vector<8x32xf32> to vector<8x32xbf16>
    %c0_24 = arith.constant 0 : index
    %c0_25 = arith.constant 0 : index
    %55 = vector.load %arg9[%c0_24, %c0_25] : memref<32x32xbf16, #tpu.memory_space<vmem>>, vector<32x32xbf16>
    %cst_26 = arith.constant dense<0.000000e+00> : vector<8x32xf32>
    %56 = tpu.matmul %54, %55, %cst_26 {dimension_numbers = #tpu.dot_dimension_numbers<[1], [0], [0], [1], [0, 0, 1, 1], [], []>} : vector<8x32xbf16>, vector<32x32xbf16>, vector<8x32xf32> -> vector<8x32xf32>
    %c0_27 = arith.constant 0 : index
    %c0_28 = arith.constant 0 : index
    %57 = vector.load %arg10[%c0_27, %c0_28] : memref<1x32xf32, #tpu.memory_space<vmem>>, vector<1x32xf32>
    %58 = vector.broadcast %57 : vector<1x32xf32> to vector<8x32xf32>
    %59 = arith.addf %56, %58 : vector<8x32xf32>
    %60 = arith.extf %7 : vector<8x32xbf16> to vector<8x32xf32>
    %61 = arith.addf %59, %60 : vector<8x32xf32>
    %c0_29 = arith.constant 0 : index
    %c0_30 = arith.constant 0 : index
    %62 = vector.load %arg11[%c0_29, %c0_30] : memref<1x32xf32, #tpu.memory_space<vmem>>, vector<1x32xf32>
    %c0_31 = arith.constant 0 : index
    %c0_32 = arith.constant 0 : index
    %63 = vector.load %arg12[%c0_31, %c0_32] : memref<1x32xf32, #tpu.memory_space<vmem>>, vector<1x32xf32>
    %cst_33 = arith.constant dense<0.000000e+00> : vector<8xf32>
    %64 = vector.multi_reduction <add>, %61, %cst_33 [1] : vector<8x32xf32> to vector<8xf32>
    %65 = vector.shape_cast %64 : vector<8xf32> to vector<8x1xf32>
    %cst_34 = arith.constant 3.200000e+01 : f32
    %66 = vector.broadcast %cst_34 : f32 to vector<8x1xf32>
    %67 = arith.divf %65, %66 : vector<8x1xf32>
    %68 = arith.mulf %61, %61 : vector<8x32xf32>
    %cst_35 = arith.constant dense<0.000000e+00> : vector<8xf32>
    %69 = vector.multi_reduction <add>, %68, %cst_35 [1] : vector<8x32xf32> to vector<8xf32>
    %70 = vector.shape_cast %69 : vector<8xf32> to vector<8x1xf32>
    %cst_36 = arith.constant 3.200000e+01 : f32
    %71 = vector.broadcast %cst_36 : f32 to vector<8x1xf32>
    %72 = arith.divf %70, %71 : vector<8x1xf32>
    %73 = arith.mulf %67, %67 : vector<8x1xf32>
    %74 = arith.subf %72, %73 : vector<8x1xf32>
    %75 = vector.broadcast %67 : vector<8x1xf32> to vector<8x32xf32>
    %76 = arith.subf %61, %75 : vector<8x32xf32>
    %cst_37 = arith.constant 9.99999996E-13 : f32
    %77 = vector.broadcast %cst_37 : f32 to vector<8x1xf32>
    %78 = arith.addf %74, %77 : vector<8x1xf32>
    %79 = math.rsqrt %78 : vector<8x1xf32>
    %80 = vector.broadcast %79 : vector<8x1xf32> to vector<8x32xf32>
    %81 = arith.mulf %76, %80 : vector<8x32xf32>
    %82 = vector.broadcast %62 : vector<1x32xf32> to vector<8x32xf32>
    %83 = arith.mulf %81, %82 : vector<8x32xf32>
    %84 = vector.broadcast %63 : vector<1x32xf32> to vector<8x32xf32>
    %85 = arith.addf %83, %84 : vector<8x32xf32>
    %86 = arith.truncf %85 : vector<8x32xf32> to vector<8x32xbf16>
    %cst_38 = arith.constant 0.000000e+00 : f32
    %87 = vector.broadcast %cst_38 : f32 to vector<8x32xf32>
    %c0_39 = arith.constant 0 : index
    %c0_40 = arith.constant 0 : index
    %88 = vector.load %arg13[%c0_39, %c0_40] : memref<32x128xbf16, #tpu.memory_space<vmem>>, vector<32x64xbf16>
    %cst_41 = arith.constant dense<0.000000e+00> : vector<8x64xf32>
    %89 = tpu.matmul %86, %88, %cst_41 {dimension_numbers = #tpu.dot_dimension_numbers<[1], [0], [0], [1], [0, 0, 1, 1], [], []>} : vector<8x32xbf16>, vector<32x64xbf16>, vector<8x64xf32> -> vector<8x64xf32>
    %c0_42 = arith.constant 0 : index
    %c64 = arith.constant 64 : index
    %90 = vector.load %arg13[%c0_42, %c64] : memref<32x128xbf16, #tpu.memory_space<vmem>>, vector<32x64xbf16>
    %cst_43 = arith.constant dense<0.000000e+00> : vector<8x64xf32>
    %91 = tpu.matmul %86, %90, %cst_43 {dimension_numbers = #tpu.dot_dimension_numbers<[1], [0], [0], [1], [0, 0, 1, 1], [], []>} : vector<8x32xbf16>, vector<32x64xbf16>, vector<8x64xf32> -> vector<8x64xf32>
    %92 = arith.mulf %89, %89 : vector<8x64xf32>
    %93 = arith.mulf %89, %92 : vector<8x64xf32>
    %cst_44 = arith.constant 4.471500e-02 : f32
    %94 = vector.broadcast %cst_44 : f32 to vector<8x64xf32>
    %95 = arith.mulf %94, %93 : vector<8x64xf32>
    %96 = arith.addf %89, %95 : vector<8x64xf32>
    %cst_45 = arith.constant 0.797884583 : f32
    %97 = vector.broadcast %cst_45 : f32 to vector<8x64xf32>
    %98 = arith.mulf %97, %96 : vector<8x64xf32>
    %99 = math.tanh %98 : vector<8x64xf32>
    %cst_46 = arith.constant 1.000000e+00 : f32
    %100 = vector.broadcast %cst_46 : f32 to vector<8x64xf32>
    %101 = arith.addf %100, %99 : vector<8x64xf32>
    %cst_47 = arith.constant 5.000000e-01 : f32
    %102 = vector.broadcast %cst_47 : f32 to vector<8x64xf32>
    %103 = arith.mulf %102, %101 : vector<8x64xf32>
    %104 = arith.mulf %89, %103 : vector<8x64xf32>
    %105 = arith.mulf %104, %91 : vector<8x64xf32>
    %106 = arith.truncf %105 : vector<8x64xf32> to vector<8x64xbf16>
    %c0_48 = arith.constant 0 : index
    %c0_49 = arith.constant 0 : index
    %107 = vector.load %arg14[%c0_48, %c0_49] : memref<64x32xbf16, #tpu.memory_space<vmem>>, vector<64x32xbf16>
    %cst_50 = arith.constant dense<0.000000e+00> : vector<8x32xf32>
    %108 = tpu.matmul %106, %107, %cst_50 {dimension_numbers = #tpu.dot_dimension_numbers<[1], [0], [0], [1], [0, 0, 1, 1], [], []>} : vector<8x64xbf16>, vector<64x32xbf16>, vector<8x32xf32> -> vector<8x32xf32>
    %109 = arith.addf %87, %108 : vector<8x32xf32>
    %c0_51 = arith.constant 0 : index
    %c0_52 = arith.constant 0 : index
    %110 = vector.load %arg15[%c0_51, %c0_52] : memref<1x32xf32, #tpu.memory_space<vmem>>, vector<1x32xf32>
    %111 = vector.broadcast %110 : vector<1x32xf32> to vector<8x32xf32>
    %112 = arith.addf %109, %111 : vector<8x32xf32>
    %113 = arith.addf %112, %85 : vector<8x32xf32>
    %c0_53 = arith.constant 0 : index
    %c0_54 = arith.constant 0 : index
    %114 = vector.load %arg16[%c0_53, %c0_54] : memref<1x32xf32, #tpu.memory_space<vmem>>, vector<1x32xf32>
    %c0_55 = arith.constant 0 : index
    %c0_56 = arith.constant 0 : index
    %115 = vector.load %arg17[%c0_55, %c0_56] : memref<1x32xf32, #tpu.memory_space<vmem>>, vector<1x32xf32>
    %cst_57 = arith.constant dense<0.000000e+00> : vector<8xf32>
    %116 = vector.multi_reduction <add>, %113, %cst_57 [1] : vector<8x32xf32> to vector<8xf32>
    %117 = vector.shape_cast %116 : vector<8xf32> to vector<8x1xf32>
    %cst_58 = arith.constant 3.200000e+01 : f32
    %118 = vector.broadcast %cst_58 : f32 to vector<8x1xf32>
    %119 = arith.divf %117, %118 : vector<8x1xf32>
    %120 = arith.mulf %113, %113 : vector<8x32xf32>
    %cst_59 = arith.constant dense<0.000000e+00> : vector<8xf32>
    %121 = vector.multi_reduction <add>, %120, %cst_59 [1] : vector<8x32xf32> to vector<8xf32>
    %122 = vector.shape_cast %121 : vector<8xf32> to vector<8x1xf32>
    %cst_60 = arith.constant 3.200000e+01 : f32
    %123 = vector.broadcast %cst_60 : f32 to vector<8x1xf32>
    %124 = arith.divf %122, %123 : vector<8x1xf32>
    %125 = arith.mulf %119, %119 : vector<8x1xf32>
    %126 = arith.subf %124, %125 : vector<8x1xf32>
    %127 = vector.broadcast %119 : vector<8x1xf32> to vector<8x32xf32>
    %128 = arith.subf %113, %127 : vector<8x32xf32>
    %cst_61 = arith.constant 9.99999996E-13 : f32
    %129 = vector.broadcast %cst_61 : f32 to vector<8x1xf32>
    %130 = arith.addf %126, %129 : vector<8x1xf32>
    %131 = math.rsqrt %130 : vector<8x1xf32>
    %132 = vector.broadcast %131 : vector<8x1xf32> to vector<8x32xf32>
    %133 = arith.mulf %128, %132 : vector<8x32xf32>
    %134 = vector.broadcast %114 : vector<1x32xf32> to vector<8x32xf32>
    %135 = arith.mulf %133, %134 : vector<8x32xf32>
    %136 = vector.broadcast %115 : vector<1x32xf32> to vector<8x32xf32>
    %137 = arith.addf %135, %136 : vector<8x32xf32>
    %138 = arith.truncf %137 : vector<8x32xf32> to vector<8x32xbf16>
    %c0_62 = arith.constant 0 : index
    %c0_63 = arith.constant 0 : index
    %c0_64 = arith.constant 0 : index
    %139 = vector.load %arg18[%c0_62, %c0_63, %c0_64] : memref<1x8x32xbf16, #tpu.memory_space<vmem>>, vector<1x8x32xbf16>
    %140 = vector.shape_cast %139 : vector<1x8x32xbf16> to vector<8x32xbf16>
    %141 = vector.shape_cast %138 : vector<8x32xbf16> to vector<1x8x32xbf16>
    tpu.vector_store %arg18[%c0_62, %c0_63, %c0_64], %141 {strides = array<i32>} : memref<1x8x32xbf16, #tpu.memory_space<vmem>>, vector<1x8x32xbf16>,
    return
  }
  func.func @transform_0(%arg0: i32, %arg1: i32) -> (i32, i32, i32) {
    %c0_i32 = arith.constant 0 : i32
    %c0_i32_0 = arith.constant 0 : i32
    %c0_i32_1 = arith.constant 0 : i32
    return %arg0, %c0_i32, %c0_i32_0 : i32, i32, i32
  }
  func.func @transform_1(%arg0: i32, %arg1: i32) -> (i32, i32, i32) {
    %c0_i32 = arith.constant 0 : i32
    %c0_i32_0 = arith.constant 0 : i32
    %c0_i32_1 = arith.constant 0 : i32
    %c0_i32_2 = arith.constant 0 : i32
    return %c0_i32, %c0_i32_0, %c0_i32_1 : i32, i32, i32
  }
  func.func @transform_2(%arg0: i32, %arg1: i32) -> (i32, i32, i32) {
    %c0_i32 = arith.constant 0 : i32
    %c0_i32_0 = arith.constant 0 : i32
    %c0_i32_1 = arith.constant 0 : i32
    return %arg0, %c0_i32, %c0_i32_0 : i32, i32, i32
  }
  func.func @transform_3(%arg0: i32, %arg1: i32) -> (i32, i32) {
    %c0_i32 = arith.constant 0 : i32
    %c0_i32_0 = arith.constant 0 : i32
    %c0_i32_1 = arith.constant 0 : i32
    return %c0_i32, %c0_i32_0 : i32, i32
  }
  func.func @transform_4(%arg0: i32, %arg1: i32) -> (i32, i32) {
    %c0_i32 = arith.constant 0 : i32
    %c0_i32_0 = arith.constant 0 : i32
    %c0_i32_1 = arith.constant 0 : i32
    return %c0_i32, %c0_i32_0 : i32, i32
  }
  func.func @transform_5(%arg0: i32, %arg1: i32) -> (i32, i32) {
    %c0_i32 = arith.constant 0 : i32
    %c0_i32_0 = arith.constant 0 : i32
    %c0_i32_1 = arith.constant 0 : i32
    return %c0_i32, %c0_i32_0 : i32, i32
  }
  func.func @transform_6(%arg0: i32, %arg1: i32) -> (i32, i32) {
    %c0_i32 = arith.constant 0 : i32
    %c0_i32_0 = arith.constant 0 : i32
    %c0_i32_1 = arith.constant 0 : i32
    return %c0_i32, %c0_i32_0 : i32, i32
  }
  func.func @transform_7(%arg0: i32, %arg1: i32) -> (i32, i32) {
    %c0_i32 = arith.constant 0 : i32
    %c0_i32_0 = arith.constant 0 : i32
    %c0_i32_1 = arith.constant 0 : i32
    return %c0_i32, %c0_i32_0 : i32, i32
  }
  func.func @transform_8(%arg0: i32, %arg1: i32) -> (i32, i32) {
    %c0_i32 = arith.constant 0 : i32
    %c0_i32_0 = arith.constant 0 : i32
    %c0_i32_1 = arith.constant 0 : i32
    return %c0_i32, %c0_i32_0 : i32, i32
  }
  func.func @transform_9(%arg0: i32, %arg1: i32) -> (i32, i32) {
    %c0_i32 = arith.constant 0 : i32
    %c0_i32_0 = arith.constant 0 : i32
    %c0_i32_1 = arith.constant 0 : i32
    return %c0_i32, %c0_i32_0 : i32, i32
  }
  func.func @transform_10(%arg0: i32, %arg1: i32) -> (i32, i32) {
    %c0_i32 = arith.constant 0 : i32
    %c0_i32_0 = arith.constant 0 : i32
    %c0_i32_1 = arith.constant 0 : i32
    return %c0_i32, %c0_i32_0 : i32, i32
  }
  func.func @transform_11(%arg0: i32, %arg1: i32) -> (i32, i32) {
    %c0_i32 = arith.constant 0 : i32
    %c0_i32_0 = arith.constant 0 : i32
    %c0_i32_1 = arith.constant 0 : i32
    return %c0_i32, %c0_i32_0 : i32, i32
  }
  func.func @transform_12(%arg0: i32, %arg1: i32) -> (i32, i32) {
    %c0_i32 = arith.constant 0 : i32
    %c0_i32_0 = arith.constant 0 : i32
    %c0_i32_1 = arith.constant 0 : i32
    return %c0_i32, %c0_i32_0 : i32, i32
  }
  func.func @transform_13(%arg0: i32, %arg1: i32) -> (i32, i32) {
    %c0_i32 = arith.constant 0 : i32
    %c0_i32_0 = arith.constant 0 : i32
    %c0_i32_1 = arith.constant 0 : i32
    return %c0_i32, %c0_i32_0 : i32, i32
  }
  func.func @transform_14(%arg0: i32, %arg1: i32) -> (i32, i32) {
    %c0_i32 = arith.constant 0 : i32
    %c0_i32_0 = arith.constant 0 : i32
    %c0_i32_1 = arith.constant 0 : i32
    return %c0_i32, %c0_i32_0 : i32, i32
  }
  func.func @transform_15(%arg0: i32, %arg1: i32) -> (i32, i32) {
    %c0_i32 = arith.constant 0 : i32
    %c0_i32_0 = arith.constant 0 : i32
    %c0_i32_1 = arith.constant 0 : i32
    return %c0_i32, %c0_i32_0 : i32, i32
  }
  func.func @transform_16(%arg0: i32, %arg1: i32) -> (i32, i32, i32) {
    %c0_i32 = arith.constant 0 : i32
    %c0_i32_0 = arith.constant 0 : i32
    return %arg0, %arg1, %c0_i32 : i32, i32, i32
  }
}

module attributes {stable_mosaic.version = 11 : i64} {
  func.func @kernel(%arg0: i32, %arg1: i32, %arg2: memref<1x1x8xf32, #tpu.memory_space<vmem>>, %arg3: memref<4x1x1xf32, #tpu.memory_space<vmem>>, %arg4: memref<1x8x32xbf16, #tpu.memory_space<vmem>>, %arg5: memref<32x32xbf16, #tpu.memory_space<vmem>>, %arg6: memref<1x32xf32, #tpu.memory_space<vmem>>, %arg7: memref<32x64xbf16, #tpu.memory_space<vmem>>, %arg8: memref<1x64xf32, #tpu.memory_space<vmem>>, %arg9: memref<32x32xbf16, #tpu.memory_space<vmem>>, %arg10: memref<1x32xf32, #tpu.memory_space<vmem>>, %arg11: memref<1x32xf32, #tpu.memory_space<vmem>>, %arg12: memref<1x32xf32, #tpu.memory_space<vmem>>, %arg13: memref<32x128xbf16, #tpu.memory_space<vmem>>, %arg14: memref<64x32xbf16, #tpu.memory_space<vmem>>, %arg15: memref<1x32xf32, #tpu.memory_space<vmem>>, %arg16: memref<1x32xf32, #tpu.memory_space<vmem>>, %arg17: memref<1x32xf32, #tpu.memory_space<vmem>>, %arg18: memref<1x8x32xbf16, #tpu.memory_space<vmem>>, %arg19: memref<4x8x8xbf16, #tpu.memory_space<vmem>>, %arg20: memref<4x8x8xbf16, #tpu.memory_space<vmem>>) attributes {dimension_semantics = [#tpu.dimension_semantics<parallel>, #tpu.dimension_semantics<arbitrary>], iteration_bounds = array<i64: 2, 1>, scalar_prefetch = 0 : i64, scratch_operands = 2 : i64, tpu.core_type = #tpu.core_type<tc>, window_params = [{transform_indices = @transform_0, window_bounds = array<i64: 1, 1, 8>}, {pipeline_mode = #tpu.pipeline_mode<synchronous>, transform_indices = @transform_1, window_bounds = array<i64: 4, 1, 1>}, {transform_indices = @transform_2, window_bounds = array<i64: 1, 8, 32>}, {pipeline_mode = #tpu.pipeline_mode<synchronous>, transform_indices = @transform_3, window_bounds = array<i64: 32, 32>}, {pipeline_mode = #tpu.pipeline_mode<synchronous>, transform_indices = @transform_4, window_bounds = array<i64: 1, 32>}, {pipeline_mode = #tpu.pipeline_mode<synchronous>, transform_indices = @transform_5, window_bounds = array<i64: 32, 64>}, {pipeline_mode = #tpu.pipeline_mode<synchronous>, transform_indices = @transform_6, window_bounds = array<i64: 1, 64>}, {pipeline_mode = #tpu.pipeline_mode<synchronous>, transform_indices = @transform_7, window_bounds = array<i64: 32, 32>}, {pipeline_mode = #tpu.pipeline_mode<synchronous>, transform_indices = @transform_8, window_bounds = array<i64: 1, 32>}, {pipeline_mode = #tpu.pipeline_mode<synchronous>, transform_indices = @transform_9, window_bounds = array<i64: 1, 32>}, {pipeline_mode = #tpu.pipeline_mode<synchronous>, transform_indices = @transform_10, window_bounds = array<i64: 1, 32>}, {pipeline_mode = #tpu.pipeline_mode<synchronous>, transform_indices = @transform_11, window_bounds = array<i64: 32, 128>}, {pipeline_mode = #tpu.pipeline_mode<synchronous>, transform_indices = @transform_12, window_bounds = array<i64: 64, 32>}, {pipeline_mode = #tpu.pipeline_mode<synchronous>, transform_indices = @transform_13, window_bounds = array<i64: 1, 32>}, {pipeline_mode = #tpu.pipeline_mode<synchronous>, transform_indices = @transform_14, window_bounds = array<i64: 1, 32>}, {pipeline_mode = #tpu.pipeline_mode<synchronous>, transform_indices = @transform_15, window_bounds = array<i64: 1, 32>}, {transform_indices = @transform_16, window_bounds = array<i64: 1, 8, 32>}]} {
    %c0_i32 = arith.constant 0 : i32
    %0 = arith.cmpi eq, %arg1, %c0_i32 : i32
    %1 = arith.extui %0 : i1 to i32
    %c0_i32_0 = arith.constant 0 : i32
    %2 = arith.cmpi ne, %1, %c0_i32_0 : i32
    scf.if %2 {
      %c0_65 = arith.constant 0 : index
      %c0_66 = arith.constant 0 : index
      %c0_67 = arith.constant 0 : index
      %142 = vector.load %arg4[%c0_65, %c0_66, %c0_67] : memref<1x8x32xbf16, #tpu.memory_space<vmem>>, vector<1x8x32xbf16>
      %143 = vector.shape_cast %142 : vector<1x8x32xbf16> to vector<8x32xbf16>
      %c0_68 = arith.constant 0 : index
      %c0_69 = arith.constant 0 : index
      %144 = vector.load %arg7[%c0_68, %c0_69] : memref<32x64xbf16, #tpu.memory_space<vmem>>, vector<32x64xbf16>
      %cst_70 = arith.constant dense<0.000000e+00> : vector<8x64xf32>
      %145 = tpu.matmul %143, %144, %cst_70 {dimension_numbers = #tpu.dot_dimension_numbers<[1], [0], [0], [1], [0, 0, 1, 1], [], []>} : vector<8x32xbf16>, vector<32x64xbf16>, vector<8x64xf32> -> vector<8x64xf32>
      %c0_71 = arith.constant 0 : index
      %c0_72 = arith.constant 0 : index
      %146 = vector.load %arg8[%c0_71, %c0_72] : memref<1x64xf32, #tpu.memory_space<vmem>>, vector<1x64xf32>
      %147 = vector.broadcast %146 : vector<1x64xf32> to vector<8x64xf32>
      %148 = arith.addf %145, %147 : vector<8x64xf32>
      %149 = arith.truncf %148 : vector<8x64xf32> to vector<8x64xbf16>
      %150 = vector.extract_strided_slice %149 {offsets = [0, 0], sizes = [8, 32], strides = [1, 1]} : vector<8x64xbf16> to vector<8x32xbf16>
      %151 = vector.shape_cast %150 : vector<8x32xbf16> to vector<8x4x8xbf16>
      %152 = vector.extract_strided_slice %149 {offsets = [0, 32], sizes = [8, 32], strides = [1, 1]} : vector<8x64xbf16> to vector<8x32xbf16>
      %153 = vector.shape_cast %152 : vector<8x32xbf16> to vector<8x4x8xbf16>
      %154 = tpu.transpose %151, [1, 0, 2] : vector<8x4x8xbf16> -> vector<4x8x8xbf16>
      %c0_73 = arith.constant 0 : index
      %c0_74 = arith.constant 0 : index
      %c0_75 = arith.constant 0 : index
      %155 = vector.load %arg19[%c0_73, %c0_74, %c0_75] : memref<4x8x8xbf16, #tpu.memory_space<vmem>>, vector<4x8x8xbf16>
      tpu.vector_store %arg19[%c0_73, %c0_74, %c0_75], %154 {strides = array<i32>} : memref<4x8x8xbf16, #tpu.memory_space<vmem>>, vector<4x8x8xbf16>,
      %156 = tpu.transpose %153, [1, 0, 2] : vector<8x4x8xbf16> -> vector<4x8x8xbf16>
      %c0_76 = arith.constant 0 : index
      %c0_77 = arith.constant 0 : index
      %c0_78 = arith.constant 0 : index
      %157 = vector.load %arg20[%c0_76, %c0_77, %c0_78] : memref<4x8x8xbf16, #tpu.memory_space<vmem>>, vector<4x8x8xbf16>
      tpu.vector_store %arg20[%c0_76, %c0_77, %c0_78], %156 {strides = array<i32>} : memref<4x8x8xbf16, #tpu.memory_space<vmem>>, vector<4x8x8xbf16>,
    } else {
    }
    %c8_i32 = arith.constant 8 : i32
    %3 = arith.muli %arg1, %c8_i32 : i32
    %4 = tpu.assume_multiple %3, 8 : i32
    %c0 = arith.constant 0 : index
    %5 = arith.index_cast %4 : i32 to index
    %c0_1 = arith.constant 0 : index
    %6 = vector.load %arg4[%c0, %5, %c0_1] : memref<1x8x32xbf16, #tpu.memory_space<vmem>>, vector<1x8x32xbf16>
    %7 = vector.shape_cast %6 : vector<1x8x32xbf16> to vector<8x32xbf16>
    %c0_2 = arith.constant 0 : index
    %c0_3 = arith.constant 0 : index
    %8 = vector.load %arg5[%c0_2, %c0_3] : memref<32x32xbf16, #tpu.memory_space<vmem>>, vector<32x32xbf16>
    %cst = arith.constant dense<0.000000e+00> : vector<8x32xf32>
    %9 = tpu.matmul %7, %8, %cst {dimension_numbers = #tpu.dot_dimension_numbers<[1], [0], [0], [1], [0, 0, 1, 1], [], []>} : vector<8x32xbf16>, vector<32x32xbf16>, vector<8x32xf32> -> vector<8x32xf32>
    %c0_4 = arith.constant 0 : index
    %c0_5 = arith.constant 0 : index
    %10 = vector.load %arg6[%c0_4, %c0_5] : memref<1x32xf32, #tpu.memory_space<vmem>>, vector<1x32xf32>
    %11 = vector.broadcast %10 : vector<1x32xf32> to vector<8x32xf32>
    %12 = arith.addf %9, %11 : vector<8x32xf32>
    %13 = arith.truncf %12 : vector<8x32xf32> to vector<8x32xbf16>
    %14 = vector.shape_cast %13 : vector<8x32xbf16> to vector<8x4x8xbf16>
    %15 = tpu.transpose %14, [1, 0, 2] : vector<8x4x8xbf16> -> vector<4x8x8xbf16>
    %c0_6 = arith.constant 0 : index
    %c0_7 = arith.constant 0 : index
    %c0_8 = arith.constant 0 : index
    %16 = vector.load %arg19[%c0_6, %c0_7, %c0_8] : memref<4x8x8xbf16, #tpu.memory_space<vmem>>, vector<4x8x8xbf16>
    %c0_9 = arith.constant 0 : index
    %c0_10 = arith.constant 0 : index
    %c0_11 = arith.constant 0 : index
    %17 = vector.load %arg20[%c0_9, %c0_10, %c0_11] : memref<4x8x8xbf16, #tpu.memory_space<vmem>>, vector<4x8x8xbf16>
    "tpu.trace_start"() <{level = 10 : i32, message = "hqd,hkd->hqk"}> : () -> ()
    %cst_12 = arith.constant dense<0.000000e+00> : vector<4x8x8xf32>
    %18 = tpu.matmul %15, %16, %cst_12 {dimension_numbers = #tpu.dot_dimension_numbers<[2], [2], [1], [1], [0, 0, 0, 1, 1, 1], [0], [0]>} : vector<4x8x8xbf16>, vector<4x8x8xbf16>, vector<4x8x8xf32> -> vector<4x8x8xf32>
    "tpu.trace_stop"() : () -> ()
    %19 = tpu.iota {dimensions = array<i32: 0>} : vector<8x8xi32>
    %c8_i32_13 = arith.constant 8 : i32
    %20 = arith.muli %arg1, %c8_i32_13 : i32
    %21 = vector.broadcast %20 : i32 to vector<8x8xi32>
    %22 = arith.addi %19, %21 : vector<8x8xi32>
    %23 = tpu.iota {dimensions = array<i32: 1>} : vector<8x8xi32>
    %24 = arith.subi %23, %22 : vector<8x8xi32>
    %25 = math.absi %24 : vector<8x8xi32>
    %26 = arith.sitofp %25 : vector<8x8xi32> to vector<8x8xf32>
    %cst_14 = arith.constant 0.000000e+00 : f32
    %27 = vector.broadcast %cst_14 : f32 to vector<8x8xf32>
    %28 = arith.subf %27, %26 : vector<8x8xf32>
    %c0_15 = arith.constant 0 : index
    %c0_16 = arith.constant 0 : index
    %c0_17 = arith.constant 0 : index
    %29 = vector.load %arg3[%c0_15, %c0_16, %c0_17] : memref<4x1x1xf32, #tpu.memory_space<vmem>>, vector<4x1x1xf32>
    %30 = vector.shape_cast %28 : vector<8x8xf32> to vector<1x8x8xf32>
    %31 = vector.broadcast %29 : vector<4x1x1xf32> to vector<4x8x8xf32>
    %32 = vector.broadcast %30 : vector<1x8x8xf32> to vector<4x8x8xf32>
    %33 = arith.mulf %31, %32 : vector<4x8x8xf32>
    %34 = arith.addf %18, %33 : vector<4x8x8xf32>
    %c0_18 = arith.constant 0 : index
    %c0_19 = arith.constant 0 : index
    %c0_20 = arith.constant 0 : index
    %35 = vector.load %arg2[%c0_18, %c0_19, %c0_20] : memref<1x1x8xf32, #tpu.memory_space<vmem>>, vector<1x1x8xf32>
    %36 = vector.shape_cast %35 : vector<1x1x8xf32> to vector<1x8xf32>
    %37 = vector.shape_cast %36 : vector<1x8xf32> to vector<1x1x8xf32>
    %38 = vector.broadcast %37 : vector<1x1x8xf32> to vector<4x8x8xf32>
    %39 = arith.addf %34, %38 : vector<4x8x8xf32>
    %cst_21 = arith.constant dense<0xFF800000> : vector<4x8xf32>
    %40 = vector.multi_reduction <maximumf>, %39, %cst_21 [2] : vector<4x8x8xf32> to vector<4x8xf32>
    %41 = vector.shape_cast %40 : vector<4x8xf32> to vector<4x8x1xf32>
    %42 = vector.broadcast %41 : vector<4x8x1xf32> to vector<4x8x8xf32>
    %43 = arith.subf %39, %42 : vector<4x8x8xf32>
    %44 = math.exp %43 : vector<4x8x8xf32>
    %cst_22 = arith.constant dense<0.000000e+00> : vector<4x8xf32>
    %45 = vector.multi_reduction <add>, %44, %cst_22 [2] : vector<4x8x8xf32> to vector<4x8xf32>
    %46 = vector.shape_cast %45 : vector<4x8xf32> to vector<4x8x1xf32>
    %47 = tpu.reciprocal %46 {approx = true} : vector<4x8x1xf32> -> vector<4x8x1xf32>
    %48 = vector.broadcast %47 : vector<4x8x1xf32> to vector<4x8x8xf32>
    %49 = arith.mulf %44, %48 : vector<4x8x8xf32>
    %50 = arith.truncf %49 : vector<4x8x8xf32> to vector<4x8x8xbf16>
    "tpu.trace_start"() <{level = 10 : i32, message = "hqk,hkd->hqd"}> : () -> ()
    %cst_23 = arith.constant dense<0.000000e+00> : vector<4x8x8xf32>
    %51 = tpu.matmul %50, %17, %cst_23 {dimension_numbers = #tpu.dot_dimension_numbers<[2], [1], [1], [2], [0, 0, 0, 1, 1, 2], [0], [0]>} : vector<4x8x8xbf16>, vector<4x8x8xbf16>, vector<4x8x8xf32> -> vector<4x8x8xf32>
    "tpu.trace_stop"() : () -> ()
    %52 = tpu.transpose %51, [1, 0, 2] : vector<4x8x8xf32> -> vector<8x4x8xf32>
    %53 = vector.shape_cast %52 : vector<8x4x8xf32> to vector<8x32xf32>
    %54 = arith.truncf %53 : vector<8x32xf32> to vector<8x32xbf16>
    %c0_24 = arith.constant 0 : index
    %c0_25 = arith.constant 0 : index
    %55 = vector.load %arg9[%c0_24, %c0_25] : memref<32x32xbf16, #tpu.memory_space<vmem>>, vector<32x32xbf16>
    %cst_26 = arith.constant dense<0.000000e+00> : vector<8x32xf32>
    %56 = tpu.matmul %54, %55, %cst_26 {dimension_numbers = #tpu.dot_dimension_numbers<[1], [0], [0], [1], [0, 0, 1, 1], [], []>} : vector<8x32xbf16>, vector<32x32xbf16>, vector<8x32xf32> -> vector<8x32xf32>
    %c0_27 = arith.constant 0 : index
    %c0_28 = arith.constant 0 : index
    %57 = vector.load %arg10[%c0_27, %c0_28] : memref<1x32xf32, #tpu.memory_space<vmem>>, vector<1x32xf32>
    %58 = vector.broadcast %57 : vector<1x32xf32> to vector<8x32xf32>
    %59 = arith.addf %56, %58 : vector<8x32xf32>
    %60 = arith.extf %7 : vector<8x32xbf16> to vector<8x32xf32>
    %61 = arith.addf %59, %60 : vector<8x32xf32>
    %c0_29 = arith.constant 0 : index
    %c0_30 = arith.constant 0 : index
    %62 = vector.load %arg11[%c0_29, %c0_30] : memref<1x32xf32, #tpu.memory_space<vmem>>, vector<1x32xf32>
    %c0_31 = arith.constant 0 : index
    %c0_32 = arith.constant 0 : index
    %63 = vector.load %arg12[%c0_31, %c0_32] : memref<1x32xf32, #tpu.memory_space<vmem>>, vector<1x32xf32>
    %cst_33 = arith.constant dense<0.000000e+00> : vector<8xf32>
    %64 = vector.multi_reduction <add>, %61, %cst_33 [1] : vector<8x32xf32> to vector<8xf32>
    %65 = vector.shape_cast %64 : vector<8xf32> to vector<8x1xf32>
    %cst_34 = arith.constant 3.200000e+01 : f32
    %66 = vector.broadcast %cst_34 : f32 to vector<8x1xf32>
    %67 = arith.divf %65, %66 : vector<8x1xf32>
    %68 = arith.mulf %61, %61 : vector<8x32xf32>
    %cst_35 = arith.constant dense<0.000000e+00> : vector<8xf32>
    %69 = vector.multi_reduction <add>, %68, %cst_35 [1] : vector<8x32xf32> to vector<8xf32>
    %70 = vector.shape_cast %69 : vector<8xf32> to vector<8x1xf32>
    %cst_36 = arith.constant 3.200000e+01 : f32
    %71 = vector.broadcast %cst_36 : f32 to vector<8x1xf32>
    %72 = arith.divf %70, %71 : vector<8x1xf32>
    %73 = arith.mulf %67, %67 : vector<8x1xf32>
    %74 = arith.subf %72, %73 : vector<8x1xf32>
    %75 = vector.broadcast %67 : vector<8x1xf32> to vector<8x32xf32>
    %76 = arith.subf %61, %75 : vector<8x32xf32>
    %cst_37 = arith.constant 9.99999996E-13 : f32
    %77 = vector.broadcast %cst_37 : f32 to vector<8x1xf32>
    %78 = arith.addf %74, %77 : vector<8x1xf32>
    %79 = math.rsqrt %78 : vector<8x1xf32>
    %80 = vector.broadcast %79 : vector<8x1xf32> to vector<8x32xf32>
    %81 = arith.mulf %76, %80 : vector<8x32xf32>
    %82 = vector.broadcast %62 : vector<1x32xf32> to vector<8x32xf32>
    %83 = arith.mulf %81, %82 : vector<8x32xf32>
    %84 = vector.broadcast %63 : vector<1x32xf32> to vector<8x32xf32>
    %85 = arith.addf %83, %84 : vector<8x32xf32>
    %86 = arith.truncf %85 : vector<8x32xf32> to vector<8x32xbf16>
    %cst_38 = arith.constant 0.000000e+00 : f32
    %87 = vector.broadcast %cst_38 : f32 to vector<8x32xf32>
    %c0_39 = arith.constant 0 : index
    %c0_40 = arith.constant 0 : index
    %88 = vector.load %arg13[%c0_39, %c0_40] : memref<32x128xbf16, #tpu.memory_space<vmem>>, vector<32x64xbf16>
    %cst_41 = arith.constant dense<0.000000e+00> : vector<8x64xf32>
    %89 = tpu.matmul %86, %88, %cst_41 {dimension_numbers = #tpu.dot_dimension_numbers<[1], [0], [0], [1], [0, 0, 1, 1], [], []>} : vector<8x32xbf16>, vector<32x64xbf16>, vector<8x64xf32> -> vector<8x64xf32>
    %c0_42 = arith.constant 0 : index
    %c64 = arith.constant 64 : index
    %90 = vector.load %arg13[%c0_42, %c64] : memref<32x128xbf16, #tpu.memory_space<vmem>>, vector<32x64xbf16>
    %cst_43 = arith.constant dense<0.000000e+00> : vector<8x64xf32>
    %91 = tpu.matmul %86, %90, %cst_43 {dimension_numbers = #tpu.dot_dimension_numbers<[1], [0], [0], [1], [0, 0, 1, 1], [], []>} : vector<8x32xbf16>, vector<32x64xbf16>, vector<8x64xf32> -> vector<8x64xf32>
    %92 = arith.mulf %89, %89 : vector<8x64xf32>
    %93 = arith.mulf %89, %92 : vector<8x64xf32>
    %cst_44 = arith.constant 4.471500e-02 : f32
    %94 = vector.broadcast %cst_44 : f32 to vector<8x64xf32>
    %95 = arith.mulf %94, %93 : vector<8x64xf32>
    %96 = arith.addf %89, %95 : vector<8x64xf32>
    %cst_45 = arith.constant 0.797884583 : f32
    %97 = vector.broadcast %cst_45 : f32 to vector<8x64xf32>
    %98 = arith.mulf %97, %96 : vector<8x64xf32>
    %99 = math.tanh %98 : vector<8x64xf32>
    %cst_46 = arith.constant 1.000000e+00 : f32
    %100 = vector.broadcast %cst_46 : f32 to vector<8x64xf32>
    %101 = arith.addf %100, %99 : vector<8x64xf32>
    %cst_47 = arith.constant 5.000000e-01 : f32
    %102 = vector.broadcast %cst_47 : f32 to vector<8x64xf32>
    %103 = arith.mulf %102, %101 : vector<8x64xf32>
    %104 = arith.mulf %89, %103 : vector<8x64xf32>
    %105 = arith.mulf %104, %91 : vector<8x64xf32>
    %106 = arith.truncf %105 : vector<8x64xf32> to vector<8x64xbf16>
    %c0_48 = arith.constant 0 : index
    %c0_49 = arith.constant 0 : index
    %107 = vector.load %arg14[%c0_48, %c0_49] : memref<64x32xbf16, #tpu.memory_space<vmem>>, vector<64x32xbf16>
    %cst_50 = arith.constant dense<0.000000e+00> : vector<8x32xf32>
    %108 = tpu.matmul %106, %107, %cst_50 {dimension_numbers = #tpu.dot_dimension_numbers<[1], [0], [0], [1], [0, 0, 1, 1], [], []>} : vector<8x64xbf16>, vector<64x32xbf16>, vector<8x32xf32> -> vector<8x32xf32>
    %109 = arith.addf %87, %108 : vector<8x32xf32>
    %c0_51 = arith.constant 0 : index
    %c0_52 = arith.constant 0 : index
    %110 = vector.load %arg15[%c0_51, %c0_52] : memref<1x32xf32, #tpu.memory_space<vmem>>, vector<1x32xf32>
    %111 = vector.broadcast %110 : vector<1x32xf32> to vector<8x32xf32>
    %112 = arith.addf %109, %111 : vector<8x32xf32>
    %113 = arith.addf %112, %85 : vector<8x32xf32>
    %c0_53 = arith.constant 0 : index
    %c0_54 = arith.constant 0 : index
    %114 = vector.load %arg16[%c0_53, %c0_54] : memref<1x32xf32, #tpu.memory_space<vmem>>, vector<1x32xf32>
    %c0_55 = arith.constant 0 : index
    %c0_56 = arith.constant 0 : index
    %115 = vector.load %arg17[%c0_55, %c0_56] : memref<1x32xf32, #tpu.memory_space<vmem>>, vector<1x32xf32>
    %cst_57 = arith.constant dense<0.000000e+00> : vector<8xf32>
    %116 = vector.multi_reduction <add>, %113, %cst_57 [1] : vector<8x32xf32> to vector<8xf32>
    %117 = vector.shape_cast %116 : vector<8xf32> to vector<8x1xf32>
    %cst_58 = arith.constant 3.200000e+01 : f32
    %118 = vector.broadcast %cst_58 : f32 to vector<8x1xf32>
    %119 = arith.divf %117, %118 : vector<8x1xf32>
    %120 = arith.mulf %113, %113 : vector<8x32xf32>
    %cst_59 = arith.constant dense<0.000000e+00> : vector<8xf32>
    %121 = vector.multi_reduction <add>, %120, %cst_59 [1] : vector<8x32xf32> to vector<8xf32>
    %122 = vector.shape_cast %121 : vector<8xf32> to vector<8x1xf32>
    %cst_60 = arith.constant 3.200000e+01 : f32
    %123 = vector.broadcast %cst_60 : f32 to vector<8x1xf32>
    %124 = arith.divf %122, %123 : vector<8x1xf32>
    %125 = arith.mulf %119, %119 : vector<8x1xf32>
    %126 = arith.subf %124, %125 : vector<8x1xf32>
    %127 = vector.broadcast %119 : vector<8x1xf32> to vector<8x32xf32>
    %128 = arith.subf %113, %127 : vector<8x32xf32>
    %cst_61 = arith.constant 9.99999996E-13 : f32
    %129 = vector.broadcast %cst_61 : f32 to vector<8x1xf32>
    %130 = arith.addf %126, %129 : vector<8x1xf32>
    %131 = math.rsqrt %130 : vector<8x1xf32>
    %132 = vector.broadcast %131 : vector<8x1xf32> to vector<8x32xf32>
    %133 = arith.mulf %128, %132 : vector<8x32xf32>
    %134 = vector.broadcast %114 : vector<1x32xf32> to vector<8x32xf32>
    %135 = arith.mulf %133, %134 : vector<8x32xf32>
    %136 = vector.broadcast %115 : vector<1x32xf32> to vector<8x32xf32>
    %137 = arith.addf %135, %136 : vector<8x32xf32>
    %138 = arith.truncf %137 : vector<8x32xf32> to vector<8x32xbf16>
    %c0_62 = arith.constant 0 : index
    %c0_63 = arith.constant 0 : index
    %c0_64 = arith.constant 0 : index
    %139 = vector.load %arg18[%c0_62, %c0_63, %c0_64] : memref<1x8x32xbf16, #tpu.memory_space<vmem>>, vector<1x8x32xbf16>
    %140 = vector.shape_cast %139 : vector<1x8x32xbf16> to vector<8x32xbf16>
    %141 = vector.shape_cast %138 : vector<8x32xbf16> to vector<1x8x32xbf16>
    tpu.vector_store %arg18[%c0_62, %c0_63, %c0_64], %141 {strides = array<i32>} : memref<1x8x32xbf16, #tpu.memory_space<vmem>>, vector<1x8x32xbf16>,
    return
  }
  func.func @transform_0(%arg0: i32, %arg1: i32) -> (i32, i32, i32) {
    %c0_i32 = arith.constant 0 : i32
    %c0_i32_0 = arith.constant 0 : i32
    %c0_i32_1 = arith.constant 0 : i32
    return %arg0, %c0_i32, %c0_i32_0 : i32, i32, i32
  }
  func.func @transform_1(%arg0: i32, %arg1: i32) -> (i32, i32, i32) {
    %c0_i32 = arith.constant 0 : i32
    %c0_i32_0 = arith.constant 0 : i32
    %c0_i32_1 = arith.constant 0 : i32
    %c0_i32_2 = arith.constant 0 : i32
    return %c0_i32, %c0_i32_0, %c0_i32_1 : i32, i32, i32
  }
  func.func @transform_2(%arg0: i32, %arg1: i32) -> (i32, i32, i32) {
    %c0_i32 = arith.constant 0 : i32
    %c0_i32_0 = arith.constant 0 : i32
    %c0_i32_1 = arith.constant 0 : i32
    return %arg0, %c0_i32, %c0_i32_0 : i32, i32, i32
  }
  func.func @transform_3(%arg0: i32, %arg1: i32) -> (i32, i32) {
    %c0_i32 = arith.constant 0 : i32
    %c0_i32_0 = arith.constant 0 : i32
    %c0_i32_1 = arith.constant 0 : i32
    return %c0_i32, %c0_i32_0 : i32, i32
  }
  func.func @transform_4(%arg0: i32, %arg1: i32) -> (i32, i32) {
    %c0_i32 = arith.constant 0 : i32
    %c0_i32_0 = arith.constant 0 : i32
    %c0_i32_1 = arith.constant 0 : i32
    return %c0_i32, %c0_i32_0 : i32, i32
  }
  func.func @transform_5(%arg0: i32, %arg1: i32) -> (i32, i32) {
    %c0_i32 = arith.constant 0 : i32
    %c0_i32_0 = arith.constant 0 : i32
    %c0_i32_1 = arith.constant 0 : i32
    return %c0_i32, %c0_i32_0 : i32, i32
  }
  func.func @transform_6(%arg0: i32, %arg1: i32) -> (i32, i32) {
    %c0_i32 = arith.constant 0 : i32
    %c0_i32_0 = arith.constant 0 : i32
    %c0_i32_1 = arith.constant 0 : i32
    return %c0_i32, %c0_i32_0 : i32, i32
  }
  func.func @transform_7(%arg0: i32, %arg1: i32) -> (i32, i32) {
    %c0_i32 = arith.constant 0 : i32
    %c0_i32_0 = arith.constant 0 : i32
    %c0_i32_1 = arith.constant 0 : i32
    return %c0_i32, %c0_i32_0 : i32, i32
  }
  func.func @transform_8(%arg0: i32, %arg1: i32) -> (i32, i32) {
    %c0_i32 = arith.constant 0 : i32
    %c0_i32_0 = arith.constant 0 : i32
    %c0_i32_1 = arith.constant 0 : i32
    return %c0_i32, %c0_i32_0 : i32, i32
  }
  func.func @transform_9(%arg0: i32, %arg1: i32) -> (i32, i32) {
    %c0_i32 = arith.constant 0 : i32
    %c0_i32_0 = arith.constant 0 : i32
    %c0_i32_1 = arith.constant 0 : i32
    return %c0_i32, %c0_i32_0 : i32, i32
  }
  func.func @transform_10(%arg0: i32, %arg1: i32) -> (i32, i32) {
    %c0_i32 = arith.constant 0 : i32
    %c0_i32_0 = arith.constant 0 : i32
    %c0_i32_1 = arith.constant 0 : i32
    return %c0_i32, %c0_i32_0 : i32, i32
  }
  func.func @transform_11(%arg0: i32, %arg1: i32) -> (i32, i32) {
    %c0_i32 = arith.constant 0 : i32
    %c0_i32_0 = arith.constant 0 : i32
    %c0_i32_1 = arith.constant 0 : i32
    return %c0_i32, %c0_i32_0 : i32, i32
  }
  func.func @transform_12(%arg0: i32, %arg1: i32) -> (i32, i32) {
    %c0_i32 = arith.constant 0 : i32
    %c0_i32_0 = arith.constant 0 : i32
    %c0_i32_1 = arith.constant 0 : i32
    return %c0_i32, %c0_i32_0 : i32, i32
  }
  func.func @transform_13(%arg0: i32, %arg1: i32) -> (i32, i32) {
    %c0_i32 = arith.constant 0 : i32
    %c0_i32_0 = arith.constant 0 : i32
    %c0_i32_1 = arith.constant 0 : i32
    return %c0_i32, %c0_i32_0 : i32, i32
  }
  func.func @transform_14(%arg0: i32, %arg1: i32) -> (i32, i32) {
    %c0_i32 = arith.constant 0 : i32
    %c0_i32_0 = arith.constant 0 : i32
    %c0_i32_1 = arith.constant 0 : i32
    return %c0_i32, %c0_i32_0 : i32, i32
  }
  func.func @transform_15(%arg0: i32, %arg1: i32) -> (i32, i32) {
    %c0_i32 = arith.constant 0 : i32
    %c0_i32_0 = arith.constant 0 : i32
    %c0_i32_1 = arith.constant 0 : i32
    return %c0_i32, %c0_i32_0 : i32, i32
  }
  func.func @transform_16(%arg0: i32, %arg1: i32) -> (i32, i32, i32) {
    %c0_i32 = arith.constant 0 : i32
    %c0_i32_0 = arith.constant 0 : i32
    return %arg0, %arg1, %c0_i32 : i32, i32, i32
  }
}

</mosaic_0001>

<bundles_post_ra>
// kernel: tpu_custom_call.1
= control target key start
LH: loop header
LB: loop body
LE: loop exit
PB: predicated region body
PF: predicated region fallthrough
CT: control target
= control target key end

     0   :  { %s3150_s0 = inlined_call_operand.hbm [shape: f32[2,1,8], index: 0, kind: input, shape index: {}]   ;;  %s3151_s1 = inlined_call_operand.vmem [shape: f32[4,1,1], index: 1, kind: input, shape index: {}]   ;;  %s3152_s2 = inlined_call_operand.hbm [shape: bf16[2,8,32], index: 2, kind: input, shape index: {}]   ;;  %s3153_s3 = inlined_call_operand.vmem [shape: bf16[32,32], index: 3, kind: input, shape index: {}]   ;;  %s3154_s4 = inlined_call_operand.hbm [shape: f32[1,32], index: 4, kind: input, shape index: {}]   ;;  %s3155_s5 = inlined_call_operand.vmem [shape: bf16[32,64], index: 5, kind: input, shape index: {}]   ;;  %s3156_s6 = inlined_call_operand.hbm [shape: f32[1,64], index: 6, kind: input, shape index: {}]   ;;  %s3157_s7 = inlined_call_operand.vmem [shape: bf16[32,32], index: 7, kind: input, shape index: {}]   ;;  %s3158_s8 = inlined_call_operand.hbm [shape: f32[1,32], index: 8, kind: input, shape index: {}]   ;;  %s3159_s9 = inlined_call_operand.hbm [shape: f32[1,32], index: 9, kind: input, shape index: {}]   ;;  %s3160_s10 = inlined_call_operand.hbm [shape: f32[1,32], index: 10, kind: input, shape index: {}]   ;;  %s3161_s11 = inlined_call_operand.hbm [shape: bf16[32,128], index: 11, kind: input, shape index: {}]   ;;  %s3162_s12 = inlined_call_operand.vmem [shape: bf16[64,32], index: 12, kind: input, shape index: {}]   ;;  %s3163_s13 = inlined_call_operand.vmem [shape: f32[1,32], index: 13, kind: input, shape index: {}]   ;;  %s3164_s14 = inlined_call_operand.vmem [shape: f32[1,32], index: 14, kind: input, shape index: {}]   ;;  %s3165_s15 = inlined_call_operand.vmem [shape: f32[1,32], index: 15, kind: input, shape index: {}]   ;;  %s3166_s16 = inlined_call_operand.hbm [shape: bf16[2,8,32], index: 16, kind: output, shape index: {}]  }
   0x1   :  { %3172 = sst [smem:[#allocation32_spill]] %s3150_s0 }
   0x2   :  { %3173 = sst [smem:[#allocation33_spill]] %s3154_s4 }
   0x3   :  { %3174 = sst [smem:[#allocation34_spill]] %s3156_s6 }
   0x4   :  { %3175 = sst [smem:[#allocation35_spill]] %s3158_s8 }
   0x5   :  { %3176 = sst [smem:[#allocation36_spill]] %s3159_s9 }
   0x6   :  { %3177 = sst [smem:[#allocation37_spill]] %s3160_s10 }
   0x7   :  { %3178 = sst [smem:[#allocation38_spill]] %s3161_s11 }
   0x8   :  { %3179 = sst [smem:[#allocation39_spill]] %s3163_s13 }
   0x9   :  { %3180 = sst [smem:[#allocation40_spill]] %s3164_s14 }
   0xa   :  { %3181 = sst [smem:[#allocation41_spill]] %s3165_s15 }
   0xb   :  { %3182 = sst [smem:[#allocation42_spill]] %s3166_s16 }
   0xc   :  { %21 = vsyncpa [#allocation5], 0 }
   0xd   :  { %23 = vsyncpa [#allocation5 + $0x1], 0 }
   0xe   :  { %24 = vsyncpa [#allocation8], 0 }
   0xf   :  { %26 = vsyncpa [#allocation8 + $0x1], 0 }
  0x10   :  { %27 = vsyncpa [#allocation11], 0 }
  0x11   :  { %28 = vsyncpa [#allocation14], 0 }
  0x12   :  { %29 = vsyncpa [#allocation17], 0 }
  0x13   :  { %30 = vsyncpa [#allocation6], 0 }
  0x14   :  { %32 = vsyncpa [#allocation6 + $0x1], 0  ;;  %s2676_s21 = smov 0   ;;  %s2678_s22 = smov 0  }
  0x15   :  { %s2680_s23 = smov 0   ;;  %s2682_s24 = smov 0  }
  0x16   :  { %s2684_s25 = smov 0   ;;  %s2686_s26 = smov 0  }
  0x17 LB: > { %3183 = sst [smem:[#allocation26_spill]] %s2549_s21  ;;  %s2707_s27 = sadd.s32 4294967295, %s2569_s26   ;;  %s2569_s26 = sphi %s2686_s26, %s38_s26   ;;  %s2565_s25 = sphi %s2684_s25, %s3215_s25   ;;  %s2561_s24 = sphi %s2682_s24, %s3214_s24   ;;  %s2557_s23 = sphi %s2680_s23, %s3210_s23   ;;  %s2553_s22 = sphi %s2678_s22, %s3213_s22   ;;  %s2549_s21 = sphi %s2676_s21, %s3212_s21  }
  0x18   : > { %3184 = sst [smem:[#allocation27_spill]] %s2557_s23  ;;  %p1948_p0 = scmp.ge.s32.totalorder %s2569_s26, 1 }
  0x19   : > { %3185 = sst [smem:[#allocation28_spill]] %s2561_s24  ;;  %p71_p1 = scmp.eq.s32.totalorder %s2707_s27, 0 }
  0x1a   : > { %p429_p2 = scmp.lt.s32.totalorder %s2569_s26, 3  ;;  %s3186_s4 = sld [smem:[#allocation33_spill]] }
  0x1b   : > { %p1955_p4 = scmp.ge.s32.totalorder %s2569_s26, 2  ;;  %s2571_s17 = smov [#allocation9]  }
  0x1c   : > { %p2715_p3 = pnand %p1948_p0, %p429_p2  ;;  %s449_s18 = sshll.u32 %s2571_s17, 4  ;;  %s450_s18 = int_to_ptr.vmem [resolvable:$true] %s449_s18 }
  0x1d   : > { %s3188_s6 = sld [smem:[#allocation34_spill]]  ;;  %s2572_s14 = smov [#allocation10]  }
  0x1e   : > { %p2075_p5 = pneg %p2715_p3  ;;  %s3190_s9 = sld [smem:[#allocation36_spill]] }
  0x1f   : > { %s464_s17 = sshll.u32 %s2572_s14, 4  ;;  %s3191_s8 = sld [smem:[#allocation35_spill]]  ;;  %s465_s17 = int_to_ptr.vmem [resolvable:$true] %s464_s17 }
  0x20   : > { %s447_s30 = sshll.u32 %s3186_s4, 4  ;;  %p2727_p6 = pnand %p2075_p5, %p71_p1  ;;  %s448_s30 = int_to_ptr.hbm [resolvable:$true] %s447_s30 }
  0x21   : > { %s2573_s24 = smov [#allocation13]   ;;  %s2574_s4 = smov [#allocation12]  }
  0x22   : > { %2078 = dma.hbm_to_vmem [thread:$0]  (!%p2727_p6), %s448_s30, 16, %s450_s18, [#allocation8]  }
  0x23   : > { %s462_s16 = sshll.u32 %s3188_s6, 4  ;;  %s491_s13 = sshll.u32 %s2573_s24, 4  ;;  %s463_s16 = int_to_ptr.hbm [resolvable:$true] %s462_s16  ;;  %s492_s13 = int_to_ptr.vmem [resolvable:$true] %s491_s13 }
  0x24   : > { %s489_s15 = sshll.u32 %s3190_s9, 4  ;;  %s479_s14 = sshll.u32 %s2574_s4, 4  ;;  %s490_s15 = int_to_ptr.hbm [resolvable:$true] %s489_s15  ;;  %s480_s14 = int_to_ptr.vmem [resolvable:$true] %s479_s14 }
  0x25   : > { %2081 = dma.hbm_to_vmem [thread:$0]  (!%p2727_p6), %s463_s16, 16, %s465_s17, [#allocation11]  }
  0x26   : > { %s477_s6 = sshll.u32 %s3191_s8, 4  ;;  %s3192_s10 = sld [smem:[#allocation37_spill]]  ;;  %s478_s6 = int_to_ptr.hbm [resolvable:$true] %s477_s6 }
  0x27   : > { %2087 = dma.hbm_to_vmem [thread:$0]  (!%p2727_p6), %s490_s15, 16, %s492_s13, [#allocation14]  }
  0x28   : > { %2084 = dma.hbm_to_vmem [thread:$0]  (!%p2727_p6), %s478_s6, 16, %s480_s14, [#allocation11]  }
  0x29   : > { %s3193_s11 = sld [smem:[#allocation38_spill]]  ;;  %s2575_s13 = smov [#allocation15]  }
  0x2a   : > { %s503_s15 = sshll.u32 %s2575_s13, 4  ;;  %s2576_s9 = smov [#allocation16]   ;;  %s504_s15 = int_to_ptr.vmem [resolvable:$true] %s503_s15 }
  0x2b   : > { %s514_s6 = sshll.u32 %s2576_s9, 4  ;;  %s2577_s17 = smov 64   ;;  %s515_s6 = int_to_ptr.vmem [resolvable:$true] %s514_s6 }
  0x2c   : > { %s501_s30 = sshll.u32 %s3192_s10, 4  ;;  %s2578_s19 = smov 4   ;;  %s502_s30 = int_to_ptr.hbm [resolvable:$true] %s501_s30 }
  0x2d   : > { %2090 = dma.hbm_to_vmem [thread:$0]  (!%p2727_p6), %s502_s30, 16, %s504_s15, [#allocation14]  }
  0x2e   : > { %s1947_s20 = sadd.s32 4294967294, %s2569_s26   ;;  %s50_s4 = sadd.s32 1, %s2565_s25 }
  0x2f   : > { %s512_s24 = sshll.u32 %s3193_s11, 4  ;;  %p52_p7 = scmp.ge.s32.totalorder %s50_s4, 2  ;;  %s513_s24 = int_to_ptr.hbm [resolvable:$true] %s512_s24 }
  0x30   : > { %2093 = dma.hbm_to_vmem [thread:$0]  (!%p2727_p6), %s513_s24, 256, %s515_s6, [#allocation17], %s2577_s17, %s2577_s17, %s2578_s19  }
  0x31   : > { %s57_s14 = sadd.s32 1, %s2557_s23  ;;  %p64_p8 = scmp.ne.s32.totalorder %s2557_s23, %s2553_s22 }
  0x32   : > { %p65_p9 = scmp.eq.s32.totalorder %s2569_s26, 0  ;;  %s3217_s4 = smov (%p52_p7, %s50_s4), 0 }
  0x33   : > { %3194 = sst [smem:[#allocation29_spill]] %s3217_s4  ;;  %p70_p11 = scmp.ne.s32.totalorder %s2553_s22, %s2549_s21 }
  0x34   : > { %p2763_p10 = por %p65_p9, %p64_p8  ;;  %s54_s28 = ssub.s32 %s2565_s25, %s3217_s4 }
  0x35   : > { %p416_p12 = scmp.eq.s32.totalorder %s2707_s27, 1  ;;  %p55_p13 = scmp.eq.s32.totalorder %s54_s28, 0 }
  0x36   : > { %p2774_p0 = por %p71_p1, %p70_p11  ;;  %p422_p5 = scmp.eq.s32.totalorder %s1947_s20, 1 }
  0x37   : > { %p2778_p2 = por %p416_p12, %p64_p8  ;;  %p2111_p7 = scmp.lt.s32.totalorder %s2569_s26, 2 }
  0x38   : > { %s2783_s18 = scalar_select %p55_p13, %s2557_s23, %s57_s14  }
  0x39   : > { %p2785_p6 = por %p422_p5, %p70_p11  ;;  %s540_s13 = sand.u32 1, %s2557_s23  }
  0x3a   : > { %3198 = sst [smem:[#allocation30_spill]] %s2783_s18  ;;  %s543_s28 = scalar_lea.vmem [#allocation4], %s540_s13 }
  0x3b   : > { %s3199_s24 = scalar_select %p2785_p6, 1, 0 }
  0x3c   : > { %s3201_s6 = sld [smem:[#allocation32_spill]]  ;;  %s550_s8 = sshll.u32 %s543_s28, 4  ;;  %s551_s8 = int_to_ptr.vmem [resolvable:$true] %s550_s8 }
  0x3d   : > { %3200 = sst [smem:[#allocation31_spill]] %s3199_s24  ;;  %p2095_p8 = pnand %p2111_p7, %p2763_p10 }
  0x3e   : > { %s557_s20 = sand.u32 1, %s2569_s26   ;;  %s1956_s14 = sshll.u32 %s540_s13, 2 }
  0x3f   : > { %s541_s10 = scalar_lea.sflag [#allocation5], %s540_s13  ;;  %s1957_s11 = sshll.u32 %s2565_s25, 2 }
  0x40   : > { %s561_s4 = scalar_lea.vmem [#allocation7], %s1956_s14  ;;  %s565_s21 = scalar_lea.hbm %s3152_s2, %s1957_s11 }
  0x41   : > { %s569_s18 = sshll.u32 %s561_s4, 4  ;;  %s567_s15 = sshll.u32 %s565_s21, 4  ;;  %s570_s18 = int_to_ptr.vmem [resolvable:$true] %s569_s18  ;;  %s568_s15 = int_to_ptr.hbm [resolvable:$true] %s567_s15 }
  0x42   : > { %s546_s17 = scalar_lea.hbm %s3201_s6, %s2565_s25  ;;  %s558_s9 = scalar_lea.sflag [#allocation8], %s557_s20 }
  0x43   : > { %s548_s19 = sshll.u32 %s546_s17, 4  ;;  %578 = sbr.rel (%p2715_p3) target bundleno = 1795 (0x703), region = 84  ;;  %s549_s19 = int_to_ptr.hbm [resolvable:$true] %s548_s19 }
  0x44   : > { %2097 = dma.hbm_to_vmem [thread:$0]  (!%p2095_p8), %s549_s19, 16, %s551_s8, %s541_s10  }
  0x45   : > { %2100 = dma.hbm_to_vmem [thread:$0]  (!%p2095_p8), %s568_s15, 64, %s570_s18, %s558_s9  }
  0x46   : > { %s2805_s29 = sand.u32 (!%p2715_p3), 1, %s2553_s22  }
  0x47   : > { %s581_s8 = scalar_lea.sflag (!%p2715_p3), [#allocation5], %s2805_s29  ;;  %s583_s10 = scalar_lea.vmem (!%p2715_p3), [#allocation4], %s2805_s29 }
  0x48   : > { %2520 = dma.done.wait (%p2774_p0), %s581_s8, 16  }
  0x49   : > { %2522 = vsyncadd (%p2774_p0), %s581_s8, 4294967280  ;;  %s589_s11 = sand.u32 1, %s2707_s27   ;;  %s1959_s21 = sshll.u32 %s2805_s29, 2 }
  0x4a   : > { %s590_s23 = scalar_lea.sflag [#allocation8], %s589_s11  ;;  %s593_s0 = scalar_lea.vmem [#allocation7], %s1959_s21 }
  0x4b   : > { %2524 = dma.done.wait (%p2774_p0), %s590_s23, 64  }
  0x4c   : > { %2526 = vsyncadd (%p2774_p0), %s590_s23, 4294967232 }
  0x4d   : > { %2528 = dma.done.wait (%p71_p1), [#allocation8], 16  }
  0x4e   : > { %2530 = vsyncadd (%p71_p1), [#allocation8], 4294967280 }
  0x4f   : > { %2532 = dma.done.wait (%p71_p1), [#allocation11], 32  }
  0x50   : > { %2534 = vsyncadd (%p71_p1), [#allocation11], 4294967264 }
  0x51   : > { %2536 = dma.done.wait (%p71_p1), [#allocation14], 32  }
  0x52   : > { %2538 = vsyncadd (%p71_p1), [#allocation14], 4294967264 }
  0x53   : > { %2540 = dma.done.wait (%p71_p1), [#allocation17], 256  }
  0x54   : > { %2542 = vsyncadd (%p71_p1), [#allocation17], 4294967040  ;;  %v2034_v0 = vld [vmem:[%s3155_s5 + $0x8] sm:$0xff]  ;;  %v2033_v1 = vld [vmem:[%s3155_s5] sm:$0xff]  ;;  %vm703_vm0 = vcmask 261120   ;;  %v2579_v6 = vmov 0  }
  0x55   : > { %v2036_v2 = vld [vmem:[%s3153_s3 + $0x8] sm:$0xff]  ;;  %713 = vmatpush.bf16.msra.mxu0 %v2034_v0  ;;  %v2035_v3 = vld [vmem:[%s3153_s3] sm:$0xff]  ;;  %2187 = vset.pattern.permute.xlu0 %v2579_v6  ;;  %s2580_s27 = smov 104   ;;  %s2581_s28 = smov 120   ;;  %v2584_v24 = vmov 1983009808  }
  0x56   : > { %1018 = vmatpush.bf16.msra.mxu1 %v2036_v2  ;;  %v682_v4 = vld [vmem:[%s593_s0] sm:$0xf]  ;;  %2188 = vset.pattern.permute.xlu1 %v2579_v6  ;;  %v2190_v7 = vld [vmem:[#allocation10] ss:$0 sm:$0xff]  ;;  %v2191_v8 = vld [vmem:[#allocation9] ss:$0 sm:$0xff]  ;;  %v742_v25 = vunpack.c.l.s4 %v2584_v24 }
  0x57   : > { %v2849_v5 = vld [vmem:[%s593_s0] sm:$0xf]  ;;  %2189 = vset.pattern.permute.xlu2 %v2579_v6  ;;  %s2582_s20 = smov 112   ;;  %v2192_v17 = vld [vmem:[%s3151_s1] ss:$0 sm:$0xff]  ;;  %s2583_s9 = smov 96  }
  0x58   : > { %v2867_v30 = vunpack.c.0.s8 %v742_v25  ;;  %v2585_v37 = vmov 1934713408   ;;  %vm751_vm1 = vcmask 1047556   ;;  %vm919_vm2 = vcmask 60416   ;;  %s2587_s18 = smov 16   ;;  %s2588_s24 = smov 8  }
  0x59   : > { %714 = vmatpush.bf16.msra.mxu0 %v2033_v1  ;;  %v756_v38 = vunpack.c.l.s4 %v2585_v37  ;;  %vm1200_vm3 = vcmask 64512   ;;  %vm1336_vm5 = vcmask 1043456   ;;  %vm1534_vm6 = vcmask 130048   ;;  %s3202_s30 = sld [smem:[#allocation39_spill]]  ;;  %s1773_s23 = scalar_lea.sflag [#allocation6], %s2805_s29 }
  0x5a   : > { %1019 = vmatpush.bf16.msra.mxu1 %v2035_v3  ;;  %vm1536_vm7 = vcmask 195584   ;;  %vm1717_vm12 = vcmask 523264   ;;  %s3204_s6 = sld [smem:[#allocation40_spill]] }
  0x5b   : > { %v2881_v52 = vunpack.c.0.s8 %v756_v38  ;;  %s3206_s14 = sld [smem:[#allocation42_spill]] }
  0x5c   : > { %1975 = vmatmul.msk.bf16.vlgmr.msra.gmra.mxu0 %vm703_vm0, %v682_v4 }
  0x5d   : > { %1984 = vmatmul.msk.bf16.vlgmr.msra.gmra.mxu1 %vm703_vm0, %v2849_v5 }
  0xd9   : > { %v716_v9 = vpop.f32.mrf.mxu0 }
  0xda   : > { %v717_v10 = vadd.f32 %v2190_v7, %v716_v9  ;;  %v1021_v11 = vpop.f32.mrf.mxu1 }
  0xdb   : > { %v1022_v12 = vadd.f32 %v2191_v8, %v1021_v11 }
  0xdc   : > { %v2854_v13 = vpack.c.bf16 %v717_v10, %v717_v10  ;;  %v2193_v10 = vld [vmem:[%s3151_s1 + $0x1] ss:$0 sm:$0xff] }
  0xdd   : > { %v1025_v14 = vpack.c.bf16 %v1022_v12, %v1022_v12 }
  0xde   : > { %726 = vrot.lane.b32.xlu1 %v2854_v13, %s2580_s27  ;;  %722 = vrot.lane.b32.xlu0 %v2854_v13, %s2581_s28  ;;  %v731_v28 = vshrl.u32 %v2854_v13, 16 }
  0xdf   : > { %1029 = vrot.lane.b32.xlu2 %v1025_v14, %s2582_s20  ;;  %v1036_v33 = vshrl.u32 %v1025_v14, 16 }
  0xe1   : > { %v718_v15 = vpop.f32.mrf.mxu0 }
  0xe2   : > { %v1023_v16 = vpop.f32.mrf.mxu1 }
  0xe6   : > { %1027 = vrot.lane.b32.xlu1 %v1025_v14, %s2581_s28  ;;  %724 = vrot.lane.b32.xlu0 %v2854_v13, %s2582_s20 }
  0xe7   : > { %1031 = vrot.lane.b32.xlu2 %v1025_v14, %s2580_s27  ;;  %s2589_s27 = smov 64  }
  0xee   : > { %1181 = vperm.xlu0 %2187, %v2192_v17   ;;  %1185 = vperm.xlu1 %2188, %v2193_v10  }
 0x139   : > { %v1030_v18 = vpop.permute.xlu2 %1029 }
 0x13a   : > { %v1042_v20 = vshrl.u32 %v1030_v18, 16 }
 0x141   : > { %v1032_v19 = vpop.permute.xlu2 %1031 }
 0x142   : > { %v1043_v23 = vshrl.u32 %v1032_v19, 16  ;;  %v1041_v32 = vpack.i.b16 %v1032_v19, %v1030_v18 }
 0x144   : > { %v1044_v29 = vpack.i.b16 %v1043_v23, %v1042_v20  ;;  %v1054_v46 = vperm.slane %v1041_v32, %v2867_v30 }
 0x146   : > { %v1081_v36 = vperm.slane %v1044_v29, %v2867_v30  ;;  %v1055_v58 = vrot.slane %v1054_v46, 4 }
 0x148   : > { %v1082_v53 = vrot.slane %v1081_v36, 4 }
 0x150   : > { %v2862_v21 = vpop.permute.xlu1 %726  ;;  %v723_v22 = vpop.permute.xlu0 %722 }
 0x151   : > { %795 = vrot.lane.b32.xlu0 %v723_v22, %s2583_s9  ;;  %v732_v26 = vshrl.u32 %v723_v22, 16  ;;  %v730_v27 = vpack.i.b16 %v723_v22, %v2854_v13  ;;  %v738_v34 = vshrl.u32 %v2862_v21, 16 }
 0x153   : > { %v733_v31 = vpack.i.b16 %v732_v26, %v731_v28  ;;  %v744_v35 = vperm.slane %v730_v27, %v2867_v30 }
 0x155   : > { %v771_v45 = vperm.slane %v733_v31, %v2867_v30  ;;  %v753_v51 = vrot.slane %v744_v35, 4 }
 0x157   : > { %v779_v57 = vrot.slane %v771_v45, 4 }
 0x158   : > { %v1028_v39 = vpop.permute.xlu1 %1027  ;;  %v2872_v40 = vpop.permute.xlu0 %724 }
 0x159   : > { %v1035_v41 = vpack.i.b16 %v1028_v39, %v1025_v14  ;;  %v1037_v42 = vshrl.u32 %v1028_v39, 16  ;;  %v736_v43 = vpack.i.b16 %v2862_v21, %v2872_v40  ;;  %v737_v44 = vshrl.u32 %v2872_v40, 16 }
 0x15b   : > { %v1038_v47 = vpack.i.b16 %v1037_v42, %v1036_v33  ;;  %v1049_v48 = vperm.slane %v1035_v41, %v2867_v30  ;;  %v739_v49 = vpack.i.b16 %v738_v34, %v737_v44  ;;  %v749_v50 = vperm.slane %v736_v43, %v2867_v30  ;;  %v2194_v41 = vld [vmem:[%s3151_s1 + $0x3] ss:$0 sm:$0xff]  ;;  %v2195_v44 = vld [vmem:[%s3151_s1 + $0x2] ss:$0 sm:$0xff] }
 0x15c   : > { %1193 = vperm.xlu1 %2188, %v2194_v41   ;;  %1189 = vperm.xlu2 %2189, %v2195_v44   ;;  %v1156_v44 = vlaneseq }
 0x15d   : > { %v1058_v54 = vrot.slane %v1049_v48, 4  ;;  %v1076_v55 = vperm.slane %v1038_v47, %v2867_v30  ;;  %v750_v56 = vrot.slane %v749_v50, 4  ;;  %v754_v59 = vsel %vm751_vm1, %v749_v50, %v753_v51 }
 0x15e   : > { %v776_v60 = vperm.slane %v739_v49, %v2867_v30  ;;  %v1057_v1 = vsel %vm751_vm1, %v1055_v58, %v1049_v48  ;;  %v762_v7 = vperm.slane %v754_v59, %v2881_v52 }
 0x15f   : > { %v1059_v61 = vsel %vm751_vm1, %v1054_v46, %v1058_v54  ;;  %v1083_v62 = vsel %vm751_vm1, %v1082_v53, %v1076_v55  ;;  %v1084_v63 = vrot.slane %v1076_v55, 4  ;;  %v752_v0 = vsel %vm751_vm1, %v750_v56, %v744_v35 }
 0x160   : > { %v1067_v2 = vperm.slane %v1059_v61, %v2881_v52  ;;  %v1089_v3 = vperm.slane %v1083_v62, %v2881_v52  ;;  %v758_v4 = vperm.slane %v752_v0, %v2881_v52  ;;  %v777_v8 = vrot.slane %v776_v60, 4 }
 0x161   : > { %v1085_v6 = vsel %vm751_vm1, %v1081_v36, %v1084_v63  ;;  %v780_v9 = vsel %vm751_vm1, %v776_v60, %v779_v57  ;;  %v765_v15 = vrot.slane %v762_v7, 4  ;;  %v1063_v18 = vperm.slane %v1057_v1, %v2881_v52 }
 0x162   : > { %v1070_v11 = vrot.slane %v1067_v2, 4  ;;  %v1093_v12 = vperm.slane %v1085_v6, %v2881_v52  ;;  %v763_v14 = vrot.slane %v758_v4, 4  ;;  %v778_v16 = vsel %vm751_vm1, %v777_v8, %v771_v45 }
 0x163   : > { %v788_v17 = vperm.slane %v780_v9, %v2881_v52  ;;  %v1094_v20 = vrot.slane %v1089_v3, 4  ;;  %v766_v23 = vsel %vm751_vm1, 0, %v765_v15  ;;  %v784_v24 = vperm.slane %v778_v16, %v2881_v52 }
 0x164   : > { %v1096_v19 = vrot.slane %v1093_v12, 4  ;;  %v764_v22 = vsel %vm751_vm1, 0, %v763_v14  ;;  %v1071_v25 = vsel %vm751_vm1, 0, %v1070_v11  ;;  %v870_v28 = vrot.slane %v766_v23, 4 }
 0x165   : > { %v791_v27 = vrot.slane %v788_v17, 4  ;;  %v789_v31 = vrot.slane %v784_v24, 4  ;;  %v865_v32 = vsel %vm751_vm1, %v765_v15, %v758_v4  ;;  %v1068_v33 = vrot.slane %v1063_v18, 4 }
 0x166   : > { %v1097_v26 = vsel %vm751_vm1, 0, %v1096_v19  ;;  %v871_v35 = vsel %vm751_vm1, %v870_v28, %v764_v22  ;;  %v1103_v36 = vrot.slane %v1071_v25, 4  ;;  %v1095_v42 = vsel %vm751_vm1, 0, %v1094_v20 }
 0x167   : > { %v1122_v29 = vrot.slane %v1097_v26, 4  ;;  %v792_v34 = vsel %vm751_vm1, 0, %v791_v27  ;;  %v790_v37 = vsel %vm751_vm1, 0, %v789_v31  ;;  %v875_v38 = vperm.slane %v871_v35, %v2867_v30 }
 0x168   : > { %v889_v39 = vrot.slane %v792_v34, 4  ;;  %v869_v43 = vperm.slane %v865_v32, %v2867_v30  ;;  %v884_v46 = vsel %vm751_vm1, %v791_v27, %v784_v24  ;;  %v1069_v49 = vsel %vm751_vm1, 0, %v1068_v33 }
 0x169   : > { %v876_v45 = vrot.slane %v875_v38, 4  ;;  %v1123_v48 = vsel %vm751_vm1, %v1122_v29, %v1095_v42  ;;  %v1104_v53 = vsel %vm751_vm1, %v1103_v36, %v1069_v49  ;;  %v888_v55 = vperm.slane %v884_v46, %v2867_v30 }
 0x16a   : > { %v890_v47 = vsel %vm751_vm1, %v889_v39, %v790_v37  ;;  %v1127_v57 = vperm.slane %v1123_v48, %v2867_v30  ;;  %v1108_v60 = vperm.slane %v1104_v53, %v2867_v30  ;;  %v1117_v62 = vsel %vm751_vm1, %v1096_v19, %v1089_v3 }
 0x16b   : > { %v894_v50 = vperm.slane %v890_v47, %v2867_v30  ;;  %v877_v51 = vsel %vm751_vm1, %v876_v45, %v869_v43  ;;  %v1098_v63 = vsel %vm751_vm1, %v1070_v11, %v1063_v18  ;;  %v1121_v9 = vperm.slane %v1117_v62, %v2867_v30 }
 0x16c   : > { %v881_v54 = vperm.slane %v877_v51, %v2881_v52  ;;  %v1128_v1 = vrot.slane %v1127_v57, 4  ;;  %v1109_v8 = vrot.slane %v1108_v60, 4  ;;  %v1102_v3 = vperm.slane %v1098_v63, %v2867_v30  ;;  %v2196_v57 = vld [vmem:[%s583_s10] ss:$0 sm:$0xff]  ;;  %s2586_s10 = smov 24  }
 0x16d   : > { %v895_v56 = vrot.slane %v894_v50, 4  ;;  %v1157_v45 = vshrl.u32 %v1156_v44, 7  ;;  %v1161_v46 = vand.u32 127, %v1156_v44  ;;  %v1186_v50 = vpop.permute.xlu1 %1185 }
 0x16e   : > { %v882_v58 = vrot.slane %v881_v54, 4  ;;  %v907_v0 = vshrl.u32 %v881_v54, 16  ;;  %v1129_v16 = vsel %vm751_vm1, %v1128_v1, %v1121_v9  ;;  %v1110_v18 = vsel %vm751_vm1, %v1109_v8, %v1102_v3 }
 0x16f   : > { %v896_v59 = vsel %vm751_vm1, %v895_v56, %v888_v55  ;;  %v1133_v19 = vperm.slane %v1129_v16, %v2881_v52  ;;  %v1114_v20 = vperm.slane %v1110_v18, %v2881_v52  ;;  %v1162_v47 = vsub.s32 %v1161_v46, %v1157_v45 }
 0x170   : > { %v900_v61 = vperm.slane %v896_v59, %v2881_v52  ;;  %v883_v2 = vsel %vm751_vm1, 0, %v882_v58 }
 0x171   : > { %v915_v11 = vshrl.u32 %v883_v2, 16  ;;  %v1134_v24 = vrot.slane %v1133_v19, 4  ;;  %v1115_v28 = vrot.slane %v1114_v20, 4  ;;  %v1140_v32 = vshrl.u32 %v1133_v19, 16 }
 0x172   : > { %v901_v4 = vrot.slane %v900_v61, 4  ;;  %v905_v6 = vpack.i.b16 %v900_v61, %v881_v54  ;;  %v908_v7 = vshrl.u32 %v900_v61, 16  ;;  %v1138_v35 = vpack.i.b16 %v1133_v19, %v1114_v20  ;;  %v1182_v61 = vpop.permute.xlu0 %1181 }
 0x173   : > { %v1135_v33 = vsel %vm751_vm1, 0, %v1134_v24  ;;  %v1139_v36 = vshrl.u32 %v1114_v20, 16  ;;  %v1116_v37 = vsel %vm751_vm1, 0, %v1115_v28  ;;  %v1164_v48 = vsub.s32 0, %v1162_v47 }
 0x174   : > { %v902_v10 = vsel %vm751_vm1, 0, %v901_v4  ;;  %v909_v12 = vpack.i.b16 %v908_v7, %v907_v0  ;;  %920 = vst.msk [vmem:[#allocation2] sm:$0xf] %vm919_vm2, %v905_v6  ;;  %v1146_v38 = vshrl.u32 %v1135_v33, 16  ;;  %v1144_v41 = vpack.i.b16 %v1135_v33, %v1116_v37 }
 0x175   : > { %v913_v14 = vpack.i.b16 %v902_v10, %v883_v2  ;;  %v916_v15 = vshrl.u32 %v902_v10, 16  ;;  %v1141_v39 = vpack.i.b16 %v1140_v32, %v1139_v36  ;;  %v1145_v42 = vshrl.u32 %v1116_v37, 16 }
 0x176   : > { %921 = vst.msk [vmem:[#allocation2 + $0x4] sm:$0xf] %vm919_vm2, %v909_v12  ;;  %vm1163_vm4 = vcmp.lt.s32.totalorder %v1162_v47, 0 }
 0x177   : > { %v917_v17 = vpack.i.b16 %v916_v15, %v915_v11  ;;  %922 = vst.msk [vmem:[#allocation2 + $0x8] sm:$0xf] %vm919_vm2, %v913_v14  ;;  %v1147_v43 = vpack.i.b16 %v1146_v38, %v1145_v42  ;;  %v1165_v49 = vsel %vm1163_vm4, %v1164_v48, %v1162_v47 }
 0x178   : > { %v1166_v51 = vcvt.s32.f32 %v1165_v49 }
 0x179   : > { %923 = vst.msk [vmem:[#allocation2 + $0xc] sm:$0xf] %vm919_vm2, %v917_v17 }
 0x17a   : > { %v1167_v54 = vsub.f32 0.0, %v1166_v51 }
 0x17b   : > { %v1148_v22 = vld [vmem:[#allocation2] sm:$0xf] }
 0x17c   : > { %v1205_v23 = vsel %vm1200_vm3, %v1148_v22, 0  ;;  %v1196_v63 = vmul.f32 %v1182_v61, %v1167_v54  ;;  %v1197_v4 = vmul.f32 %v1186_v50, %v1167_v54 }
 0x17d   : > { %1214 = vmatpush.bf16.xpose.msra.mxu2 %v1205_v23  ;;  %v1149_v25 = vld [vmem:[#allocation2 + $0x4] sm:$0xf] }
 0x17e   : > { %v1224_v26 = vsel %vm1200_vm3, %v1149_v25, 0  ;;  %v1150_v27 = vld [vmem:[#allocation2 + $0x8] sm:$0xf] }
 0x17f   : > { %1233 = vmatpush.bf16.xpose.msra.mxu3 %v1224_v26  ;;  %v1243_v29 = vsel %vm1200_vm3, %v1150_v27, 0 }
 0x180   : > { %1252 = vmatpush.bf16.xpose.msrb.mxu0 %v1243_v29  ;;  %v1151_v31 = vld [vmem:[#allocation2 + $0xc] sm:$0xf] }
 0x181   : > { %v1262_v34 = vsel %vm1200_vm3, %v1151_v31, 0 }
 0x182   : > { %1271 = vmatpush.bf16.xpose.msrb.mxu1 %v1262_v34 }
 0x184   : > { %1985 = vmatmul.msk.bf16.vlgmr.msra.gmra.mxu2 %vm1200_vm3, %v1138_v35 }
 0x186   : > { %1986 = vmatmul.msk.bf16.vlgmr.msra.gmra.mxu3 %vm1200_vm3, %v1141_v39 }
 0x187   : > { %1987 = vmatmul.msk.bf16.vlgmr.msrb.gmra.mxu0 %vm1200_vm3, %v1144_v41 }
 0x189   : > { %1988 = vmatmul.msk.bf16.vlgmr.msrb.gmra.mxu1 %vm1200_vm3, %v1147_v43 }
 0x1b6   : > { %v1190_v53 = vpop.permute.xlu2 %1189 }
 0x1b7   : > { %v1198_v55 = vmul.f32 %v1190_v53, %v1167_v54 }
 0x1c3   : > { %v796_v20 = vpop.permute.xlu0 %795 }
 0x1c4   : > { %v805_v37 = vshrl.u32 %v796_v20, 16 }
 0x1ce   : > { %v1194_v56 = vpop.permute.xlu1 %1193 }
 0x1cf   : > { %v1199_v59 = vmul.f32 %v1194_v56, %v1167_v54 }
 0x204   : > { %v1254_v58 = vpop.f32.mrf.mxu0 }
 0x205   : > { %v1255_v60 = vadd.f32 %v1254_v58, %v1198_v55 }
 0x206   : > { %v1273_v62 = vpop.f32.mrf.mxu1 }
 0x207   : > { %v1274_v0 = vadd.f32 %v1273_v62, %v1199_v59  ;;  %v1216_v1 = vpop.f32.mrf.mxu2  ;;  %v1283_v2 = vadd.f32 %v2196_v57, %v1255_v60 }
 0x208   : > { %v1217_v10 = vadd.f32 %v1216_v1, %v1196_v63 }
 0x209   : > { %v1235_v6 = vpop.f32.mrf.mxu3  ;;  %v1291_v7 = vsel %vm1200_vm3, %v1283_v2, -inf  ;;  %v1284_v8 = vadd.f32 %v2196_v57, %v1274_v0 }
 0x20a   : > { %v1236_v9 = vadd.f32 %v1235_v6, %v1197_v4  ;;  %1292 = vmax.xlane.f32.xlu1 %v1291_v7  ;;  %v1281_v17 = vadd.f32 %v2196_v57, %v1217_v10 }
 0x20b   : > { %v1294_v12 = vsel %vm1200_vm3, %v1284_v8, -inf }
 0x20c   : > { %1295 = vmax.xlane.f32.xlu2 %v1294_v12  ;;  %v1256_v3 = vpop.f32.mrf.mxu0  ;;  %v1282_v14 = vadd.f32 %v2196_v57, %v1236_v9  ;;  %v1285_v19 = vsel %vm1200_vm3, %v1281_v17, -inf }
 0x20e   : > { %v1275_v11 = vpop.f32.mrf.mxu1  ;;  %v1288_v15 = vsel %vm1200_vm3, %v1282_v14, -inf }
 0x20f   : > { %1289 = vmax.xlane.f32.xlu0 %v1288_v15  ;;  %v1218_v16 = vpop.f32.mrf.mxu2 }
 0x211   : > { %v1237_v18 = vpop.f32.mrf.mxu3 }
 0x214   : > { %1286 = vmax.xlane.f32.xlu2 %v1285_v19 }
 0x223   : > { %799 = vrot.lane.b32.xlu0 %v2862_v21, %s2583_s9  ;;  %797 = vrot.lane.b32.xlu1 %v2872_v40, %s2583_s9 }
 0x22c   : > { %793 = vrot.lane.b32.xlu2 %v2854_v13, %s2583_s9  ;;  %s676_s9 = scalar_lea.vmem [#allocation18], %s1959_s21  ;;  %s2487_s21 = scalar_lea.hbm %s3206_s14, 8 }
 0x22d   : > { %s1786_s8 = sshll.u32 %s676_s9, 4  ;;  %s1787_s8 = int_to_ptr.vmem [resolvable:$true] %s1786_s8 }
 0x27d   : > { %v1293_v22 = vpop.xlane.xlu1 %1292 }
 0x27e   : > { %v1299_v23 = vsub.f32 %v1283_v2, %v1293_v22 }
 0x27f   : > { %v1296_v24 = vpop.xlane.xlu2 %1295 }
 0x280   : > { %v1305_v25 = vmul.f32 1.442695, %v1299_v23  ;;  %v1300_v32 = vsub.f32 %v1284_v8, %v1296_v24 }
 0x282   : > { %2203 = vpow2.f32 %v1305_v25  ;;  %v1290_v26 = vpop.xlane.xlu0 %1289  ;;  %v1307_v34 = vmul.f32 1.442695, %v1300_v32 }
 0x283   : > { %v1298_v27 = vsub.f32 %v1282_v14, %v1290_v26 }
 0x285   : > { %v1303_v28 = vmul.f32 1.442695, %v1298_v27 }
 0x287   : > { %2205 = vpow2.f32 %v1303_v28  ;;  %v1287_v29 = vpop.xlane.xlu2 %1286 }
 0x288   : > { %v2970_v31 = vpop.eup %2203  ;;  %v1297_v21 = vsub.f32 %v1281_v17, %v1287_v29 }
 0x289   : > { %v1315_v40 = vsel %vm1200_vm3, %v2970_v31, 0.0 }
 0x28a   : > { %v1301_v33 = vmul.f32 1.442695, %v1297_v21  ;;  %1316 = vadd.xlane.f32.xlu0 %v1315_v40 }
 0x28c   : > { %2207 = vpow2.f32 %v1301_v33 }
 0x28d   : > { %v2974_v13 = vpop.eup %2205  ;;  %2209 = vpow2.f32 %v1307_v34 }
 0x28e   : > { %v1312_v35 = vsel %vm1200_vm3, %v2974_v13, 0.0 }
 0x28f   : > { %v794_v36 = vpop.permute.xlu2 %793  ;;  %1313 = vadd.xlane.f32.xlu1 %v1312_v35 }
 0x290   : > { %v803_v38 = vpack.i.b16 %v796_v20, %v794_v36  ;;  %v804_v39 = vshrl.u32 %v794_v36, 16 }
 0x292   : > { %v2978_v41 = vpop.eup %2207  ;;  %v806_v42 = vpack.i.b16 %v805_v37, %v804_v39  ;;  %v817_v44 = vperm.slane %v803_v38, %v2867_v30 }
 0x293   : > { %v1309_v43 = vsel %vm1200_vm3, %v2978_v41, 0.0  ;;  %v2984_v51 = vpop.eup %2209 }
 0x294   : > { %1310 = vadd.xlane.f32.xlu2 %v1309_v43  ;;  %v843_v47 = vperm.slane %v806_v42, %v2867_v30  ;;  %v825_v53 = vrot.slane %v817_v44, 4  ;;  %v1318_v61 = vsel %vm1200_vm3, %v2984_v51, 0.0 }
 0x295   : > { %v800_v45 = vpop.permute.xlu0 %799  ;;  %v798_v46 = vpop.permute.xlu1 %797 }
 0x296   : > { %v811_v48 = vshrl.u32 %v800_v45, 16  ;;  %v809_v49 = vpack.i.b16 %v800_v45, %v798_v46  ;;  %v810_v50 = vshrl.u32 %v798_v46, 16  ;;  %v851_v56 = vrot.slane %v843_v47, 4 }
 0x298   : > { %v812_v54 = vpack.i.b16 %v811_v48, %v810_v50  ;;  %v822_v55 = vperm.slane %v809_v49, %v2867_v30 }
 0x29a   : > { %v823_v57 = vrot.slane %v822_v55, 4  ;;  %v826_v58 = vsel %vm751_vm1, %v822_v55, %v825_v53  ;;  %v848_v59 = vperm.slane %v812_v54, %v2867_v30 }
 0x29b   : > { %v834_v60 = vperm.slane %v826_v58, %v2881_v52 }
 0x29c   : > { %v824_v62 = vsel %vm751_vm1, %v823_v57, %v817_v44  ;;  %v849_v63 = vrot.slane %v848_v59, 4  ;;  %v852_v0 = vsel %vm751_vm1, %v848_v59, %v851_v56  ;;  %1319 = vadd.xlane.f32.xlu2 %v1318_v61 }
 0x29d   : > { %v830_v1 = vperm.slane %v824_v62, %v2881_v52  ;;  %v837_v2 = vrot.slane %v834_v60, 4  ;;  %v860_v4 = vperm.slane %v852_v0, %v2881_v52 }
 0x29e   : > { %v850_v6 = vsel %vm751_vm1, %v849_v63, %v843_v47 }
 0x29f   : > { %v835_v7 = vrot.slane %v830_v1, 4  ;;  %v838_v8 = vsel %vm751_vm1, 0, %v837_v2  ;;  %v856_v9 = vperm.slane %v850_v6, %v2881_v52  ;;  %v863_v10 = vrot.slane %v860_v4, 4 }
 0x2a0   : > { %v929_v12 = vrot.slane %v838_v8, 4  ;;  %v924_v15 = vsel %vm751_vm1, %v837_v2, %v830_v1 }
 0x2a1   : > { %v836_v3 = vsel %vm751_vm1, 0, %v835_v7  ;;  %v861_v14 = vrot.slane %v856_v9, 4  ;;  %v864_v11 = vsel %vm751_vm1, 0, %v863_v10  ;;  %v943_v20 = vsel %vm751_vm1, %v863_v10, %v856_v9 }
 0x2a2   : > { %v930_v16 = vsel %vm751_vm1, %v929_v12, %v836_v3  ;;  %v948_v17 = vrot.slane %v864_v11, 4  ;;  %v928_v23 = vperm.slane %v924_v15, %v2867_v30  ;;  %v947_v27 = vperm.slane %v943_v20, %v2867_v30 }
 0x2a3   : > { %v862_v18 = vsel %vm751_vm1, 0, %v861_v14  ;;  %v934_v19 = vperm.slane %v930_v16, %v2867_v30 }
 0x2a4   : > { %v949_v22 = vsel %vm751_vm1, %v948_v17, %v862_v18 }
 0x2a5   : > { %v935_v24 = vrot.slane %v934_v19, 4  ;;  %v953_v25 = vperm.slane %v949_v22, %v2867_v30 }
 0x2a7   : > { %v936_v26 = vsel %vm751_vm1, %v935_v24, %v928_v23  ;;  %v954_v28 = vrot.slane %v953_v25, 4 }
 0x2a8   : > { %v940_v29 = vperm.slane %v936_v26, %v2881_v52 }
 0x2a9   : > { %v955_v21 = vsel %vm751_vm1, %v954_v28, %v947_v27 }
 0x2aa   : > { %v941_v40 = vrot.slane %v940_v29, 4  ;;  %v959_v32 = vperm.slane %v955_v21, %v2881_v52  ;;  %v966_v33 = vshrl.u32 %v940_v29, 16 }
 0x2ac   : > { %v942_v34 = vsel %vm751_vm1, 0, %v941_v40  ;;  %v960_v35 = vrot.slane %v959_v32, 4  ;;  %v964_v36 = vpack.i.b16 %v959_v32, %v940_v29  ;;  %v967_v37 = vshrl.u32 %v959_v32, 16 }
 0x2ad   : > { %v974_v43 = vshrl.u32 %v942_v34, 16 }
 0x2ae   : > { %v961_v38 = vsel %vm751_vm1, 0, %v960_v35  ;;  %v968_v39 = vpack.i.b16 %v967_v37, %v966_v33  ;;  %978 = vst.msk [vmem:[#allocation3] sm:$0xf] %vm919_vm2, %v964_v36 }
 0x2af   : > { %v972_v42 = vpack.i.b16 %v961_v38, %v942_v34  ;;  %v975_v44 = vshrl.u32 %v961_v38, 16 }
 0x2b0   : > { %979 = vst.msk [vmem:[#allocation3 + $0x4] sm:$0xf] %vm919_vm2, %v968_v39 }
 0x2b1   : > { %v976_v45 = vpack.i.b16 %v975_v44, %v974_v43  ;;  %980 = vst.msk [vmem:[#allocation3 + $0x8] sm:$0xf] %vm919_vm2, %v972_v42 }
 0x2b3   : > { %981 = vst.msk [vmem:[#allocation3 + $0xc] sm:$0xf] %vm919_vm2, %v976_v45 }
 0x2b5   : > { %v1152_v46 = vld [vmem:[#allocation3] sm:$0xf] }
 0x2b6   : > { %v1338_v47 = vsel %vm1336_vm5, %v1152_v46, 0 }
 0x2b7   : > { %1347 = vmatpush.bf16.msrb.mxu2 %v1338_v47  ;;  %v1153_v48 = vld [vmem:[#allocation3 + $0x4] sm:$0xf] }
 0x2b8   : > { %v1357_v49 = vsel %vm1336_vm5, %v1153_v48, 0  ;;  %v1154_v50 = vld [vmem:[#allocation3 + $0x8] sm:$0xf] }
 0x2b9   : > { %1366 = vmatpush.bf16.msrb.mxu3 %v1357_v49  ;;  %v1376_v53 = vsel %vm1336_vm5, %v1154_v50, 0 }
 0x2ba   : > { %1385 = vmatpush.bf16.msra.mxu0 %v1376_v53  ;;  %v1155_v54 = vld [vmem:[#allocation3 + $0xc] sm:$0xf] }
 0x2bb   : > { %v1395_v55 = vsel %vm1336_vm5, %v1155_v54, 0 }
 0x2bc   : > { %1404 = vmatpush.bf16.msra.mxu1 %v1395_v55 }
 0x2fd   : > { %v1317_v56 = vpop.xlane.xlu0 %1316 }
 0x2fe   : > { %2211 = vrcp.f32 %v1317_v56 }
 0x302   : > { %v1314_v57 = vpop.xlane.xlu1 %1313 }
 0x303   : > { %2213 = vrcp.f32 %v1314_v57 }
 0x304   : > { %v2212_v58 = vpop.eup %2211 }
 0x305   : > { %v1327_v59 = vmul.f32 %v2212_v58, %v2970_v31 }
 0x307   : > { %v1331_v60 = vpack.c.bf16 %v1327_v59, %v1327_v59  ;;  %v1311_v61 = vpop.xlane.xlu2 %1310 }
 0x308   : > { %2215 = vrcp.f32 %v1311_v61 }
 0x309   : > { %v2214_v62 = vpop.eup %2213  ;;  %1991 = vmatmul.msk.bf16.vlgmr.msra.gmra.mxu0 %vm1200_vm3, %v1331_v60 }
 0x30a   : > { %v1326_v63 = vmul.f32 %v2214_v62, %v2974_v13 }
 0x30c   : > { %v1330_v0 = vpack.c.bf16 %v1326_v63, %v1326_v63 }
 0x30e   : > { %v2216_v1 = vpop.eup %2215  ;;  %1990 = vmatmul.msk.bf16.vlgmr.msrb.gmra.mxu3 %vm1200_vm3, %v1330_v0 }
 0x30f   : > { %v1325_v2 = vmul.f32 %v2216_v1, %v2978_v41  ;;  %v1320_v4 = vpop.xlane.xlu2 %1319 }
 0x310   : > { %2217 = vrcp.f32 %v1320_v4 }
 0x311   : > { %v1329_v6 = vpack.c.bf16 %v1325_v2, %v1325_v2 }
 0x313   : > { %1989 = vmatmul.msk.bf16.vlgmr.msrb.gmra.mxu2 %vm1200_vm3, %v1329_v6 }
 0x316   : > { %v2218_v31 = vpop.eup %2217 }
 0x317   : > { %v1328_v7 = vmul.f32 %v2218_v31, %v2984_v51 }
 0x319   : > { %v1332_v8 = vpack.c.bf16 %v1328_v7, %v1328_v7 }
 0x31b   : > { %1992 = vmatmul.msk.bf16.vlgmr.msra.gmra.mxu1 %vm1200_vm3, %v1332_v8 }
 0x386   : > { %v1387_v9 = vpop.f32.mrf.mxu0 }
 0x387   : > { %v1410_v12 = vrot.slane %v1387_v9, 4 }
 0x38e   : > { %v1389_v10 = vpop.f32.mrf.mxu0 }
 0x391   : > { %v1368_v13 = vpop.f32.mrf.mxu3 }
 0x392   : > { %v1425_v14 = vrot.slane %v1368_v13, 4 }
 0x396   : > { %v1349_v3 = vpop.f32.mrf.mxu2 }
 0x397   : > { %v1412_v11 = vsel %vm751_vm1, %v1410_v12, %v1349_v3  ;;  %v1413_v41 = vrot.slane %v1349_v3, 4 }
 0x398   : > { %v1418_v15 = vperm.slane %v1412_v11, %v2867_v30  ;;  %v1406_v16 = vpop.f32.mrf.mxu1 }
 0x399   : > { %v1414_v17 = vsel %vm751_vm1, %v1387_v9, %v1413_v41  ;;  %v1423_v18 = vrot.slane %v1406_v16, 4  ;;  %v1426_v51 = vsel %vm751_vm1, %v1406_v16, %v1425_v14  ;;  %v1370_v19 = vpop.f32.mrf.mxu3 }
 0x39a   : > { %v1422_v20 = vperm.slane %v1414_v17, %v2867_v30  ;;  %v1434_v22 = vperm.slane %v1426_v51, %v2867_v30  ;;  %v1437_v24 = vrot.slane %v1418_v15, 4 }
 0x39b   : > { %v1424_v23 = vsel %vm751_vm1, %v1423_v18, %v1368_v13 }
 0x39c   : > { %v1449_v25 = vrot.slane %v1422_v20, 4  ;;  %v1430_v26 = vperm.slane %v1424_v23, %v2867_v30  ;;  %v1447_v27 = vrot.slane %v1434_v22, 4  ;;  %v2040_v23 = vld [vmem:[#allocation16 + $0x8] sm:$0xff] }
 0x39d   : > { %1644 = vmatpush.bf16.msra.mxu3 %v2040_v23 }
 0x39e   : > { %v1435_v28 = vrot.slane %v1430_v26, 4  ;;  %v1438_v29 = vsel %vm751_vm1, %v1430_v26, %v1437_v24  ;;  %v1448_v21 = vsel %vm751_vm1, %v1447_v27, %v1422_v20  ;;  %v1450_v40 = vsel %vm751_vm1, %v1434_v22, %v1449_v25  ;;  %v1351_v32 = vpop.f32.mrf.mxu2  ;;  %v2039_v24 = vld [vmem:[#allocation16] sm:$0xff]  ;;  %v2197_v25 = vld [vmem:[#allocation12] ss:$0 sm:$0xff] }
 0x39f   : > { %v1446_v33 = vperm.slane %v1438_v29, %v2881_v52  ;;  %v1454_v34 = vperm.slane %v1448_v21, %v2881_v52  ;;  %v1458_v35 = vperm.slane %v1450_v40, %v2881_v52  ;;  %v1575_v26 = vunpack.c.l.bf16 %v2849_v5 }
 0x3a0   : > { %v1436_v36 = vsel %vm751_vm1, %v1435_v28, %v1418_v15  ;;  %v1408_v37 = vpop.f32.mrf.mxu1  ;;  %v2037_v15 = vld [vmem:[%s3157_s7] sm:$0xff] }
 0x3a1   : > { %v1442_v38 = vperm.slane %v1436_v36, %v2881_v52  ;;  %v1461_v39 = vrot.slane %v1446_v33, 4  ;;  %v1463_v42 = vrot.slane %v1454_v34, 4  ;;  %v1465_v43 = vrot.slane %v1458_v35, 4  ;;  %1645 = vmatpush.bf16.msra.mxu3 %v2039_v24 }
 0x3a3   : > { %v1459_v44 = vrot.slane %v1442_v38, 4  ;;  %v1462_v45 = vsel %vm751_vm1, 0.0, %v1461_v39  ;;  %v1466_v46 = vsel %vm751_vm1, 0.0, %v1465_v43  ;;  %v1478_v48 = vsel %vm751_vm1, %v1465_v43, %v1454_v34 }
 0x3a4   : > { %v1472_v47 = vrot.slane %v1462_v45, 4  ;;  %v1483_v49 = vrot.slane %v1466_v46, 4  ;;  %v1467_v50 = vsel %vm751_vm1, %v1461_v39, %v1442_v38  ;;  %v1464_v53 = vsel %vm751_vm1, 0.0, %v1463_v42 }
 0x3a5   : > { %v1460_v54 = vsel %vm751_vm1, 0.0, %v1459_v44  ;;  %v1471_v55 = vperm.slane %v1467_v50, %v2867_v30  ;;  %v1482_v56 = vperm.slane %v1478_v48, %v2867_v30  ;;  %v2590_v34 = vmov 32.0  }
 0x3a6   : > { %v1473_v57 = vsel %vm751_vm1, %v1472_v47, %v1460_v54  ;;  %v1484_v58 = vsel %vm751_vm1, %v1483_v49, %v1464_v53  ;;  %2219 = vrcp.f32 %v2590_v34 }
 0x3a7   : > { %v1477_v59 = vperm.slane %v1473_v57, %v2867_v30  ;;  %v1488_v60 = vperm.slane %v1484_v58, %v2867_v30  ;;  %v1491_v61 = vrot.slane %v1471_v55, 4  ;;  %v1503_v62 = vrot.slane %v1482_v56, 4 }
 0x3a9   : > { %v1492_v63 = vsel %vm751_vm1, %v1477_v59, %v1491_v61  ;;  %v1504_v0 = vsel %vm751_vm1, %v1488_v60, %v1503_v62  ;;  %v1489_v1 = vrot.slane %v1477_v59, 4  ;;  %v1501_v2 = vrot.slane %v1488_v60, 4  ;;  %v2198_v60 = vld [vmem:[#allocation13] ss:$0 sm:$0xff] }
 0x3aa   : > { %v1500_v4 = vperm.slane %v1492_v63, %v2881_v52  ;;  %v1512_v6 = vperm.slane %v1504_v0, %v2881_v52  ;;  %v2199_v63 = vld [vmem:[#allocation15] ss:$0 sm:$0xff] }
 0x3ab   : > { %v1490_v31 = vsel %vm751_vm1, %v1489_v1, %v1471_v55  ;;  %v1502_v7 = vsel %vm751_vm1, %v1501_v2, %v1482_v56 }
 0x3ac   : > { %v1519_v8 = vrot.slane %v1500_v4, 4  ;;  %v1517_v9 = vrot.slane %v1512_v6, 4  ;;  %v1496_v30 = vperm.slane %v1490_v31, %v2881_v52  ;;  %v1508_v10 = vperm.slane %v1502_v7, %v2881_v52  ;;  %v2038_v52 = vld [vmem:[%s3157_s7 + $0x8] sm:$0xff]  ;;  %v2220_v35 = vpop.eup %2219  ;;  %v2041_v7 = vld [vmem:[%s3162_s12] sm:$0xff] }
 0x3ad   : > { %1568 = vmatpush.bf16.msra.mxu2 %v2038_v52  ;;  %v1583_v36 = vmul.f32 32.0, %v2220_v35  ;;  %vm1587_vm8 = vweird.f32 %v2220_v35  ;;  %v2042_v31 = vld [vmem:[%s3162_s12 + $0x8] sm:$0xff] }
 0x3ae   : > { %v1520_v13 = vsel %vm751_vm1, %v1512_v6, %v1519_v8  ;;  %v1518_v12 = vsel %vm751_vm1, %v1517_v9, %v1500_v4  ;;  %v1513_v3 = vrot.slane %v1508_v10, 4  ;;  %v1515_v14 = vrot.slane %v1496_v30, 4  ;;  %v2044_v4 = vld [vmem:[%s3162_s12 + $0x18] sm:$0xff]  ;;  %v2043_v6 = vld [vmem:[%s3162_s12 + $0x10] sm:$0xff] }
 0x3af   : > { %1530 = vrot.lane.b32.xlu2 %v1520_v13, %s2586_s10  ;;  %1526 = vrot.lane.b32.xlu0 %v1518_v12, %s2587_s18  ;;  %v1584_v37 = vsub.f32 1.0, %v1583_v36  ;;  %s3203_s10 = sld [smem:[#allocation28_spill]] }
 0x3b0   : > { %v1516_v11 = vsel %vm751_vm1, %v1508_v10, %v1515_v14  ;;  %v1514_v41 = vsel %vm751_vm1, %v1513_v3, %v1496_v30  ;;  %1725 = vmatpush.bf16.msrb.mxu1 %v2044_v4 }
 0x3b1   : > { %1522 = vrot.lane.b32.xlu1 %v1516_v11, %s2588_s24  ;;  %1569 = vmatpush.bf16.msra.mxu2 %v2037_v15  ;;  %v1585_v38 = vmul.f32 %v2220_v35, %v1584_v37 }
 0x3b3   : > { %v1586_v5 = vadd.f32 %v2220_v35, %v1585_v38 }
 0x3b4   : > { %1726 = vmatpush.bf16.msrb.mxu1 %v2043_v6 }
 0x3b5   : > { %v3079_v42 = vsel %vm1587_vm8, %v2220_v35, %v1586_v5  ;;  %s2030_s18 = sshll.u32 %s3203_s10, 2 }
 0x3b6   : > { %s1784_s15 = scalar_lea.hbm %s3206_s14, %s2030_s18 }
 0x3b7   : > { %1653 = vrot.lane.b32.xlu2 %v2040_v23, %s2589_s27  ;;  %s1788_s11 = sshll.u32 %s1784_s15, 4  ;;  %s1789_s11 = int_to_ptr.hbm [resolvable:$true] %s1788_s11 }
 0x3b8   : > { %1727 = vmatpush.bf16.msrb.mxu1 %v2042_v31  ;;  %s2481_s0 = sshra.s32 %s1789_s11, 4  ;;  %s2482_s0 = int_to_ptr.hbm [resolvable:$true] %s2481_s0 }
 0x3b9   : > { %s2483_s4 = scalar_lea.hbm %s2482_s0, 4  ;;  %p2488_p10 = scmp.lt.s32.totalorder %s2482_s0, %s3206_s14 }
 0x3ba   : > { %p2484_p1 = scmp.ne.s32.totalorder %s2482_s0, %s2483_s4  ;;  %p2489_p11 = scmp.lt.s32.totalorder %s2487_s21, %s2483_s4 }
 0x3bc   : > { %1728 = vmatpush.bf16.msrb.mxu1 %v2041_v7  ;;  %p2485_p3 = pnand %p2484_p1, %p2778_p2  ;;  %p2490_p12 = por %p2489_p11, %p2488_p10 }
 0x3be   : > { %p2486_p9 = pneg %p2485_p3 }
 0x3bf   : > { %1651 = vrot.lane.b32.xlu2 %v2039_v24, %s2589_s27  ;;  %s3205_s27 = sld [smem:[#allocation41_spill]] }
 0x3c0   : > { %p2491_p13 = pnand %p2490_p12, %p2486_p9 }
 0x409   : > { %v1531_v51 = vpop.permute.xlu2 %1530 }
 0x411   : > { %v1654_v39 = vpop.permute.xlu2 %1653 }
 0x412   : > { %1663 = vmatpush.bf16.msrb.mxu0 %v1654_v39 }
 0x419   : > { %v1652_v44 = vpop.permute.xlu2 %1651 }
 0x41a   : > { %1664 = vmatpush.bf16.msrb.mxu0 %v1652_v44 }
 0x421   : > { %v1527_v17 = vpop.permute.xlu0 %1526 }
 0x423   : > { %v1523_v16 = vpop.permute.xlu1 %1522 }
 0x424   : > { %v1533_v18 = vsel %vm1200_vm3, %v1514_v41, %v1523_v16 }
 0x425   : > { %v1535_v19 = vsel %vm1534_vm6, %v1533_v18, %v1527_v17 }
 0x426   : > { %v1537_v20 = vsel %vm1536_vm7, %v1535_v19, %v1531_v51  ;;  %v2200_v51 = vld [vmem:[%s3202_s30] ss:$0 sm:$0xff] }
 0x427   : > { %v1538_v22 = vpack.c.bf16 %v1537_v20, %v1537_v20 }
 0x429   : > { %2001 = vmatmul.msk.bf16.vlgmr.msra.gmra.mxu2 %vm703_vm0, %v1538_v22 }
 0x4ac   : > { %v1571_v27 = vpop.f32.mrf.mxu2 }
 0x4ad   : > { %v1572_v28 = vadd.f32 %v2197_v25, %v1571_v27 }
 0x4af   : > { %v1576_v29 = vadd.f32 %v1575_v26, %v1572_v28 }
 0x4b1   : > { %v1579_v21 = vsel %vm703_vm0, %v1576_v29, 0.0  ;;  %v1590_v40 = vmul.f32 %v1576_v29, %v1576_v29 }
 0x4b2   : > { %1580 = vadd.xlane.f32.xlu0 %v1579_v21 }
 0x4b3   : > { %v1591_v32 = vsel %vm703_vm0, %v1590_v40, 0.0 }
 0x4b4   : > { %v1573_v33 = vpop.f32.mrf.mxu2  ;;  %1592 = vadd.xlane.f32.xlu1 %v1591_v32 }
 0x525   : > { %v1581_v43 = vpop.xlane.xlu0 %1580 }
 0x526   : > { %v1589_v45 = vmul.f32 %v3079_v42, %v1581_v43  ;;  %v2201_v43 = vld [vmem:[%s3204_s6] ss:$0 sm:$0xff] }
 0x527   : > { %v1593_v46 = vpop.xlane.xlu1 %1592 }
 0x528   : > { %v1595_v47 = vmul.f32 %v1589_v45, %v1589_v45  ;;  %v1594_v48 = vmul.f32 %v1593_v46, %v3079_v42  ;;  %v1597_v59 = vsub.f32 %v1576_v29, %v1589_v45  ;;  %v2202_v45 = vld [vmem:[%s3205_s27] ss:$0 sm:$0xff] }
 0x52a   : > { %v1596_v49 = vsub.f32 %v1594_v48, %v1595_v47 }
 0x52c   : > { %v1598_v50 = vadd.f32 1e-12, %v1596_v49 }
 0x52e   : > { %2221 = vrsqrt.f32 %v1598_v50  ;;  %vm1605_vm10 = vweird.f32 %v1598_v50 }
 0x534   : > { %v2222_v53 = vpop.eup %2221 }
 0x535   : > { %v1600_v54 = vmul.f32 %v2222_v53, %v1598_v50  ;;  %vm1606_vm9 = vweird.f32 %v2222_v53 }
 0x536   : > { %vm1607_vm11 = vmor %vm1605_vm10, %vm1606_vm9 }
 0x537   : > { %v1601_v55 = vmul.f32 %v2222_v53, %v1600_v54 }
 0x539   : > { %v1602_v56 = vmul.f32 0.5, %v1601_v55 }
 0x53b   : > { %v1603_v57 = vsub.f32 1.5, %v1602_v56 }
 0x53d   : > { %v1604_v58 = vmul.f32 %v2222_v53, %v1603_v57 }
 0x53f   : > { %v1608_v61 = vsel %vm1607_vm11, %v2222_v53, %v1604_v58 }
 0x540   : > { %v1609_v62 = vmul.f32 %v1608_v61, %v1597_v59 }
 0x542   : > { %v1613_v0 = vmul.f32 %v2198_v60, %v1609_v62 }
 0x544   : > { %v1617_v1 = vadd.f32 %v2199_v63, %v1613_v0 }
 0x546   : > { %v1618_v2 = vpack.c.bf16 %v1617_v1, %v1617_v1 }
 0x548   : > { %2010 = vmatmul.msk.bf16.vlgmr.msra.gmra.mxu3 %vm703_vm0, %v1618_v2  ;;  %2011 = vmatmul.msk.bf16.vlgmr.msrb.gmra.mxu0 %vm703_vm0, %v1618_v2 }
 0x5c5   : > { %v1666_v8 = vpop.f32.mrf.mxu0 }
 0x5cb   : > { %v1647_v9 = vpop.f32.mrf.mxu3 }
 0x5cc   : > { %v1670_v30 = vmul.f32 %v1647_v9, %v1647_v9 }
 0x5cd   : > { %v1668_v10 = vpop.f32.mrf.mxu0 }
 0x5ce   : > { %v1671_v13 = vmul.f32 %v1670_v30, %v1647_v9 }
 0x5d0   : > { %v1672_v12 = vmul.f32 0.044715, %v1671_v13 }
 0x5d2   : > { %v1673_v3 = vadd.f32 %v1672_v12, %v1647_v9 }
 0x5d3   : > { %v1649_v14 = vpop.f32.mrf.mxu3 }
 0x5d4   : > { %v1674_v11 = vmul.f32 0.7978846, %v1673_v3 }
 0x5d6   : > { %2223 = vtanh.f32 %v1674_v11 }
 0x5dc   : > { %v2224_v41 = vpop.eup %2223 }
 0x5dd   : > { %v1676_v52 = vadd.f32 1.0, %v2224_v41 }
 0x5df   : > { %v1677_v15 = vmul.f32 0.5, %v1676_v52 }
 0x5e1   : > { %v1678_v16 = vmul.f32 %v1677_v15, %v1647_v9 }
 0x5e3   : > { %v1679_v17 = vmul.f32 %v1678_v16, %v1666_v8 }
 0x5e5   : > { %v1680_v18 = vpack.c.bf16 %v1679_v17, %v1679_v17 }
 0x5e7   : > { %2028 = vmatmul.msk.bf16.vlgmr.msrb.gmra.mxu1 %vm1717_vm12, %v1680_v18 }
 0x664   : > { %v1730_v19 = vpop.f32.mrf.mxu1 }
 0x665   : > { %v1731_v20 = vadd.f32 %v2200_v51, %v1730_v19 }
 0x667   : > { %v1734_v22 = vadd.f32 %v1731_v20, %v1617_v1 }
 0x669   : > { %v1737_v23 = vsel %vm703_vm0, %v1734_v22, 0.0  ;;  %v1741_v24 = vmul.f32 %v1734_v22, %v1734_v22 }
 0x66a   : > { %1738 = vadd.xlane.f32.xlu2 %v1737_v23 }
 0x66b   : > { %v1742_v25 = vsel %vm703_vm0, %v1741_v24, 0.0  ;;  %vm1770_vm0 = vcmask 257024  }
 0x66c   : > { %v1732_v26 = vpop.f32.mrf.mxu1  ;;  %1743 = vadd.xlane.f32.xlu0 %v1742_v25 }
 0x6dd   : > { %v1739_v27 = vpop.xlane.xlu2 %1738 }
 0x6de   : > { %v1740_v28 = vmul.f32 %v1739_v27, %v3079_v42 }
 0x6df   : > { %v1744_v29 = vpop.xlane.xlu0 %1743 }
 0x6e0   : > { %v1746_v21 = vmul.f32 %v1740_v28, %v1740_v28  ;;  %v1745_v40 = vmul.f32 %v1744_v29, %v3079_v42  ;;  %v1748_v5 = vsub.f32 %v1734_v22, %v1740_v28 }
 0x6e2   : > { %v1747_v32 = vsub.f32 %v1745_v40, %v1746_v21 }
 0x6e4   : > { %v1749_v33 = vadd.f32 1e-12, %v1747_v32 }
 0x6e6   : > { %2225 = vrsqrt.f32 %v1749_v33  ;;  %vm1756_vm14 = vweird.f32 %v1749_v33 }
 0x6ec   : > { %v2226_v34 = vpop.eup %2225 }
 0x6ed   : > { %v1751_v35 = vmul.f32 %v2226_v34, %v1749_v33  ;;  %vm1757_vm13 = vweird.f32 %v2226_v34 }
 0x6ee   : > { %vm1758_vm15 = vmor %vm1756_vm14, %vm1757_vm13 }
 0x6ef   : > { %v1752_v36 = vmul.f32 %v2226_v34, %v1751_v35 }
 0x6f1   : > { %v1753_v37 = vmul.f32 0.5, %v1752_v36 }
 0x6f3   : > { %v1754_v38 = vsub.f32 1.5, %v1753_v37 }
 0x6f5   : > { %v1755_v39 = vmul.f32 %v2226_v34, %v1754_v38 }
 0x6f7   : > { %v1759_v42 = vsel %vm1758_vm15, %v2226_v34, %v1755_v39 }
 0x6f8   : > { %v1760_v44 = vmul.f32 %v1759_v42, %v1748_v5 }
 0x6fa   : > { %v1764_v46 = vmul.f32 %v2201_v43, %v1760_v44 }
 0x6fc   : > { %v1768_v47 = vadd.f32 %v2202_v45, %v1764_v46 }
 0x6fe   : > { %v1769_v48 = vpack.c.bf16 %v1768_v47, %v1768_v47 }
 0x700   : > { %1771 = vst.msk [vmem:[%s676_s9] sm:$0xf] %vm1770_vm0, %v1769_v48 }
 0x701   : > { %2494 = shalt.err (!%p2491_p13)
}
 0x702   : > { %2073 = dma.vmem_to_hbm [thread:$0]  (%p2778_p2), %s1787_s8, 64, %s1789_s11, %s1773_s23  }
 0x703 PF: > { %s3207_s29 = sld [smem:[#allocation26_spill]]  ;;  %p2102_p0 = pnand %p1955_p4, %p2785_p6 }
 0x705   : > { %p2103_p5 = pneg %p2102_p0 }
 0x709   : > { %s1800_s6 = sand.u32 1, %s3207_s29  }
 0x70a   : > { %s1801_s17 = scalar_lea.sflag [#allocation6], %s1800_s6 }
 0x70b   : > { %2544 = dma.done.wait (%p2103_p5), %s1801_s17, 64  }
 0x70c   : > { %2546 = vsyncadd (%p2103_p5), %s1801_s17, 4294967232  ;;  %s38_s26 = sadd.s32 1, %s2569_s26   ;;  %s3209_s19 = sld [smem:[#allocation27_spill]] }
 0x70d   : > { %p35_p7 = scmp.ge.s32.totalorder %s38_s26, 4   ;;  %s3210_s23 = sld [smem:[#allocation30_spill]] }
 0x70e   : > { %s3211_s16 = sld [smem:[#allocation29_spill]]  ;;  %s3212_s21 = smov %s2553_s22 }
 0x70f   : > { %s3214_s24 = smov %s2565_s25 }
 0x710   :  { %37 = sbr.rel (!%p35_p7) target bundleno = 23 (0x17), region = 171 }
 0x712   : > { %s3213_s22 = smov %s3209_s19 }
 0x714   : > { %s3215_s25 = smov %s3211_s16 }
 0x715   :  { %1807 = vsyncpa [#allocation5], 1 }
 0x716   :  { %1809 = vsyncpa [#allocation5 + $0x1], 1 }
 0x717   :  { %1810 = vsyncpa [#allocation8], 1 }
 0x718   :  { %1812 = vsyncpa [#allocation8 + $0x1], 1 }
 0x719   :  { %1813 = vsyncpa [#allocation11], 1 }
 0x71a   :  { %1814 = vsyncpa [#allocation14], 1 }
 0x71b   :  { %1815 = vsyncpa [#allocation17], 1 }
 0x71c   :  { %1816 = vsyncpa [#allocation6], 1 }
 0x71d   :  { %1818 = vsyncpa [#allocation6 + $0x1], 1 }

// kernel: tpu_custom_call.1
= control target key start
LH: loop header
LB: loop body
LE: loop exit
PB: predicated region body
PF: predicated region fallthrough
CT: control target
= control target key end

     0   :  { %s3150_s0 = inlined_call_operand.hbm [shape: f32[2,1,8], index: 0, kind: input, shape index: {}]   ;;  %s3151_s1 = inlined_call_operand.vmem [shape: f32[4,1,1], index: 1, kind: input, shape index: {}]   ;;  %s3152_s2 = inlined_call_operand.hbm [shape: bf16[2,8,32], index: 2, kind: input, shape index: {}]   ;;  %s3153_s3 = inlined_call_operand.vmem [shape: bf16[32,32], index: 3, kind: input, shape index: {}]   ;;  %s3154_s4 = inlined_call_operand.hbm [shape: f32[1,32], index: 4, kind: input, shape index: {}]   ;;  %s3155_s5 = inlined_call_operand.vmem [shape: bf16[32,64], index: 5, kind: input, shape index: {}]   ;;  %s3156_s6 = inlined_call_operand.hbm [shape: f32[1,64], index: 6, kind: input, shape index: {}]   ;;  %s3157_s7 = inlined_call_operand.vmem [shape: bf16[32,32], index: 7, kind: input, shape index: {}]   ;;  %s3158_s8 = inlined_call_operand.hbm [shape: f32[1,32], index: 8, kind: input, shape index: {}]   ;;  %s3159_s9 = inlined_call_operand.hbm [shape: f32[1,32], index: 9, kind: input, shape index: {}]   ;;  %s3160_s10 = inlined_call_operand.hbm [shape: f32[1,32], index: 10, kind: input, shape index: {}]   ;;  %s3161_s11 = inlined_call_operand.hbm [shape: bf16[32,128], index: 11, kind: input, shape index: {}]   ;;  %s3162_s12 = inlined_call_operand.vmem [shape: bf16[64,32], index: 12, kind: input, shape index: {}]   ;;  %s3163_s13 = inlined_call_operand.vmem [shape: f32[1,32], index: 13, kind: input, shape index: {}]   ;;  %s3164_s14 = inlined_call_operand.vmem [shape: f32[1,32], index: 14, kind: input, shape index: {}]   ;;  %s3165_s15 = inlined_call_operand.vmem [shape: f32[1,32], index: 15, kind: input, shape index: {}]   ;;  %s3166_s16 = inlined_call_operand.hbm [shape: bf16[2,8,32], index: 16, kind: output, shape index: {}]  }
   0x1   :  { %3172 = sst [smem:[#allocation32_spill]] %s3150_s0 }
   0x2   :  { %3173 = sst [smem:[#allocation33_spill]] %s3154_s4 }
   0x3   :  { %3174 = sst [smem:[#allocation34_spill]] %s3156_s6 }
   0x4   :  { %3175 = sst [smem:[#allocation35_spill]] %s3158_s8 }
   0x5   :  { %3176 = sst [smem:[#allocation36_spill]] %s3159_s9 }
   0x6   :  { %3177 = sst [smem:[#allocation37_spill]] %s3160_s10 }
   0x7   :  { %3178 = sst [smem:[#allocation38_spill]] %s3161_s11 }
   0x8   :  { %3179 = sst [smem:[#allocation39_spill]] %s3163_s13 }
   0x9   :  { %3180 = sst [smem:[#allocation40_spill]] %s3164_s14 }
   0xa   :  { %3181 = sst [smem:[#allocation41_spill]] %s3165_s15 }
   0xb   :  { %3182 = sst [smem:[#allocation42_spill]] %s3166_s16 }
   0xc   :  { %21 = vsyncpa [#allocation5], 0 }
   0xd   :  { %23 = vsyncpa [#allocation5 + $0x1], 0 }
   0xe   :  { %24 = vsyncpa [#allocation8], 0 }
   0xf   :  { %26 = vsyncpa [#allocation8 + $0x1], 0 }
  0x10   :  { %27 = vsyncpa [#allocation11], 0 }
  0x11   :  { %28 = vsyncpa [#allocation14], 0 }
  0x12   :  { %29 = vsyncpa [#allocation17], 0 }
  0x13   :  { %30 = vsyncpa [#allocation6], 0 }
  0x14   :  { %32 = vsyncpa [#allocation6 + $0x1], 0  ;;  %s2676_s21 = smov 0   ;;  %s2678_s22 = smov 0  }
  0x15   :  { %s2680_s23 = smov 0   ;;  %s2682_s24 = smov 0  }
  0x16   :  { %s2684_s25 = smov 0   ;;  %s2686_s26 = smov 0  }
  0x17 LB: > { %3183 = sst [smem:[#allocation26_spill]] %s2549_s21  ;;  %s2707_s27 = sadd.s32 4294967295, %s2569_s26   ;;  %s2569_s26 = sphi %s2686_s26, %s38_s26   ;;  %s2565_s25 = sphi %s2684_s25, %s3215_s25   ;;  %s2561_s24 = sphi %s2682_s24, %s3214_s24   ;;  %s2557_s23 = sphi %s2680_s23, %s3210_s23   ;;  %s2553_s22 = sphi %s2678_s22, %s3213_s22   ;;  %s2549_s21 = sphi %s2676_s21, %s3212_s21  }
  0x18   : > { %3184 = sst [smem:[#allocation27_spill]] %s2557_s23  ;;  %p1948_p0 = scmp.ge.s32.totalorder %s2569_s26, 1 }
  0x19   : > { %3185 = sst [smem:[#allocation28_spill]] %s2561_s24  ;;  %p71_p1 = scmp.eq.s32.totalorder %s2707_s27, 0 }
  0x1a   : > { %p429_p2 = scmp.lt.s32.totalorder %s2569_s26, 3  ;;  %s3186_s4 = sld [smem:[#allocation33_spill]] }
  0x1b   : > { %p1955_p4 = scmp.ge.s32.totalorder %s2569_s26, 2  ;;  %s2571_s17 = smov [#allocation9]  }
  0x1c   : > { %p2715_p3 = pnand %p1948_p0, %p429_p2  ;;  %s449_s18 = sshll.u32 %s2571_s17, 4  ;;  %s450_s18 = int_to_ptr.vmem [resolvable:$true] %s449_s18 }
  0x1d   : > { %s3188_s6 = sld [smem:[#allocation34_spill]]  ;;  %s2572_s14 = smov [#allocation10]  }
  0x1e   : > { %p2075_p5 = pneg %p2715_p3  ;;  %s3190_s9 = sld [smem:[#allocation36_spill]] }
  0x1f   : > { %s464_s17 = sshll.u32 %s2572_s14, 4  ;;  %s3191_s8 = sld [smem:[#allocation35_spill]]  ;;  %s465_s17 = int_to_ptr.vmem [resolvable:$true] %s464_s17 }
  0x20   : > { %s447_s30 = sshll.u32 %s3186_s4, 4  ;;  %p2727_p6 = pnand %p2075_p5, %p71_p1  ;;  %s448_s30 = int_to_ptr.hbm [resolvable:$true] %s447_s30 }
  0x21   : > { %s2573_s24 = smov [#allocation13]   ;;  %s2574_s4 = smov [#allocation12]  }
  0x22   : > { %2078 = dma.hbm_to_vmem [thread:$0]  (!%p2727_p6), %s448_s30, 16, %s450_s18, [#allocation8]  }
  0x23   : > { %s462_s16 = sshll.u32 %s3188_s6, 4  ;;  %s491_s13 = sshll.u32 %s2573_s24, 4  ;;  %s463_s16 = int_to_ptr.hbm [resolvable:$true] %s462_s16  ;;  %s492_s13 = int_to_ptr.vmem [resolvable:$true] %s491_s13 }
  0x24   : > { %s489_s15 = sshll.u32 %s3190_s9, 4  ;;  %s479_s14 = sshll.u32 %s2574_s4, 4  ;;  %s490_s15 = int_to_ptr.hbm [resolvable:$true] %s489_s15  ;;  %s480_s14 = int_to_ptr.vmem [resolvable:$true] %s479_s14 }
  0x25   : > { %2081 = dma.hbm_to_vmem [thread:$0]  (!%p2727_p6), %s463_s16, 16, %s465_s17, [#allocation11]  }
  0x26   : > { %s477_s6 = sshll.u32 %s3191_s8, 4  ;;  %s3192_s10 = sld [smem:[#allocation37_spill]]  ;;  %s478_s6 = int_to_ptr.hbm [resolvable:$true] %s477_s6 }
  0x27   : > { %2087 = dma.hbm_to_vmem [thread:$0]  (!%p2727_p6), %s490_s15, 16, %s492_s13, [#allocation14]  }
  0x28   : > { %2084 = dma.hbm_to_vmem [thread:$0]  (!%p2727_p6), %s478_s6, 16, %s480_s14, [#allocation11]  }
  0x29   : > { %s3193_s11 = sld [smem:[#allocation38_spill]]  ;;  %s2575_s13 = smov [#allocation15]  }
  0x2a   : > { %s503_s15 = sshll.u32 %s2575_s13, 4  ;;  %s2576_s9 = smov [#allocation16]   ;;  %s504_s15 = int_to_ptr.vmem [resolvable:$true] %s503_s15 }
  0x2b   : > { %s514_s6 = sshll.u32 %s2576_s9, 4  ;;  %s2577_s17 = smov 64   ;;  %s515_s6 = int_to_ptr.vmem [resolvable:$true] %s514_s6 }
  0x2c   : > { %s501_s30 = sshll.u32 %s3192_s10, 4  ;;  %s2578_s19 = smov 4   ;;  %s502_s30 = int_to_ptr.hbm [resolvable:$true] %s501_s30 }
  0x2d   : > { %2090 = dma.hbm_to_vmem [thread:$0]  (!%p2727_p6), %s502_s30, 16, %s504_s15, [#allocation14]  }
  0x2e   : > { %s1947_s20 = sadd.s32 4294967294, %s2569_s26   ;;  %s50_s4 = sadd.s32 1, %s2565_s25 }
  0x2f   : > { %s512_s24 = sshll.u32 %s3193_s11, 4  ;;  %p52_p7 = scmp.ge.s32.totalorder %s50_s4, 2  ;;  %s513_s24 = int_to_ptr.hbm [resolvable:$true] %s512_s24 }
  0x30   : > { %2093 = dma.hbm_to_vmem [thread:$0]  (!%p2727_p6), %s513_s24, 256, %s515_s6, [#allocation17], %s2577_s17, %s2577_s17, %s2578_s19  }
  0x31   : > { %s57_s14 = sadd.s32 1, %s2557_s23  ;;  %p64_p8 = scmp.ne.s32.totalorder %s2557_s23, %s2553_s22 }
  0x32   : > { %p65_p9 = scmp.eq.s32.totalorder %s2569_s26, 0  ;;  %s3217_s4 = smov (%p52_p7, %s50_s4), 0 }
  0x33   : > { %3194 = sst [smem:[#allocation29_spill]] %s3217_s4  ;;  %p70_p11 = scmp.ne.s32.totalorder %s2553_s22, %s2549_s21 }
  0x34   : > { %p2763_p10 = por %p65_p9, %p64_p8  ;;  %s54_s28 = ssub.s32 %s2565_s25, %s3217_s4 }
  0x35   : > { %p416_p12 = scmp.eq.s32.totalorder %s2707_s27, 1  ;;  %p55_p13 = scmp.eq.s32.totalorder %s54_s28, 0 }
  0x36   : > { %p2774_p0 = por %p71_p1, %p70_p11  ;;  %p422_p5 = scmp.eq.s32.totalorder %s1947_s20, 1 }
  0x37   : > { %p2778_p2 = por %p416_p12, %p64_p8  ;;  %p2111_p7 = scmp.lt.s32.totalorder %s2569_s26, 2 }
  0x38   : > { %s2783_s18 = scalar_select %p55_p13, %s2557_s23, %s57_s14  }
  0x39   : > { %p2785_p6 = por %p422_p5, %p70_p11  ;;  %s540_s13 = sand.u32 1, %s2557_s23  }
  0x3a   : > { %3198 = sst [smem:[#allocation30_spill]] %s2783_s18  ;;  %s543_s28 = scalar_lea.vmem [#allocation4], %s540_s13 }
  0x3b   : > { %s3199_s24 = scalar_select %p2785_p6, 1, 0 }
  0x3c   : > { %s3201_s6 = sld [smem:[#allocation32_spill]]  ;;  %s550_s8 = sshll.u32 %s543_s28, 4  ;;  %s551_s8 = int_to_ptr.vmem [resolvable:$true] %s550_s8 }
  0x3d   : > { %3200 = sst [smem:[#allocation31_spill]] %s3199_s24  ;;  %p2095_p8 = pnand %p2111_p7, %p2763_p10 }
  0x3e   : > { %s557_s20 = sand.u32 1, %s2569_s26   ;;  %s1956_s14 = sshll.u32 %s540_s13, 2 }
  0x3f   : > { %s541_s10 = scalar_lea.sflag [#allocation5], %s540_s13  ;;  %s1957_s11 = sshll.u32 %s2565_s25, 2 }
  0x40   : > { %s561_s4 = scalar_lea.vmem [#allocation7], %s1956_s14  ;;  %s565_s21 = scalar_lea.hbm %s3152_s2, %s1957_s11 }
  0x41   : > { %s569_s18 = sshll.u32 %s561_s4, 4  ;;  %s567_s15 = sshll.u32 %s565_s21, 4  ;;  %s570_s18 = int_to_ptr.vmem [resolvable:$true] %s569_s18  ;;  %s568_s15 = int_to_ptr.hbm [resolvable:$true] %s567_s15 }
  0x42   : > { %s546_s17 = scalar_lea.hbm %s3201_s6, %s2565_s25  ;;  %s558_s9 = scalar_lea.sflag [#allocation8], %s557_s20 }
  0x43   : > { %s548_s19 = sshll.u32 %s546_s17, 4  ;;  %578 = sbr.rel (%p2715_p3) target bundleno = 1795 (0x703), region = 84  ;;  %s549_s19 = int_to_ptr.hbm [resolvable:$true] %s548_s19 }
  0x44   : > { %2097 = dma.hbm_to_vmem [thread:$0]  (!%p2095_p8), %s549_s19, 16, %s551_s8, %s541_s10  }
  0x45   : > { %2100 = dma.hbm_to_vmem [thread:$0]  (!%p2095_p8), %s568_s15, 64, %s570_s18, %s558_s9  }
  0x46   : > { %s2805_s29 = sand.u32 (!%p2715_p3), 1, %s2553_s22  }
  0x47   : > { %s581_s8 = scalar_lea.sflag (!%p2715_p3), [#allocation5], %s2805_s29  ;;  %s583_s10 = scalar_lea.vmem (!%p2715_p3), [#allocation4], %s2805_s29 }
  0x48   : > { %2520 = dma.done.wait (%p2774_p0), %s581_s8, 16  }
  0x49   : > { %2522 = vsyncadd (%p2774_p0), %s581_s8, 4294967280  ;;  %s589_s11 = sand.u32 1, %s2707_s27   ;;  %s1959_s21 = sshll.u32 %s2805_s29, 2 }
  0x4a   : > { %s590_s23 = scalar_lea.sflag [#allocation8], %s589_s11  ;;  %s593_s0 = scalar_lea.vmem [#allocation7], %s1959_s21 }
  0x4b   : > { %2524 = dma.done.wait (%p2774_p0), %s590_s23, 64  }
  0x4c   : > { %2526 = vsyncadd (%p2774_p0), %s590_s23, 4294967232 }
  0x4d   : > { %2528 = dma.done.wait (%p71_p1), [#allocation8], 16  }
  0x4e   : > { %2530 = vsyncadd (%p71_p1), [#allocation8], 4294967280 }
  0x4f   : > { %2532 = dma.done.wait (%p71_p1), [#allocation11], 32  }
  0x50   : > { %2534 = vsyncadd (%p71_p1), [#allocation11], 4294967264 }
  0x51   : > { %2536 = dma.done.wait (%p71_p1), [#allocation14], 32  }
  0x52   : > { %2538 = vsyncadd (%p71_p1), [#allocation14], 4294967264 }
  0x53   : > { %2540 = dma.done.wait (%p71_p1), [#allocation17], 256  }
  0x54   : > { %2542 = vsyncadd (%p71_p1), [#allocation17], 4294967040  ;;  %v2034_v0 = vld [vmem:[%s3155_s5 + $0x8] sm:$0xff]  ;;  %v2033_v1 = vld [vmem:[%s3155_s5] sm:$0xff]  ;;  %vm703_vm0 = vcmask 261120   ;;  %v2579_v6 = vmov 0  }
  0x55   : > { %v2036_v2 = vld [vmem:[%s3153_s3 + $0x8] sm:$0xff]  ;;  %713 = vmatpush.bf16.msra.mxu0 %v2034_v0  ;;  %v2035_v3 = vld [vmem:[%s3153_s3] sm:$0xff]  ;;  %2187 = vset.pattern.permute.xlu0 %v2579_v6  ;;  %s2580_s27 = smov 104   ;;  %s2581_s28 = smov 120   ;;  %v2584_v24 = vmov 1983009808  }
  0x56   : > { %1018 = vmatpush.bf16.msra.mxu1 %v2036_v2  ;;  %v682_v4 = vld [vmem:[%s593_s0] sm:$0xf]  ;;  %2188 = vset.pattern.permute.xlu1 %v2579_v6  ;;  %v2190_v7 = vld [vmem:[#allocation10] ss:$0 sm:$0xff]  ;;  %v2191_v8 = vld [vmem:[#allocation9] ss:$0 sm:$0xff]  ;;  %v742_v25 = vunpack.c.l.s4 %v2584_v24 }
  0x57   : > { %v2849_v5 = vld [vmem:[%s593_s0] sm:$0xf]  ;;  %2189 = vset.pattern.permute.xlu2 %v2579_v6  ;;  %s2582_s20 = smov 112   ;;  %v2192_v17 = vld [vmem:[%s3151_s1] ss:$0 sm:$0xff]  ;;  %s2583_s9 = smov 96  }
  0x58   : > { %v2867_v30 = vunpack.c.0.s8 %v742_v25  ;;  %v2585_v37 = vmov 1934713408   ;;  %vm751_vm1 = vcmask 1047556   ;;  %vm919_vm2 = vcmask 60416   ;;  %s2587_s18 = smov 16   ;;  %s2588_s24 = smov 8  }
  0x59   : > { %714 = vmatpush.bf16.msra.mxu0 %v2033_v1  ;;  %v756_v38 = vunpack.c.l.s4 %v2585_v37  ;;  %vm1200_vm3 = vcmask 64512   ;;  %vm1336_vm5 = vcmask 1043456   ;;  %vm1534_vm6 = vcmask 130048   ;;  %s3202_s30 = sld [smem:[#allocation39_spill]]  ;;  %s1773_s23 = scalar_lea.sflag [#allocation6], %s2805_s29 }
  0x5a   : > { %1019 = vmatpush.bf16.msra.mxu1 %v2035_v3  ;;  %vm1536_vm7 = vcmask 195584   ;;  %vm1717_vm12 = vcmask 523264   ;;  %s3204_s6 = sld [smem:[#allocation40_spill]] }
  0x5b   : > { %v2881_v52 = vunpack.c.0.s8 %v756_v38  ;;  %s3206_s14 = sld [smem:[#allocation42_spill]] }
  0x5c   : > { %1975 = vmatmul.msk.bf16.vlgmr.msra.gmra.mxu0 %vm703_vm0, %v682_v4 }
  0x5d   : > { %1984 = vmatmul.msk.bf16.vlgmr.msra.gmra.mxu1 %vm703_vm0, %v2849_v5 }
  0xd9   : > { %v716_v9 = vpop.f32.mrf.mxu0 }
  0xda   : > { %v717_v10 = vadd.f32 %v2190_v7, %v716_v9  ;;  %v1021_v11 = vpop.f32.mrf.mxu1 }
  0xdb   : > { %v1022_v12 = vadd.f32 %v2191_v8, %v1021_v11 }
  0xdc   : > { %v2854_v13 = vpack.c.bf16 %v717_v10, %v717_v10  ;;  %v2193_v10 = vld [vmem:[%s3151_s1 + $0x1] ss:$0 sm:$0xff] }
  0xdd   : > { %v1025_v14 = vpack.c.bf16 %v1022_v12, %v1022_v12 }
  0xde   : > { %726 = vrot.lane.b32.xlu1 %v2854_v13, %s2580_s27  ;;  %722 = vrot.lane.b32.xlu0 %v2854_v13, %s2581_s28  ;;  %v731_v28 = vshrl.u32 %v2854_v13, 16 }
  0xdf   : > { %1029 = vrot.lane.b32.xlu2 %v1025_v14, %s2582_s20  ;;  %v1036_v33 = vshrl.u32 %v1025_v14, 16 }
  0xe1   : > { %v718_v15 = vpop.f32.mrf.mxu0 }
  0xe2   : > { %v1023_v16 = vpop.f32.mrf.mxu1 }
  0xe6   : > { %1027 = vrot.lane.b32.xlu1 %v1025_v14, %s2581_s28  ;;  %724 = vrot.lane.b32.xlu0 %v2854_v13, %s2582_s20 }
  0xe7   : > { %1031 = vrot.lane.b32.xlu2 %v1025_v14, %s2580_s27  ;;  %s2589_s27 = smov 64  }
  0xee   : > { %1181 = vperm.xlu0 %2187, %v2192_v17   ;;  %1185 = vperm.xlu1 %2188, %v2193_v10  }
 0x139   : > { %v1030_v18 = vpop.permute.xlu2 %1029 }
 0x13a   : > { %v1042_v20 = vshrl.u32 %v1030_v18, 16 }
 0x141   : > { %v1032_v19 = vpop.permute.xlu2 %1031 }
 0x142   : > { %v1043_v23 = vshrl.u32 %v1032_v19, 16  ;;  %v1041_v32 = vpack.i.b16 %v1032_v19, %v1030_v18 }
 0x144   : > { %v1044_v29 = vpack.i.b16 %v1043_v23, %v1042_v20  ;;  %v1054_v46 = vperm.slane %v1041_v32, %v2867_v30 }
 0x146   : > { %v1081_v36 = vperm.slane %v1044_v29, %v2867_v30  ;;  %v1055_v58 = vrot.slane %v1054_v46, 4 }
 0x148   : > { %v1082_v53 = vrot.slane %v1081_v36, 4 }
 0x150   : > { %v2862_v21 = vpop.permute.xlu1 %726  ;;  %v723_v22 = vpop.permute.xlu0 %722 }
 0x151   : > { %795 = vrot.lane.b32.xlu0 %v723_v22, %s2583_s9  ;;  %v732_v26 = vshrl.u32 %v723_v22, 16  ;;  %v730_v27 = vpack.i.b16 %v723_v22, %v2854_v13  ;;  %v738_v34 = vshrl.u32 %v2862_v21, 16 }
 0x153   : > { %v733_v31 = vpack.i.b16 %v732_v26, %v731_v28  ;;  %v744_v35 = vperm.slane %v730_v27, %v2867_v30 }
 0x155   : > { %v771_v45 = vperm.slane %v733_v31, %v2867_v30  ;;  %v753_v51 = vrot.slane %v744_v35, 4 }
 0x157   : > { %v779_v57 = vrot.slane %v771_v45, 4 }
 0x158   : > { %v1028_v39 = vpop.permute.xlu1 %1027  ;;  %v2872_v40 = vpop.permute.xlu0 %724 }
 0x159   : > { %v1035_v41 = vpack.i.b16 %v1028_v39, %v1025_v14  ;;  %v1037_v42 = vshrl.u32 %v1028_v39, 16  ;;  %v736_v43 = vpack.i.b16 %v2862_v21, %v2872_v40  ;;  %v737_v44 = vshrl.u32 %v2872_v40, 16 }
 0x15b   : > { %v1038_v47 = vpack.i.b16 %v1037_v42, %v1036_v33  ;;  %v1049_v48 = vperm.slane %v1035_v41, %v2867_v30  ;;  %v739_v49 = vpack.i.b16 %v738_v34, %v737_v44  ;;  %v749_v50 = vperm.slane %v736_v43, %v2867_v30  ;;  %v2194_v41 = vld [vmem:[%s3151_s1 + $0x3] ss:$0 sm:$0xff]  ;;  %v2195_v44 = vld [vmem:[%s3151_s1 + $0x2] ss:$0 sm:$0xff] }
 0x15c   : > { %1193 = vperm.xlu1 %2188, %v2194_v41   ;;  %1189 = vperm.xlu2 %2189, %v2195_v44   ;;  %v1156_v44 = vlaneseq }
 0x15d   : > { %v1058_v54 = vrot.slane %v1049_v48, 4  ;;  %v1076_v55 = vperm.slane %v1038_v47, %v2867_v30  ;;  %v750_v56 = vrot.slane %v749_v50, 4  ;;  %v754_v59 = vsel %vm751_vm1, %v749_v50, %v753_v51 }
 0x15e   : > { %v776_v60 = vperm.slane %v739_v49, %v2867_v30  ;;  %v1057_v1 = vsel %vm751_vm1, %v1055_v58, %v1049_v48  ;;  %v762_v7 = vperm.slane %v754_v59, %v2881_v52 }
 0x15f   : > { %v1059_v61 = vsel %vm751_vm1, %v1054_v46, %v1058_v54  ;;  %v1083_v62 = vsel %vm751_vm1, %v1082_v53, %v1076_v55  ;;  %v1084_v63 = vrot.slane %v1076_v55, 4  ;;  %v752_v0 = vsel %vm751_vm1, %v750_v56, %v744_v35 }
 0x160   : > { %v1067_v2 = vperm.slane %v1059_v61, %v2881_v52  ;;  %v1089_v3 = vperm.slane %v1083_v62, %v2881_v52  ;;  %v758_v4 = vperm.slane %v752_v0, %v2881_v52  ;;  %v777_v8 = vrot.slane %v776_v60, 4 }
 0x161   : > { %v1085_v6 = vsel %vm751_vm1, %v1081_v36, %v1084_v63  ;;  %v780_v9 = vsel %vm751_vm1, %v776_v60, %v779_v57  ;;  %v765_v15 = vrot.slane %v762_v7, 4  ;;  %v1063_v18 = vperm.slane %v1057_v1, %v2881_v52 }
 0x162   : > { %v1070_v11 = vrot.slane %v1067_v2, 4  ;;  %v1093_v12 = vperm.slane %v1085_v6, %v2881_v52  ;;  %v763_v14 = vrot.slane %v758_v4, 4  ;;  %v778_v16 = vsel %vm751_vm1, %v777_v8, %v771_v45 }
 0x163   : > { %v788_v17 = vperm.slane %v780_v9, %v2881_v52  ;;  %v1094_v20 = vrot.slane %v1089_v3, 4  ;;  %v766_v23 = vsel %vm751_vm1, 0, %v765_v15  ;;  %v784_v24 = vperm.slane %v778_v16, %v2881_v52 }
 0x164   : > { %v1096_v19 = vrot.slane %v1093_v12, 4  ;;  %v764_v22 = vsel %vm751_vm1, 0, %v763_v14  ;;  %v1071_v25 = vsel %vm751_vm1, 0, %v1070_v11  ;;  %v870_v28 = vrot.slane %v766_v23, 4 }
 0x165   : > { %v791_v27 = vrot.slane %v788_v17, 4  ;;  %v789_v31 = vrot.slane %v784_v24, 4  ;;  %v865_v32 = vsel %vm751_vm1, %v765_v15, %v758_v4  ;;  %v1068_v33 = vrot.slane %v1063_v18, 4 }
 0x166   : > { %v1097_v26 = vsel %vm751_vm1, 0, %v1096_v19  ;;  %v871_v35 = vsel %vm751_vm1, %v870_v28, %v764_v22  ;;  %v1103_v36 = vrot.slane %v1071_v25, 4  ;;  %v1095_v42 = vsel %vm751_vm1, 0, %v1094_v20 }
 0x167   : > { %v1122_v29 = vrot.slane %v1097_v26, 4  ;;  %v792_v34 = vsel %vm751_vm1, 0, %v791_v27  ;;  %v790_v37 = vsel %vm751_vm1, 0, %v789_v31  ;;  %v875_v38 = vperm.slane %v871_v35, %v2867_v30 }
 0x168   : > { %v889_v39 = vrot.slane %v792_v34, 4  ;;  %v869_v43 = vperm.slane %v865_v32, %v2867_v30  ;;  %v884_v46 = vsel %vm751_vm1, %v791_v27, %v784_v24  ;;  %v1069_v49 = vsel %vm751_vm1, 0, %v1068_v33 }
 0x169   : > { %v876_v45 = vrot.slane %v875_v38, 4  ;;  %v1123_v48 = vsel %vm751_vm1, %v1122_v29, %v1095_v42  ;;  %v1104_v53 = vsel %vm751_vm1, %v1103_v36, %v1069_v49  ;;  %v888_v55 = vperm.slane %v884_v46, %v2867_v30 }
 0x16a   : > { %v890_v47 = vsel %vm751_vm1, %v889_v39, %v790_v37  ;;  %v1127_v57 = vperm.slane %v1123_v48, %v2867_v30  ;;  %v1108_v60 = vperm.slane %v1104_v53, %v2867_v30  ;;  %v1117_v62 = vsel %vm751_vm1, %v1096_v19, %v1089_v3 }
 0x16b   : > { %v894_v50 = vperm.slane %v890_v47, %v2867_v30  ;;  %v877_v51 = vsel %vm751_vm1, %v876_v45, %v869_v43  ;;  %v1098_v63 = vsel %vm751_vm1, %v1070_v11, %v1063_v18  ;;  %v1121_v9 = vperm.slane %v1117_v62, %v2867_v30 }
 0x16c   : > { %v881_v54 = vperm.slane %v877_v51, %v2881_v52  ;;  %v1128_v1 = vrot.slane %v1127_v57, 4  ;;  %v1109_v8 = vrot.slane %v1108_v60, 4  ;;  %v1102_v3 = vperm.slane %v1098_v63, %v2867_v30  ;;  %v2196_v57 = vld [vmem:[%s583_s10] ss:$0 sm:$0xff]  ;;  %s2586_s10 = smov 24  }
 0x16d   : > { %v895_v56 = vrot.slane %v894_v50, 4  ;;  %v1157_v45 = vshrl.u32 %v1156_v44, 7  ;;  %v1161_v46 = vand.u32 127, %v1156_v44  ;;  %v1186_v50 = vpop.permute.xlu1 %1185 }
 0x16e   : > { %v882_v58 = vrot.slane %v881_v54, 4  ;;  %v907_v0 = vshrl.u32 %v881_v54, 16  ;;  %v1129_v16 = vsel %vm751_vm1, %v1128_v1, %v1121_v9  ;;  %v1110_v18 = vsel %vm751_vm1, %v1109_v8, %v1102_v3 }
 0x16f   : > { %v896_v59 = vsel %vm751_vm1, %v895_v56, %v888_v55  ;;  %v1133_v19 = vperm.slane %v1129_v16, %v2881_v52  ;;  %v1114_v20 = vperm.slane %v1110_v18, %v2881_v52  ;;  %v1162_v47 = vsub.s32 %v1161_v46, %v1157_v45 }
 0x170   : > { %v900_v61 = vperm.slane %v896_v59, %v2881_v52  ;;  %v883_v2 = vsel %vm751_vm1, 0, %v882_v58 }
 0x171   : > { %v915_v11 = vshrl.u32 %v883_v2, 16  ;;  %v1134_v24 = vrot.slane %v1133_v19, 4  ;;  %v1115_v28 = vrot.slane %v1114_v20, 4  ;;  %v1140_v32 = vshrl.u32 %v1133_v19, 16 }
 0x172   : > { %v901_v4 = vrot.slane %v900_v61, 4  ;;  %v905_v6 = vpack.i.b16 %v900_v61, %v881_v54  ;;  %v908_v7 = vshrl.u32 %v900_v61, 16  ;;  %v1138_v35 = vpack.i.b16 %v1133_v19, %v1114_v20  ;;  %v1182_v61 = vpop.permute.xlu0 %1181 }
 0x173   : > { %v1135_v33 = vsel %vm751_vm1, 0, %v1134_v24  ;;  %v1139_v36 = vshrl.u32 %v1114_v20, 16  ;;  %v1116_v37 = vsel %vm751_vm1, 0, %v1115_v28  ;;  %v1164_v48 = vsub.s32 0, %v1162_v47 }
 0x174   : > { %v902_v10 = vsel %vm751_vm1, 0, %v901_v4  ;;  %v909_v12 = vpack.i.b16 %v908_v7, %v907_v0  ;;  %920 = vst.msk [vmem:[#allocation2] sm:$0xf] %vm919_vm2, %v905_v6  ;;  %v1146_v38 = vshrl.u32 %v1135_v33, 16  ;;  %v1144_v41 = vpack.i.b16 %v1135_v33, %v1116_v37 }
 0x175   : > { %v913_v14 = vpack.i.b16 %v902_v10, %v883_v2  ;;  %v916_v15 = vshrl.u32 %v902_v10, 16  ;;  %v1141_v39 = vpack.i.b16 %v1140_v32, %v1139_v36  ;;  %v1145_v42 = vshrl.u32 %v1116_v37, 16 }
 0x176   : > { %921 = vst.msk [vmem:[#allocation2 + $0x4] sm:$0xf] %vm919_vm2, %v909_v12  ;;  %vm1163_vm4 = vcmp.lt.s32.totalorder %v1162_v47, 0 }
 0x177   : > { %v917_v17 = vpack.i.b16 %v916_v15, %v915_v11  ;;  %922 = vst.msk [vmem:[#allocation2 + $0x8] sm:$0xf] %vm919_vm2, %v913_v14  ;;  %v1147_v43 = vpack.i.b16 %v1146_v38, %v1145_v42  ;;  %v1165_v49 = vsel %vm1163_vm4, %v1164_v48, %v1162_v47 }
 0x178   : > { %v1166_v51 = vcvt.s32.f32 %v1165_v49 }
 0x179   : > { %923 = vst.msk [vmem:[#allocation2 + $0xc] sm:$0xf] %vm919_vm2, %v917_v17 }
 0x17a   : > { %v1167_v54 = vsub.f32 0.0, %v1166_v51 }
 0x17b   : > { %v1148_v22 = vld [vmem:[#allocation2] sm:$0xf] }
 0x17c   : > { %v1205_v23 = vsel %vm1200_vm3, %v1148_v22, 0  ;;  %v1196_v63 = vmul.f32 %v1182_v61, %v1167_v54  ;;  %v1197_v4 = vmul.f32 %v1186_v50, %v1167_v54 }
 0x17d   : > { %1214 = vmatpush.bf16.xpose.msra.mxu2 %v1205_v23  ;;  %v1149_v25 = vld [vmem:[#allocation2 + $0x4] sm:$0xf] }
 0x17e   : > { %v1224_v26 = vsel %vm1200_vm3, %v1149_v25, 0  ;;  %v1150_v27 = vld [vmem:[#allocation2 + $0x8] sm:$0xf] }
 0x17f   : > { %1233 = vmatpush.bf16.xpose.msra.mxu3 %v1224_v26  ;;  %v1243_v29 = vsel %vm1200_vm3, %v1150_v27, 0 }
 0x180   : > { %1252 = vmatpush.bf16.xpose.msrb.mxu0 %v1243_v29  ;;  %v1151_v31 = vld [vmem:[#allocation2 + $0xc] sm:$0xf] }
 0x181   : > { %v1262_v34 = vsel %vm1200_vm3, %v1151_v31, 0 }
 0x182   : > { %1271 = vmatpush.bf16.xpose.msrb.mxu1 %v1262_v34 }
 0x184   : > { %1985 = vmatmul.msk.bf16.vlgmr.msra.gmra.mxu2 %vm1200_vm3, %v1138_v35 }
 0x186   : > { %1986 = vmatmul.msk.bf16.vlgmr.msra.gmra.mxu3 %vm1200_vm3, %v1141_v39 }
 0x187   : > { %1987 = vmatmul.msk.bf16.vlgmr.msrb.gmra.mxu0 %vm1200_vm3, %v1144_v41 }
 0x189   : > { %1988 = vmatmul.msk.bf16.vlgmr.msrb.gmra.mxu1 %vm1200_vm3, %v1147_v43 }
 0x1b6   : > { %v1190_v53 = vpop.permute.xlu2 %1189 }
 0x1b7   : > { %v1198_v55 = vmul.f32 %v1190_v53, %v1167_v54 }
 0x1c3   : > { %v796_v20 = vpop.permute.xlu0 %795 }
 0x1c4   : > { %v805_v37 = vshrl.u32 %v796_v20, 16 }
 0x1ce   : > { %v1194_v56 = vpop.permute.xlu1 %1193 }
 0x1cf   : > { %v1199_v59 = vmul.f32 %v1194_v56, %v1167_v54 }
 0x204   : > { %v1254_v58 = vpop.f32.mrf.mxu0 }
 0x205   : > { %v1255_v60 = vadd.f32 %v1254_v58, %v1198_v55 }
 0x206   : > { %v1273_v62 = vpop.f32.mrf.mxu1 }
 0x207   : > { %v1274_v0 = vadd.f32 %v1273_v62, %v1199_v59  ;;  %v1216_v1 = vpop.f32.mrf.mxu2  ;;  %v1283_v2 = vadd.f32 %v2196_v57, %v1255_v60 }
 0x208   : > { %v1217_v10 = vadd.f32 %v1216_v1, %v1196_v63 }
 0x209   : > { %v1235_v6 = vpop.f32.mrf.mxu3  ;;  %v1291_v7 = vsel %vm1200_vm3, %v1283_v2, -inf  ;;  %v1284_v8 = vadd.f32 %v2196_v57, %v1274_v0 }
 0x20a   : > { %v1236_v9 = vadd.f32 %v1235_v6, %v1197_v4  ;;  %1292 = vmax.xlane.f32.xlu1 %v1291_v7  ;;  %v1281_v17 = vadd.f32 %v2196_v57, %v1217_v10 }
 0x20b   : > { %v1294_v12 = vsel %vm1200_vm3, %v1284_v8, -inf }
 0x20c   : > { %1295 = vmax.xlane.f32.xlu2 %v1294_v12  ;;  %v1256_v3 = vpop.f32.mrf.mxu0  ;;  %v1282_v14 = vadd.f32 %v2196_v57, %v1236_v9  ;;  %v1285_v19 = vsel %vm1200_vm3, %v1281_v17, -inf }
 0x20e   : > { %v1275_v11 = vpop.f32.mrf.mxu1  ;;  %v1288_v15 = vsel %vm1200_vm3, %v1282_v14, -inf }
 0x20f   : > { %1289 = vmax.xlane.f32.xlu0 %v1288_v15  ;;  %v1218_v16 = vpop.f32.mrf.mxu2 }
 0x211   : > { %v1237_v18 = vpop.f32.mrf.mxu3 }
 0x214   : > { %1286 = vmax.xlane.f32.xlu2 %v1285_v19 }
 0x223   : > { %799 = vrot.lane.b32.xlu0 %v2862_v21, %s2583_s9  ;;  %797 = vrot.lane.b32.xlu1 %v2872_v40, %s2583_s9 }
 0x22c   : > { %793 = vrot.lane.b32.xlu2 %v2854_v13, %s2583_s9  ;;  %s676_s9 = scalar_lea.vmem [#allocation18], %s1959_s21  ;;  %s2487_s21 = scalar_lea.hbm %s3206_s14, 8 }
 0x22d   : > { %s1786_s8 = sshll.u32 %s676_s9, 4  ;;  %s1787_s8 = int_to_ptr.vmem [resolvable:$true] %s1786_s8 }
 0x27d   : > { %v1293_v22 = vpop.xlane.xlu1 %1292 }
 0x27e   : > { %v1299_v23 = vsub.f32 %v1283_v2, %v1293_v22 }
 0x27f   : > { %v1296_v24 = vpop.xlane.xlu2 %1295 }
 0x280   : > { %v1305_v25 = vmul.f32 1.442695, %v1299_v23  ;;  %v1300_v32 = vsub.f32 %v1284_v8, %v1296_v24 }
 0x282   : > { %2203 = vpow2.f32 %v1305_v25  ;;  %v1290_v26 = vpop.xlane.xlu0 %1289  ;;  %v1307_v34 = vmul.f32 1.442695, %v1300_v32 }
 0x283   : > { %v1298_v27 = vsub.f32 %v1282_v14, %v1290_v26 }
 0x285   : > { %v1303_v28 = vmul.f32 1.442695, %v1298_v27 }
 0x287   : > { %2205 = vpow2.f32 %v1303_v28  ;;  %v1287_v29 = vpop.xlane.xlu2 %1286 }
 0x288   : > { %v2970_v31 = vpop.eup %2203  ;;  %v1297_v21 = vsub.f32 %v1281_v17, %v1287_v29 }
 0x289   : > { %v1315_v40 = vsel %vm1200_vm3, %v2970_v31, 0.0 }
 0x28a   : > { %v1301_v33 = vmul.f32 1.442695, %v1297_v21  ;;  %1316 = vadd.xlane.f32.xlu0 %v1315_v40 }
 0x28c   : > { %2207 = vpow2.f32 %v1301_v33 }
 0x28d   : > { %v2974_v13 = vpop.eup %2205  ;;  %2209 = vpow2.f32 %v1307_v34 }
 0x28e   : > { %v1312_v35 = vsel %vm1200_vm3, %v2974_v13, 0.0 }
 0x28f   : > { %v794_v36 = vpop.permute.xlu2 %793  ;;  %1313 = vadd.xlane.f32.xlu1 %v1312_v35 }
 0x290   : > { %v803_v38 = vpack.i.b16 %v796_v20, %v794_v36  ;;  %v804_v39 = vshrl.u32 %v794_v36, 16 }
 0x292   : > { %v2978_v41 = vpop.eup %2207  ;;  %v806_v42 = vpack.i.b16 %v805_v37, %v804_v39  ;;  %v817_v44 = vperm.slane %v803_v38, %v2867_v30 }
 0x293   : > { %v1309_v43 = vsel %vm1200_vm3, %v2978_v41, 0.0  ;;  %v2984_v51 = vpop.eup %2209 }
 0x294   : > { %1310 = vadd.xlane.f32.xlu2 %v1309_v43  ;;  %v843_v47 = vperm.slane %v806_v42, %v2867_v30  ;;  %v825_v53 = vrot.slane %v817_v44, 4  ;;  %v1318_v61 = vsel %vm1200_vm3, %v2984_v51, 0.0 }
 0x295   : > { %v800_v45 = vpop.permute.xlu0 %799  ;;  %v798_v46 = vpop.permute.xlu1 %797 }
 0x296   : > { %v811_v48 = vshrl.u32 %v800_v45, 16  ;;  %v809_v49 = vpack.i.b16 %v800_v45, %v798_v46  ;;  %v810_v50 = vshrl.u32 %v798_v46, 16  ;;  %v851_v56 = vrot.slane %v843_v47, 4 }
 0x298   : > { %v812_v54 = vpack.i.b16 %v811_v48, %v810_v50  ;;  %v822_v55 = vperm.slane %v809_v49, %v2867_v30 }
 0x29a   : > { %v823_v57 = vrot.slane %v822_v55, 4  ;;  %v826_v58 = vsel %vm751_vm1, %v822_v55, %v825_v53  ;;  %v848_v59 = vperm.slane %v812_v54, %v2867_v30 }
 0x29b   : > { %v834_v60 = vperm.slane %v826_v58, %v2881_v52 }
 0x29c   : > { %v824_v62 = vsel %vm751_vm1, %v823_v57, %v817_v44  ;;  %v849_v63 = vrot.slane %v848_v59, 4  ;;  %v852_v0 = vsel %vm751_vm1, %v848_v59, %v851_v56  ;;  %1319 = vadd.xlane.f32.xlu2 %v1318_v61 }
 0x29d   : > { %v830_v1 = vperm.slane %v824_v62, %v2881_v52  ;;  %v837_v2 = vrot.slane %v834_v60, 4  ;;  %v860_v4 = vperm.slane %v852_v0, %v2881_v52 }
 0x29e   : > { %v850_v6 = vsel %vm751_vm1, %v849_v63, %v843_v47 }
 0x29f   : > { %v835_v7 = vrot.slane %v830_v1, 4  ;;  %v838_v8 = vsel %vm751_vm1, 0, %v837_v2  ;;  %v856_v9 = vperm.slane %v850_v6, %v2881_v52  ;;  %v863_v10 = vrot.slane %v860_v4, 4 }
 0x2a0   : > { %v929_v12 = vrot.slane %v838_v8, 4  ;;  %v924_v15 = vsel %vm751_vm1, %v837_v2, %v830_v1 }
 0x2a1   : > { %v836_v3 = vsel %vm751_vm1, 0, %v835_v7  ;;  %v861_v14 = vrot.slane %v856_v9, 4  ;;  %v864_v11 = vsel %vm751_vm1, 0, %v863_v10  ;;  %v943_v20 = vsel %vm751_vm1, %v863_v10, %v856_v9 }
 0x2a2   : > { %v930_v16 = vsel %vm751_vm1, %v929_v12, %v836_v3  ;;  %v948_v17 = vrot.slane %v864_v11, 4  ;;  %v928_v23 = vperm.slane %v924_v15, %v2867_v30  ;;  %v947_v27 = vperm.slane %v943_v20, %v2867_v30 }
 0x2a3   : > { %v862_v18 = vsel %vm751_vm1, 0, %v861_v14  ;;  %v934_v19 = vperm.slane %v930_v16, %v2867_v30 }
 0x2a4   : > { %v949_v22 = vsel %vm751_vm1, %v948_v17, %v862_v18 }
 0x2a5   : > { %v935_v24 = vrot.slane %v934_v19, 4  ;;  %v953_v25 = vperm.slane %v949_v22, %v2867_v30 }
 0x2a7   : > { %v936_v26 = vsel %vm751_vm1, %v935_v24, %v928_v23  ;;  %v954_v28 = vrot.slane %v953_v25, 4 }
 0x2a8   : > { %v940_v29 = vperm.slane %v936_v26, %v2881_v52 }
 0x2a9   : > { %v955_v21 = vsel %vm751_vm1, %v954_v28, %v947_v27 }
 0x2aa   : > { %v941_v40 = vrot.slane %v940_v29, 4  ;;  %v959_v32 = vperm.slane %v955_v21, %v2881_v52  ;;  %v966_v33 = vshrl.u32 %v940_v29, 16 }
 0x2ac   : > { %v942_v34 = vsel %vm751_vm1, 0, %v941_v40  ;;  %v960_v35 = vrot.slane %v959_v32, 4  ;;  %v964_v36 = vpack.i.b16 %v959_v32, %v940_v29  ;;  %v967_v37 = vshrl.u32 %v959_v32, 16 }
 0x2ad   : > { %v974_v43 = vshrl.u32 %v942_v34, 16 }
 0x2ae   : > { %v961_v38 = vsel %vm751_vm1, 0, %v960_v35  ;;  %v968_v39 = vpack.i.b16 %v967_v37, %v966_v33  ;;  %978 = vst.msk [vmem:[#allocation3] sm:$0xf] %vm919_vm2, %v964_v36 }
 0x2af   : > { %v972_v42 = vpack.i.b16 %v961_v38, %v942_v34  ;;  %v975_v44 = vshrl.u32 %v961_v38, 16 }
 0x2b0   : > { %979 = vst.msk [vmem:[#allocation3 + $0x4] sm:$0xf] %vm919_vm2, %v968_v39 }
 0x2b1   : > { %v976_v45 = vpack.i.b16 %v975_v44, %v974_v43  ;;  %980 = vst.msk [vmem:[#allocation3 + $0x8] sm:$0xf] %vm919_vm2, %v972_v42 }
 0x2b3   : > { %981 = vst.msk [vmem:[#allocation3 + $0xc] sm:$0xf] %vm919_vm2, %v976_v45 }
 0x2b5   : > { %v1152_v46 = vld [vmem:[#allocation3] sm:$0xf] }
 0x2b6   : > { %v1338_v47 = vsel %vm1336_vm5, %v1152_v46, 0 }
 0x2b7   : > { %1347 = vmatpush.bf16.msrb.mxu2 %v1338_v47  ;;  %v1153_v48 = vld [vmem:[#allocation3 + $0x4] sm:$0xf] }
 0x2b8   : > { %v1357_v49 = vsel %vm1336_vm5, %v1153_v48, 0  ;;  %v1154_v50 = vld [vmem:[#allocation3 + $0x8] sm:$0xf] }
 0x2b9   : > { %1366 = vmatpush.bf16.msrb.mxu3 %v1357_v49  ;;  %v1376_v53 = vsel %vm1336_vm5, %v1154_v50, 0 }
 0x2ba   : > { %1385 = vmatpush.bf16.msra.mxu0 %v1376_v53  ;;  %v1155_v54 = vld [vmem:[#allocation3 + $0xc] sm:$0xf] }
 0x2bb   : > { %v1395_v55 = vsel %vm1336_vm5, %v1155_v54, 0 }
 0x2bc   : > { %1404 = vmatpush.bf16.msra.mxu1 %v1395_v55 }
 0x2fd   : > { %v1317_v56 = vpop.xlane.xlu0 %1316 }
 0x2fe   : > { %2211 = vrcp.f32 %v1317_v56 }
 0x302   : > { %v1314_v57 = vpop.xlane.xlu1 %1313 }
 0x303   : > { %2213 = vrcp.f32 %v1314_v57 }
 0x304   : > { %v2212_v58 = vpop.eup %2211 }
 0x305   : > { %v1327_v59 = vmul.f32 %v2212_v58, %v2970_v31 }
 0x307   : > { %v1331_v60 = vpack.c.bf16 %v1327_v59, %v1327_v59  ;;  %v1311_v61 = vpop.xlane.xlu2 %1310 }
 0x308   : > { %2215 = vrcp.f32 %v1311_v61 }
 0x309   : > { %v2214_v62 = vpop.eup %2213  ;;  %1991 = vmatmul.msk.bf16.vlgmr.msra.gmra.mxu0 %vm1200_vm3, %v1331_v60 }
 0x30a   : > { %v1326_v63 = vmul.f32 %v2214_v62, %v2974_v13 }
 0x30c   : > { %v1330_v0 = vpack.c.bf16 %v1326_v63, %v1326_v63 }
 0x30e   : > { %v2216_v1 = vpop.eup %2215  ;;  %1990 = vmatmul.msk.bf16.vlgmr.msrb.gmra.mxu3 %vm1200_vm3, %v1330_v0 }
 0x30f   : > { %v1325_v2 = vmul.f32 %v2216_v1, %v2978_v41  ;;  %v1320_v4 = vpop.xlane.xlu2 %1319 }
 0x310   : > { %2217 = vrcp.f32 %v1320_v4 }
 0x311   : > { %v1329_v6 = vpack.c.bf16 %v1325_v2, %v1325_v2 }
 0x313   : > { %1989 = vmatmul.msk.bf16.vlgmr.msrb.gmra.mxu2 %vm1200_vm3, %v1329_v6 }
 0x316   : > { %v2218_v31 = vpop.eup %2217 }
 0x317   : > { %v1328_v7 = vmul.f32 %v2218_v31, %v2984_v51 }
 0x319   : > { %v1332_v8 = vpack.c.bf16 %v1328_v7, %v1328_v7 }
 0x31b   : > { %1992 = vmatmul.msk.bf16.vlgmr.msra.gmra.mxu1 %vm1200_vm3, %v1332_v8 }
 0x386   : > { %v1387_v9 = vpop.f32.mrf.mxu0 }
 0x387   : > { %v1410_v12 = vrot.slane %v1387_v9, 4 }
 0x38e   : > { %v1389_v10 = vpop.f32.mrf.mxu0 }
 0x391   : > { %v1368_v13 = vpop.f32.mrf.mxu3 }
 0x392   : > { %v1425_v14 = vrot.slane %v1368_v13, 4 }
 0x396   : > { %v1349_v3 = vpop.f32.mrf.mxu2 }
 0x397   : > { %v1412_v11 = vsel %vm751_vm1, %v1410_v12, %v1349_v3  ;;  %v1413_v41 = vrot.slane %v1349_v3, 4 }
 0x398   : > { %v1418_v15 = vperm.slane %v1412_v11, %v2867_v30  ;;  %v1406_v16 = vpop.f32.mrf.mxu1 }
 0x399   : > { %v1414_v17 = vsel %vm751_vm1, %v1387_v9, %v1413_v41  ;;  %v1423_v18 = vrot.slane %v1406_v16, 4  ;;  %v1426_v51 = vsel %vm751_vm1, %v1406_v16, %v1425_v14  ;;  %v1370_v19 = vpop.f32.mrf.mxu3 }
 0x39a   : > { %v1422_v20 = vperm.slane %v1414_v17, %v2867_v30  ;;  %v1434_v22 = vperm.slane %v1426_v51, %v2867_v30  ;;  %v1437_v24 = vrot.slane %v1418_v15, 4 }
 0x39b   : > { %v1424_v23 = vsel %vm751_vm1, %v1423_v18, %v1368_v13 }
 0x39c   : > { %v1449_v25 = vrot.slane %v1422_v20, 4  ;;  %v1430_v26 = vperm.slane %v1424_v23, %v2867_v30  ;;  %v1447_v27 = vrot.slane %v1434_v22, 4  ;;  %v2040_v23 = vld [vmem:[#allocation16 + $0x8] sm:$0xff] }
 0x39d   : > { %1644 = vmatpush.bf16.msra.mxu3 %v2040_v23 }
 0x39e   : > { %v1435_v28 = vrot.slane %v1430_v26, 4  ;;  %v1438_v29 = vsel %vm751_vm1, %v1430_v26, %v1437_v24  ;;  %v1448_v21 = vsel %vm751_vm1, %v1447_v27, %v1422_v20  ;;  %v1450_v40 = vsel %vm751_vm1, %v1434_v22, %v1449_v25  ;;  %v1351_v32 = vpop.f32.mrf.mxu2  ;;  %v2039_v24 = vld [vmem:[#allocation16] sm:$0xff]  ;;  %v2197_v25 = vld [vmem:[#allocation12] ss:$0 sm:$0xff] }
 0x39f   : > { %v1446_v33 = vperm.slane %v1438_v29, %v2881_v52  ;;  %v1454_v34 = vperm.slane %v1448_v21, %v2881_v52  ;;  %v1458_v35 = vperm.slane %v1450_v40, %v2881_v52  ;;  %v1575_v26 = vunpack.c.l.bf16 %v2849_v5 }
 0x3a0   : > { %v1436_v36 = vsel %vm751_vm1, %v1435_v28, %v1418_v15  ;;  %v1408_v37 = vpop.f32.mrf.mxu1  ;;  %v2037_v15 = vld [vmem:[%s3157_s7] sm:$0xff] }
 0x3a1   : > { %v1442_v38 = vperm.slane %v1436_v36, %v2881_v52  ;;  %v1461_v39 = vrot.slane %v1446_v33, 4  ;;  %v1463_v42 = vrot.slane %v1454_v34, 4  ;;  %v1465_v43 = vrot.slane %v1458_v35, 4  ;;  %1645 = vmatpush.bf16.msra.mxu3 %v2039_v24 }
 0x3a3   : > { %v1459_v44 = vrot.slane %v1442_v38, 4  ;;  %v1462_v45 = vsel %vm751_vm1, 0.0, %v1461_v39  ;;  %v1466_v46 = vsel %vm751_vm1, 0.0, %v1465_v43  ;;  %v1478_v48 = vsel %vm751_vm1, %v1465_v43, %v1454_v34 }
 0x3a4   : > { %v1472_v47 = vrot.slane %v1462_v45, 4  ;;  %v1483_v49 = vrot.slane %v1466_v46, 4  ;;  %v1467_v50 = vsel %vm751_vm1, %v1461_v39, %v1442_v38  ;;  %v1464_v53 = vsel %vm751_vm1, 0.0, %v1463_v42 }
 0x3a5   : > { %v1460_v54 = vsel %vm751_vm1, 0.0, %v1459_v44  ;;  %v1471_v55 = vperm.slane %v1467_v50, %v2867_v30  ;;  %v1482_v56 = vperm.slane %v1478_v48, %v2867_v30  ;;  %v2590_v34 = vmov 32.0  }
 0x3a6   : > { %v1473_v57 = vsel %vm751_vm1, %v1472_v47, %v1460_v54  ;;  %v1484_v58 = vsel %vm751_vm1, %v1483_v49, %v1464_v53  ;;  %2219 = vrcp.f32 %v2590_v34 }
 0x3a7   : > { %v1477_v59 = vperm.slane %v1473_v57, %v2867_v30  ;;  %v1488_v60 = vperm.slane %v1484_v58, %v2867_v30  ;;  %v1491_v61 = vrot.slane %v1471_v55, 4  ;;  %v1503_v62 = vrot.slane %v1482_v56, 4 }
 0x3a9   : > { %v1492_v63 = vsel %vm751_vm1, %v1477_v59, %v1491_v61  ;;  %v1504_v0 = vsel %vm751_vm1, %v1488_v60, %v1503_v62  ;;  %v1489_v1 = vrot.slane %v1477_v59, 4  ;;  %v1501_v2 = vrot.slane %v1488_v60, 4  ;;  %v2198_v60 = vld [vmem:[#allocation13] ss:$0 sm:$0xff] }
 0x3aa   : > { %v1500_v4 = vperm.slane %v1492_v63, %v2881_v52  ;;  %v1512_v6 = vperm.slane %v1504_v0, %v2881_v52  ;;  %v2199_v63 = vld [vmem:[#allocation15] ss:$0 sm:$0xff] }
 0x3ab   : > { %v1490_v31 = vsel %vm751_vm1, %v1489_v1, %v1471_v55  ;;  %v1502_v7 = vsel %vm751_vm1, %v1501_v2, %v1482_v56 }
 0x3ac   : > { %v1519_v8 = vrot.slane %v1500_v4, 4  ;;  %v1517_v9 = vrot.slane %v1512_v6, 4  ;;  %v1496_v30 = vperm.slane %v1490_v31, %v2881_v52  ;;  %v1508_v10 = vperm.slane %v1502_v7, %v2881_v52  ;;  %v2038_v52 = vld [vmem:[%s3157_s7 + $0x8] sm:$0xff]  ;;  %v2220_v35 = vpop.eup %2219  ;;  %v2041_v7 = vld [vmem:[%s3162_s12] sm:$0xff] }
 0x3ad   : > { %1568 = vmatpush.bf16.msra.mxu2 %v2038_v52  ;;  %v1583_v36 = vmul.f32 32.0, %v2220_v35  ;;  %vm1587_vm8 = vweird.f32 %v2220_v35  ;;  %v2042_v31 = vld [vmem:[%s3162_s12 + $0x8] sm:$0xff] }
 0x3ae   : > { %v1520_v13 = vsel %vm751_vm1, %v1512_v6, %v1519_v8  ;;  %v1518_v12 = vsel %vm751_vm1, %v1517_v9, %v1500_v4  ;;  %v1513_v3 = vrot.slane %v1508_v10, 4  ;;  %v1515_v14 = vrot.slane %v1496_v30, 4  ;;  %v2044_v4 = vld [vmem:[%s3162_s12 + $0x18] sm:$0xff]  ;;  %v2043_v6 = vld [vmem:[%s3162_s12 + $0x10] sm:$0xff] }
 0x3af   : > { %1530 = vrot.lane.b32.xlu2 %v1520_v13, %s2586_s10  ;;  %1526 = vrot.lane.b32.xlu0 %v1518_v12, %s2587_s18  ;;  %v1584_v37 = vsub.f32 1.0, %v1583_v36  ;;  %s3203_s10 = sld [smem:[#allocation28_spill]] }
 0x3b0   : > { %v1516_v11 = vsel %vm751_vm1, %v1508_v10, %v1515_v14  ;;  %v1514_v41 = vsel %vm751_vm1, %v1513_v3, %v1496_v30  ;;  %1725 = vmatpush.bf16.msrb.mxu1 %v2044_v4 }
 0x3b1   : > { %1522 = vrot.lane.b32.xlu1 %v1516_v11, %s2588_s24  ;;  %1569 = vmatpush.bf16.msra.mxu2 %v2037_v15  ;;  %v1585_v38 = vmul.f32 %v2220_v35, %v1584_v37 }
 0x3b3   : > { %v1586_v5 = vadd.f32 %v2220_v35, %v1585_v38 }
 0x3b4   : > { %1726 = vmatpush.bf16.msrb.mxu1 %v2043_v6 }
 0x3b5   : > { %v3079_v42 = vsel %vm1587_vm8, %v2220_v35, %v1586_v5  ;;  %s2030_s18 = sshll.u32 %s3203_s10, 2 }
 0x3b6   : > { %s1784_s15 = scalar_lea.hbm %s3206_s14, %s2030_s18 }
 0x3b7   : > { %1653 = vrot.lane.b32.xlu2 %v2040_v23, %s2589_s27  ;;  %s1788_s11 = sshll.u32 %s1784_s15, 4  ;;  %s1789_s11 = int_to_ptr.hbm [resolvable:$true] %s1788_s11 }
 0x3b8   : > { %1727 = vmatpush.bf16.msrb.mxu1 %v2042_v31  ;;  %s2481_s0 = sshra.s32 %s1789_s11, 4  ;;  %s2482_s0 = int_to_ptr.hbm [resolvable:$true] %s2481_s0 }
 0x3b9   : > { %s2483_s4 = scalar_lea.hbm %s2482_s0, 4  ;;  %p2488_p10 = scmp.lt.s32.totalorder %s2482_s0, %s3206_s14 }
 0x3ba   : > { %p2484_p1 = scmp.ne.s32.totalorder %s2482_s0, %s2483_s4  ;;  %p2489_p11 = scmp.lt.s32.totalorder %s2487_s21, %s2483_s4 }
 0x3bc   : > { %1728 = vmatpush.bf16.msrb.mxu1 %v2041_v7  ;;  %p2485_p3 = pnand %p2484_p1, %p2778_p2  ;;  %p2490_p12 = por %p2489_p11, %p2488_p10 }
 0x3be   : > { %p2486_p9 = pneg %p2485_p3 }
 0x3bf   : > { %1651 = vrot.lane.b32.xlu2 %v2039_v24, %s2589_s27  ;;  %s3205_s27 = sld [smem:[#allocation41_spill]] }
 0x3c0   : > { %p2491_p13 = pnand %p2490_p12, %p2486_p9 }
 0x409   : > { %v1531_v51 = vpop.permute.xlu2 %1530 }
 0x411   : > { %v1654_v39 = vpop.permute.xlu2 %1653 }
 0x412   : > { %1663 = vmatpush.bf16.msrb.mxu0 %v1654_v39 }
 0x419   : > { %v1652_v44 = vpop.permute.xlu2 %1651 }
 0x41a   : > { %1664 = vmatpush.bf16.msrb.mxu0 %v1652_v44 }
 0x421   : > { %v1527_v17 = vpop.permute.xlu0 %1526 }
 0x423   : > { %v1523_v16 = vpop.permute.xlu1 %1522 }
 0x424   : > { %v1533_v18 = vsel %vm1200_vm3, %v1514_v41, %v1523_v16 }
 0x425   : > { %v1535_v19 = vsel %vm1534_vm6, %v1533_v18, %v1527_v17 }
 0x426   : > { %v1537_v20 = vsel %vm1536_vm7, %v1535_v19, %v1531_v51  ;;  %v2200_v51 = vld [vmem:[%s3202_s30] ss:$0 sm:$0xff] }
 0x427   : > { %v1538_v22 = vpack.c.bf16 %v1537_v20, %v1537_v20 }
 0x429   : > { %2001 = vmatmul.msk.bf16.vlgmr.msra.gmra.mxu2 %vm703_vm0, %v1538_v22 }
 0x4ac   : > { %v1571_v27 = vpop.f32.mrf.mxu2 }
 0x4ad   : > { %v1572_v28 = vadd.f32 %v2197_v25, %v1571_v27 }
 0x4af   : > { %v1576_v29 = vadd.f32 %v1575_v26, %v1572_v28 }
 0x4b1   : > { %v1579_v21 = vsel %vm703_vm0, %v1576_v29, 0.0  ;;  %v1590_v40 = vmul.f32 %v1576_v29, %v1576_v29 }
 0x4b2   : > { %1580 = vadd.xlane.f32.xlu0 %v1579_v21 }
 0x4b3   : > { %v1591_v32 = vsel %vm703_vm0, %v1590_v40, 0.0 }
 0x4b4   : > { %v1573_v33 = vpop.f32.mrf.mxu2  ;;  %1592 = vadd.xlane.f32.xlu1 %v1591_v32 }
 0x525   : > { %v1581_v43 = vpop.xlane.xlu0 %1580 }
 0x526   : > { %v1589_v45 = vmul.f32 %v3079_v42, %v1581_v43  ;;  %v2201_v43 = vld [vmem:[%s3204_s6] ss:$0 sm:$0xff] }
 0x527   : > { %v1593_v46 = vpop.xlane.xlu1 %1592 }
 0x528   : > { %v1595_v47 = vmul.f32 %v1589_v45, %v1589_v45  ;;  %v1594_v48 = vmul.f32 %v1593_v46, %v3079_v42  ;;  %v1597_v59 = vsub.f32 %v1576_v29, %v1589_v45  ;;  %v2202_v45 = vld [vmem:[%s3205_s27] ss:$0 sm:$0xff] }
 0x52a   : > { %v1596_v49 = vsub.f32 %v1594_v48, %v1595_v47 }
 0x52c   : > { %v1598_v50 = vadd.f32 1e-12, %v1596_v49 }
 0x52e   : > { %2221 = vrsqrt.f32 %v1598_v50  ;;  %vm1605_vm10 = vweird.f32 %v1598_v50 }
 0x534   : > { %v2222_v53 = vpop.eup %2221 }
 0x535   : > { %v1600_v54 = vmul.f32 %v2222_v53, %v1598_v50  ;;  %vm1606_vm9 = vweird.f32 %v2222_v53 }
 0x536   : > { %vm1607_vm11 = vmor %vm1605_vm10, %vm1606_vm9 }
 0x537   : > { %v1601_v55 = vmul.f32 %v2222_v53, %v1600_v54 }
 0x539   : > { %v1602_v56 = vmul.f32 0.5, %v1601_v55 }
 0x53b   : > { %v1603_v57 = vsub.f32 1.5, %v1602_v56 }
 0x53d   : > { %v1604_v58 = vmul.f32 %v2222_v53, %v1603_v57 }
 0x53f   : > { %v1608_v61 = vsel %vm1607_vm11, %v2222_v53, %v1604_v58 }
 0x540   : > { %v1609_v62 = vmul.f32 %v1608_v61, %v1597_v59 }
 0x542   : > { %v1613_v0 = vmul.f32 %v2198_v60, %v1609_v62 }
 0x544   : > { %v1617_v1 = vadd.f32 %v2199_v63, %v1613_v0 }
 0x546   : > { %v1618_v2 = vpack.c.bf16 %v1617_v1, %v1617_v1 }
 0x548   : > { %2010 = vmatmul.msk.bf16.vlgmr.msra.gmra.mxu3 %vm703_vm0, %v1618_v2  ;;  %2011 = vmatmul.msk.bf16.vlgmr.msrb.gmra.mxu0 %vm703_vm0, %v1618_v2 }
 0x5c5   : > { %v1666_v8 = vpop.f32.mrf.mxu0 }
 0x5cb   : > { %v1647_v9 = vpop.f32.mrf.mxu3 }
 0x5cc   : > { %v1670_v30 = vmul.f32 %v1647_v9, %v1647_v9 }
 0x5cd   : > { %v1668_v10 = vpop.f32.mrf.mxu0 }
 0x5ce   : > { %v1671_v13 = vmul.f32 %v1670_v30, %v1647_v9 }
 0x5d0   : > { %v1672_v12 = vmul.f32 0.044715, %v1671_v13 }
 0x5d2   : > { %v1673_v3 = vadd.f32 %v1672_v12, %v1647_v9 }
 0x5d3   : > { %v1649_v14 = vpop.f32.mrf.mxu3 }
 0x5d4   : > { %v1674_v11 = vmul.f32 0.7978846, %v1673_v3 }
 0x5d6   : > { %2223 = vtanh.f32 %v1674_v11 }
 0x5dc   : > { %v2224_v41 = vpop.eup %2223 }
 0x5dd   : > { %v1676_v52 = vadd.f32 1.0, %v2224_v41 }
 0x5df   : > { %v1677_v15 = vmul.f32 0.5, %v1676_v52 }
 0x5e1   : > { %v1678_v16 = vmul.f32 %v1677_v15, %v1647_v9 }
 0x5e3   : > { %v1679_v17 = vmul.f32 %v1678_v16, %v1666_v8 }
 0x5e5   : > { %v1680_v18 = vpack.c.bf16 %v1679_v17, %v1679_v17 }
 0x5e7   : > { %2028 = vmatmul.msk.bf16.vlgmr.msrb.gmra.mxu1 %vm1717_vm12, %v1680_v18 }
 0x664   : > { %v1730_v19 = vpop.f32.mrf.mxu1 }
 0x665   : > { %v1731_v20 = vadd.f32 %v2200_v51, %v1730_v19 }
 0x667   : > { %v1734_v22 = vadd.f32 %v1731_v20, %v1617_v1 }
 0x669   : > { %v1737_v23 = vsel %vm703_vm0, %v1734_v22, 0.0  ;;  %v1741_v24 = vmul.f32 %v1734_v22, %v1734_v22 }
 0x66a   : > { %1738 = vadd.xlane.f32.xlu2 %v1737_v23 }
 0x66b   : > { %v1742_v25 = vsel %vm703_vm0, %v1741_v24, 0.0  ;;  %vm1770_vm0 = vcmask 257024  }
 0x66c   : > { %v1732_v26 = vpop.f32.mrf.mxu1  ;;  %1743 = vadd.xlane.f32.xlu0 %v1742_v25 }
 0x6dd   : > { %v1739_v27 = vpop.xlane.xlu2 %1738 }
 0x6de   : > { %v1740_v28 = vmul.f32 %v1739_v27, %v3079_v42 }
 0x6df   : > { %v1744_v29 = vpop.xlane.xlu0 %1743 }
 0x6e0   : > { %v1746_v21 = vmul.f32 %v1740_v28, %v1740_v28  ;;  %v1745_v40 = vmul.f32 %v1744_v29, %v3079_v42  ;;  %v1748_v5 = vsub.f32 %v1734_v22, %v1740_v28 }
 0x6e2   : > { %v1747_v32 = vsub.f32 %v1745_v40, %v1746_v21 }
 0x6e4   : > { %v1749_v33 = vadd.f32 1e-12, %v1747_v32 }
 0x6e6   : > { %2225 = vrsqrt.f32 %v1749_v33  ;;  %vm1756_vm14 = vweird.f32 %v1749_v33 }
 0x6ec   : > { %v2226_v34 = vpop.eup %2225 }
 0x6ed   : > { %v1751_v35 = vmul.f32 %v2226_v34, %v1749_v33  ;;  %vm1757_vm13 = vweird.f32 %v2226_v34 }
 0x6ee   : > { %vm1758_vm15 = vmor %vm1756_vm14, %vm1757_vm13 }
 0x6ef   : > { %v1752_v36 = vmul.f32 %v2226_v34, %v1751_v35 }
 0x6f1   : > { %v1753_v37 = vmul.f32 0.5, %v1752_v36 }
 0x6f3   : > { %v1754_v38 = vsub.f32 1.5, %v1753_v37 }
 0x6f5   : > { %v1755_v39 = vmul.f32 %v2226_v34, %v1754_v38 }
 0x6f7   : > { %v1759_v42 = vsel %vm1758_vm15, %v2226_v34, %v1755_v39 }
 0x6f8   : > { %v1760_v44 = vmul.f32 %v1759_v42, %v1748_v5 }
 0x6fa   : > { %v1764_v46 = vmul.f32 %v2201_v43, %v1760_v44 }
 0x6fc   : > { %v1768_v47 = vadd.f32 %v2202_v45, %v1764_v46 }
 0x6fe   : > { %v1769_v48 = vpack.c.bf16 %v1768_v47, %v1768_v47 }
 0x700   : > { %1771 = vst.msk [vmem:[%s676_s9] sm:$0xf] %vm1770_vm0, %v1769_v48 }
 0x701   : > { %2494 = shalt.err (!%p2491_p13)
}
 0x702   : > { %2073 = dma.vmem_to_hbm [thread:$0]  (%p2778_p2), %s1787_s8, 64, %s1789_s11, %s1773_s23  }
 0x703 PF: > { %s3207_s29 = sld [smem:[#allocation26_spill]]  ;;  %p2102_p0 = pnand %p1955_p4, %p2785_p6 }
 0x705   : > { %p2103_p5 = pneg %p2102_p0 }
 0x709   : > { %s1800_s6 = sand.u32 1, %s3207_s29  }
 0x70a   : > { %s1801_s17 = scalar_lea.sflag [#allocation6], %s1800_s6 }
 0x70b   : > { %2544 = dma.done.wait (%p2103_p5), %s1801_s17, 64  }
 0x70c   : > { %2546 = vsyncadd (%p2103_p5), %s1801_s17, 4294967232  ;;  %s38_s26 = sadd.s32 1, %s2569_s26   ;;  %s3209_s19 = sld [smem:[#allocation27_spill]] }
 0x70d   : > { %p35_p7 = scmp.ge.s32.totalorder %s38_s26, 4   ;;  %s3210_s23 = sld [smem:[#allocation30_spill]] }
 0x70e   : > { %s3211_s16 = sld [smem:[#allocation29_spill]]  ;;  %s3212_s21 = smov %s2553_s22 }
 0x70f   : > { %s3214_s24 = smov %s2565_s25 }
 0x710   :  { %37 = sbr.rel (!%p35_p7) target bundleno = 23 (0x17), region = 171 }
 0x712   : > { %s3213_s22 = smov %s3209_s19 }
 0x714   : > { %s3215_s25 = smov %s3211_s16 }
 0x715   :  { %1807 = vsyncpa [#allocation5], 1 }
 0x716   :  { %1809 = vsyncpa [#allocation5 + $0x1], 1 }
 0x717   :  { %1810 = vsyncpa [#allocation8], 1 }
 0x718   :  { %1812 = vsyncpa [#allocation8 + $0x1], 1 }
 0x719   :  { %1813 = vsyncpa [#allocation11], 1 }
 0x71a   :  { %1814 = vsyncpa [#allocation14], 1 }
 0x71b   :  { %1815 = vsyncpa [#allocation17], 1 }
 0x71c   :  { %1816 = vsyncpa [#allocation6], 1 }
 0x71d   :  { %1818 = vsyncpa [#allocation6 + $0x1], 1 }

</bundles_post_ra>
